<compile_context>
chip_gen: v5e
topology: v5e:2x2
jax: 0.10.0
libtpu: 0.0.40
codegen_flags: <defaults>
</compile_context>

<pallas_src>
import functools

import jax
import jax.numpy as jnp
from jax.experimental import pallas as pl
from jax.experimental.pallas import tpu as pltpu


def _lstm_head_kernel(*refs, T, BB, H, num_layers, compute_dtype):
    f32 = jnp.float32
    x_ref = refs[0]
    p_refs = refs[1:1 + 9 * num_layers]
    out_refs = refs[1 + 9 * num_layers:]

    n_in0 = x_ref.shape[-1]
    # (T, BB, nIn) -> (T*BB, nIn): lane dim untouched, sublane-tile aligned merge.
    cur = x_ref[...].reshape(T * BB, n_in0).astype(compute_dtype)

    for li in range(num_layers):
        wif, whf, bf, wib, whb, bb_, wef, web, be = (
            r[...] for r in p_refs[9 * li:9 * li + 9])
        n_out = wef.shape[-1]

        # ---- hoisted input projections (+ bias) for both directions ----
        # one big (T*BB, nIn) @ (nIn, 4H) MXU matmul per direction, off the
        # serial critical path; bias broadcast happens exactly once.
        gf = jnp.dot(cur, wif, preferred_element_type=f32) + bf    # (T*BB, 4H)
        gb = jnp.dot(cur, wib, preferred_element_type=f32) + bb_   # (T*BB, 4H)

        def cell(gx, h_prev, c_prev, wh):
            # per-step critical path: a single (BB,H)@(H,4H) matmul + pointwise
            g = gx + jnp.dot(h_prev.astype(compute_dtype), wh,
                             preferred_element_type=f32)
            s = jax.nn.sigmoid(g)          # one full-(BB,4H) vreg EUP pass
            th = jnp.tanh(g)               # one full-(BB,4H) vreg EUP pass
            # PyTorch gate order [i, f, g, o]
            c = s[:, H:2 * H] * c_prev + s[:, 0:H] * th[:, 2 * H:3 * H]
            h = s[:, 3 * H:4 * H] * jnp.tanh(c)
            return h, c

        hf = jnp.zeros((BB, H), f32)
        cf = jnp.zeros((BB, H), f32)
        hb = jnp.zeros((BB, H), f32)
        cb = jnp.zeros((BB, H), f32)

        parts = [None] * T
        # Fully unrolled (T is static & small): fwd step t=k and bwd step
        # t=T-1-k run back-to-back each iteration -> 2x ILP for the scheduler.
        for k in range(T):
            tb = T - 1 - k
            hf, cf = cell(gf[k * BB:(k + 1) * BB, :], hf, cf, whf)
            hb, cb = cell(gb[tb * BB:(tb + 1) * BB, :], hb, cb, whb)
            # output projection fused into the loop (fills idle MXU slots,
            # removes the (T,B,H) scratch buffers and the trailing einsum)
            yf = jnp.dot(hf.astype(compute_dtype), wef,
                         preferred_element_type=f32)
            yb = jnp.dot(hb.astype(compute_dtype), web,
                         preferred_element_type=f32)
            parts[k] = yf if parts[k] is None else parts[k] + yf
            parts[tb] = yb if parts[tb] is None else parts[tb] + yb

        out_flat = jnp.concatenate(parts, axis=0) + be           # (T*BB, nOut)
        out_refs[li][...] = out_flat.reshape(T, BB, n_out).astype(
            out_refs[li].dtype)
        cur = out_flat.astype(compute_dtype)                     # next layer in


def _round_up(x, m):
    return ((x + m - 1) // m) * m


_PARAM_KEYS = ('w_ih_f', 'w_hh_f', 'b_f', 'w_ih_b', 'w_hh_b', 'b_b',
               'w_emb_f', 'w_emb_b', 'b_emb')
_MXU_KEYS = {'w_ih_f', 'w_hh_f', 'w_ih_b', 'w_hh_b', 'w_emb_f', 'w_emb_b'}


def lstm_head_forward(x, head_params, *, compute_dtype=jnp.bfloat16):
    """Runs the whole lstmHead (all BiLSTM layers) in a single Pallas kernel.

    Returns the list of per-layer outputs, like the PyTorch module."""
    T, B, n_in = x.shape
    H = head_params[0]['w_hh_f'].shape[0]
    num_layers = len(head_params)

    # Pad batch to a multiple of the sublane group (8) so every (B, .) vreg /
    # store is full; one batch block per grid step ("parallel" -> both TCs on
    # v7x once the batch is large enough for >1 block).
    BB = min(64, _round_up(B, 8))
    B_pad = _round_up(B, BB)
    if B_pad != B:
        x = jnp.pad(x, ((0, 0), (0, B_pad - B), (0, 0)))
    num_blocks = B_pad // BB

    flat_params = []
    out_dims = []
    for p in head_params:
        for k in _PARAM_KEYS:
            w = p[k]
            flat_params.append(w.astype(compute_dtype) if k in _MXU_KEYS
                               else w.astype(jnp.float32))
        out_dims.append(p['w_emb_f'].shape[1])

    const_map = lambda b: (0, 0)                     # all params are 2-D
    in_specs = [pl.BlockSpec((T, BB, n_in), lambda b: (0, b, 0))]
    in_specs += [pl.BlockSpec(w.shape, const_map) for w in flat_params]
    out_specs = tuple(pl.BlockSpec((T, BB, d), lambda b: (0, b, 0))
                      for d in out_dims)
    out_shape = tuple(jax.ShapeDtypeStruct((T, B_pad, d), jnp.float32)
                      for d in out_dims)

    kernel = functools.partial(_lstm_head_kernel, T=T, BB=BB, H=H,
                               num_layers=num_layers,
                               compute_dtype=compute_dtype)
    outs = pl.pallas_call(
        kernel,
        grid=(num_blocks,),
        in_specs=in_specs,
        out_specs=out_specs,
        out_shape=out_shape,
        compiler_params=pltpu.CompilerParams(
            dimension_semantics=("parallel",)),
    )(x, *flat_params)

    if B_pad != B:
        outs = tuple(o[:, :B, :] for o in outs)
    return list(outs)


def init_bilstm_params(key, n_in, n_hidden, n_out):
    ks = jax.random.split(key, 12)
    u = lambda k, shape, bound: jax.random.uniform(
        k, shape, jnp.float32, -bound, bound)
    kl = 1.0 / float(n_hidden) ** 0.5          # PyTorch LSTM init bound
    ke = 1.0 / float(2 * n_hidden) ** 0.5      # PyTorch Linear init bound
    w_emb = u(ks[10], (2 * n_hidden, n_out), ke)
    return {
        # weights stored pre-transposed: (in, 4H) so the kernel does x @ W
        'w_ih_f': u(ks[0], (n_in, 4 * n_hidden), kl),
        'w_hh_f': u(ks[1], (n_hidden, 4 * n_hidden), kl),
        'b_f': u(ks[2], (1, 4 * n_hidden), kl) + u(ks[3], (1, 4 * n_hidden), kl),
        'w_ih_b': u(ks[4], (n_in, 4 * n_hidden), kl),
        'w_hh_b': u(ks[5], (n_hidden, 4 * n_hidden), kl),
        'b_b': u(ks[6], (1, 4 * n_hidden), kl) + u(ks[7], (1, 4 * n_hidden), kl),
        'w_emb_f': w_emb[:n_hidden],
        'w_emb_b': w_emb[n_hidden:],
        'b_emb': u(ks[11], (1, n_out), ke),
    }


def init_lstm_head_params(key, headnum, inchannel, nh, nclass):
    keys = jax.random.split(key, headnum)
    params = []
    if headnum == 1:
        params.append(init_bilstm_params(keys[0], inchannel, nh, nclass))
    else:
        for i in range(headnum - 1):
            n_in = inchannel if i == 0 else nh
            params.append(init_bilstm_params(keys[i], n_in, nh, nh))
        params.append(init_bilstm_params(keys[-1], nh, nh, nclass))
    return params


if __name__ == "__main__":
    # module config: headnum=2, inchannel=16, nh=32, nclass=16
    headnum, inchannel, nh, nclass = 2, 16, 32, 16
    T, B = 8, 2

    root = jax.random.PRNGKey(0)
    k_x, k_p = jax.random.split(root)
    x = jax.random.normal(k_x, (T, B, inchannel), dtype=jnp.float32)
    params = init_lstm_head_params(k_p, headnum, inchannel, nh, nclass)

    outs = lstm_head_forward(x, params)
    for o in outs:
        jax.block_until_ready(o)

    assert outs[0].shape == (T, B, nh)
    assert outs[-1].shape == (T, B, nclass)
    print("KERNEL_OK")
</pallas_src>

<mosaic_0001>
module attributes {stable_mosaic.version = 11 : i64} {
  func.func @_lstm_head_kernel(%arg0: i32, %arg1: memref<8x8x16xf32, #tpu.memory_space<vmem>>, %arg2: memref<16x128xbf16, #tpu.memory_space<vmem>>, %arg3: memref<32x128xbf16, #tpu.memory_space<vmem>>, %arg4: memref<1x128xf32, #tpu.memory_space<vmem>>, %arg5: memref<16x128xbf16, #tpu.memory_space<vmem>>, %arg6: memref<32x128xbf16, #tpu.memory_space<vmem>>, %arg7: memref<1x128xf32, #tpu.memory_space<vmem>>, %arg8: memref<32x32xbf16, #tpu.memory_space<vmem>>, %arg9: memref<32x32xbf16, #tpu.memory_space<vmem>>, %arg10: memref<1x32xf32, #tpu.memory_space<vmem>>, %arg11: memref<32x128xbf16, #tpu.memory_space<vmem>>, %arg12: memref<32x128xbf16, #tpu.memory_space<vmem>>, %arg13: memref<1x128xf32, #tpu.memory_space<vmem>>, %arg14: memref<32x128xbf16, #tpu.memory_space<vmem>>, %arg15: memref<32x128xbf16, #tpu.memory_space<vmem>>, %arg16: memref<1x128xf32, #tpu.memory_space<vmem>>, %arg17: memref<32x16xbf16, #tpu.memory_space<vmem>>, %arg18: memref<32x16xbf16, #tpu.memory_space<vmem>>, %arg19: memref<1x16xf32, #tpu.memory_space<vmem>>, %arg20: memref<8x8x32xf32, #tpu.memory_space<vmem>>, %arg21: memref<8x8x16xf32, #tpu.memory_space<vmem>>) attributes {dimension_semantics = [#tpu.dimension_semantics<parallel>], iteration_bounds = array<i64: 1>, scalar_prefetch = 0 : i64, scratch_operands = 0 : i64, tpu.core_type = #tpu.core_type<tc>, window_params = [{transform_indices = @transform_0, window_bounds = array<i64: 8, 8, 16>}, {pipeline_mode = #tpu.pipeline_mode<synchronous>, transform_indices = @transform_1, window_bounds = array<i64: 16, 128>}, {pipeline_mode = #tpu.pipeline_mode<synchronous>, transform_indices = @transform_2, window_bounds = array<i64: 32, 128>}, {pipeline_mode = #tpu.pipeline_mode<synchronous>, transform_indices = @transform_3, window_bounds = array<i64: 1, 128>}, {pipeline_mode = #tpu.pipeline_mode<synchronous>, transform_indices = @transform_4, window_bounds = array<i64: 16, 128>}, {pipeline_mode = #tpu.pipeline_mode<synchronous>, transform_indices = @transform_5, window_bounds = array<i64: 32, 128>}, {pipeline_mode = #tpu.pipeline_mode<synchronous>, transform_indices = @transform_6, window_bounds = array<i64: 1, 128>}, {pipeline_mode = #tpu.pipeline_mode<synchronous>, transform_indices = @transform_7, window_bounds = array<i64: 32, 32>}, {pipeline_mode = #tpu.pipeline_mode<synchronous>, transform_indices = @transform_8, window_bounds = array<i64: 32, 32>}, {pipeline_mode = #tpu.pipeline_mode<synchronous>, transform_indices = @transform_9, window_bounds = array<i64: 1, 32>}, {pipeline_mode = #tpu.pipeline_mode<synchronous>, transform_indices = @transform_10, window_bounds = array<i64: 32, 128>}, {pipeline_mode = #tpu.pipeline_mode<synchronous>, transform_indices = @transform_11, window_bounds = array<i64: 32, 128>}, {pipeline_mode = #tpu.pipeline_mode<synchronous>, transform_indices = @transform_12, window_bounds = array<i64: 1, 128>}, {pipeline_mode = #tpu.pipeline_mode<synchronous>, transform_indices = @transform_13, window_bounds = array<i64: 32, 128>}, {pipeline_mode = #tpu.pipeline_mode<synchronous>, transform_indices = @transform_14, window_bounds = array<i64: 32, 128>}, {pipeline_mode = #tpu.pipeline_mode<synchronous>, transform_indices = @transform_15, window_bounds = array<i64: 1, 128>}, {pipeline_mode = #tpu.pipeline_mode<synchronous>, transform_indices = @transform_16, window_bounds = array<i64: 32, 16>}, {pipeline_mode = #tpu.pipeline_mode<synchronous>, transform_indices = @transform_17, window_bounds = array<i64: 32, 16>}, {pipeline_mode = #tpu.pipeline_mode<synchronous>, transform_indices = @transform_18, window_bounds = array<i64: 1, 16>}, {transform_indices = @transform_19, window_bounds = array<i64: 8, 8, 32>}, {transform_indices = @transform_20, window_bounds = array<i64: 8, 8, 16>}]} {
    %c0 = arith.constant 0 : index
    %c0_0 = arith.constant 0 : index
    %c0_1 = arith.constant 0 : index
    %0 = vector.load %arg1[%c0, %c0_0, %c0_1] : memref<8x8x16xf32, #tpu.memory_space<vmem>>, vector<8x8x16xf32>
    %1 = vector.shape_cast %0 : vector<8x8x16xf32> to vector<64x16xf32>
    %2 = arith.truncf %1 : vector<64x16xf32> to vector<64x16xbf16>
    %c0_2 = arith.constant 0 : index
    %c0_3 = arith.constant 0 : index
    %3 = vector.load %arg2[%c0_2, %c0_3] : memref<16x128xbf16, #tpu.memory_space<vmem>>, vector<16x128xbf16>
    %c0_4 = arith.constant 0 : index
    %c0_5 = arith.constant 0 : index
    %4 = vector.load %arg3[%c0_4, %c0_5] : memref<32x128xbf16, #tpu.memory_space<vmem>>, vector<32x128xbf16>
    %c0_6 = arith.constant 0 : index
    %c0_7 = arith.constant 0 : index
    %5 = vector.load %arg4[%c0_6, %c0_7] : memref<1x128xf32, #tpu.memory_space<vmem>>, vector<1x128xf32>
    %c0_8 = arith.constant 0 : index
    %c0_9 = arith.constant 0 : index
    %6 = vector.load %arg5[%c0_8, %c0_9] : memref<16x128xbf16, #tpu.memory_space<vmem>>, vector<16x128xbf16>
    %c0_10 = arith.constant 0 : index
    %c0_11 = arith.constant 0 : index
    %7 = vector.load %arg6[%c0_10, %c0_11] : memref<32x128xbf16, #tpu.memory_space<vmem>>, vector<32x128xbf16>
    %c0_12 = arith.constant 0 : index
    %c0_13 = arith.constant 0 : index
    %8 = vector.load %arg7[%c0_12, %c0_13] : memref<1x128xf32, #tpu.memory_space<vmem>>, vector<1x128xf32>
    %c0_14 = arith.constant 0 : index
    %c0_15 = arith.constant 0 : index
    %9 = vector.load %arg8[%c0_14, %c0_15] : memref<32x32xbf16, #tpu.memory_space<vmem>>, vector<32x32xbf16>
    %c0_16 = arith.constant 0 : index
    %c0_17 = arith.constant 0 : index
    %10 = vector.load %arg9[%c0_16, %c0_17] : memref<32x32xbf16, #tpu.memory_space<vmem>>, vector<32x32xbf16>
    %c0_18 = arith.constant 0 : index
    %c0_19 = arith.constant 0 : index
    %11 = vector.load %arg10[%c0_18, %c0_19] : memref<1x32xf32, #tpu.memory_space<vmem>>, vector<1x32xf32>
    %cst = arith.constant dense<0.000000e+00> : vector<64x128xf32>
    %12 = tpu.matmul %2, %3, %cst {dimension_numbers = #tpu.dot_dimension_numbers<[1], [0], [0], [1], [0, 0, 1, 1], [], []>} : vector<64x16xbf16>, vector<16x128xbf16>, vector<64x128xf32> -> vector<64x128xf32>
    %13 = vector.broadcast %5 : vector<1x128xf32> to vector<64x128xf32>
    %14 = arith.addf %12, %13 : vector<64x128xf32>
    %cst_20 = arith.constant dense<0.000000e+00> : vector<64x128xf32>
    %15 = tpu.matmul %2, %6, %cst_20 {dimension_numbers = #tpu.dot_dimension_numbers<[1], [0], [0], [1], [0, 0, 1, 1], [], []>} : vector<64x16xbf16>, vector<16x128xbf16>, vector<64x128xf32> -> vector<64x128xf32>
    %16 = vector.broadcast %8 : vector<1x128xf32> to vector<64x128xf32>
    %17 = arith.addf %15, %16 : vector<64x128xf32>
    %cst_21 = arith.constant 0.000000e+00 : f32
    %18 = vector.broadcast %cst_21 : f32 to vector<8x32xf32>
    %cst_22 = arith.constant 0.000000e+00 : f32
    %19 = vector.broadcast %cst_22 : f32 to vector<8x32xf32>
    %cst_23 = arith.constant 0.000000e+00 : f32
    %20 = vector.broadcast %cst_23 : f32 to vector<8x32xf32>
    %cst_24 = arith.constant 0.000000e+00 : f32
    %21 = vector.broadcast %cst_24 : f32 to vector<8x32xf32>
    %22 = vector.extract_strided_slice %14 {offsets = [0, 0], sizes = [8, 128], strides = [1, 1]} : vector<64x128xf32> to vector<8x128xf32>
    %23 = arith.truncf %18 : vector<8x32xf32> to vector<8x32xbf16>
    %cst_25 = arith.constant dense<0.000000e+00> : vector<8x128xf32>
    %24 = tpu.matmul %23, %4, %cst_25 {dimension_numbers = #tpu.dot_dimension_numbers<[1], [0], [0], [1], [0, 0, 1, 1], [], []>} : vector<8x32xbf16>, vector<32x128xbf16>, vector<8x128xf32> -> vector<8x128xf32>
    %25 = arith.addf %22, %24 : vector<8x128xf32>
    %26 = arith.negf %25 : vector<8x128xf32>
    %27 = math.exp %26 : vector<8x128xf32>
    %cst_26 = arith.constant 1.000000e+00 : f32
    %28 = vector.broadcast %cst_26 : f32 to vector<8x128xf32>
    %29 = arith.addf %28, %27 : vector<8x128xf32>
    %30 = arith.divf %28, %29 : vector<8x128xf32>
    %31 = math.tanh %25 : vector<8x128xf32>
    %32 = vector.extract_strided_slice %30 {offsets = [0, 32], sizes = [8, 32], strides = [1, 1]} : vector<8x128xf32> to vector<8x32xf32>
    %33 = arith.mulf %32, %19 : vector<8x32xf32>
    %34 = vector.extract_strided_slice %30 {offsets = [0, 0], sizes = [8, 32], strides = [1, 1]} : vector<8x128xf32> to vector<8x32xf32>
    %35 = vector.extract_strided_slice %31 {offsets = [0, 64], sizes = [8, 32], strides = [1, 1]} : vector<8x128xf32> to vector<8x32xf32>
    %36 = arith.mulf %34, %35 : vector<8x32xf32>
    %37 = arith.addf %33, %36 : vector<8x32xf32>
    %38 = vector.extract_strided_slice %30 {offsets = [0, 96], sizes = [8, 32], strides = [1, 1]} : vector<8x128xf32> to vector<8x32xf32>
    %39 = math.tanh %37 : vector<8x32xf32>
    %40 = arith.mulf %38, %39 : vector<8x32xf32>
    %41 = vector.extract_strided_slice %17 {offsets = [56, 0], sizes = [8, 128], strides = [1, 1]} : vector<64x128xf32> to vector<8x128xf32>
    %42 = arith.truncf %20 : vector<8x32xf32> to vector<8x32xbf16>
    %cst_27 = arith.constant dense<0.000000e+00> : vector<8x128xf32>
    %43 = tpu.matmul %42, %7, %cst_27 {dimension_numbers = #tpu.dot_dimension_numbers<[1], [0], [0], [1], [0, 0, 1, 1], [], []>} : vector<8x32xbf16>, vector<32x128xbf16>, vector<8x128xf32> -> vector<8x128xf32>
    %44 = arith.addf %41, %43 : vector<8x128xf32>
    %45 = arith.negf %44 : vector<8x128xf32>
    %46 = math.exp %45 : vector<8x128xf32>
    %cst_28 = arith.constant 1.000000e+00 : f32
    %47 = vector.broadcast %cst_28 : f32 to vector<8x128xf32>
    %48 = arith.addf %47, %46 : vector<8x128xf32>
    %49 = arith.divf %47, %48 : vector<8x128xf32>
    %50 = math.tanh %44 : vector<8x128xf32>
    %51 = vector.extract_strided_slice %49 {offsets = [0, 32], sizes = [8, 32], strides = [1, 1]} : vector<8x128xf32> to vector<8x32xf32>
    %52 = arith.mulf %51, %21 : vector<8x32xf32>
    %53 = vector.extract_strided_slice %49 {offsets = [0, 0], sizes = [8, 32], strides = [1, 1]} : vector<8x128xf32> to vector<8x32xf32>
    %54 = vector.extract_strided_slice %50 {offsets = [0, 64], sizes = [8, 32], strides = [1, 1]} : vector<8x128xf32> to vector<8x32xf32>
    %55 = arith.mulf %53, %54 : vector<8x32xf32>
    %56 = arith.addf %52, %55 : vector<8x32xf32>
    %57 = vector.extract_strided_slice %49 {offsets = [0, 96], sizes = [8, 32], strides = [1, 1]} : vector<8x128xf32> to vector<8x32xf32>
    %58 = math.tanh %56 : vector<8x32xf32>
    %59 = arith.mulf %57, %58 : vector<8x32xf32>
    %60 = arith.truncf %40 : vector<8x32xf32> to vector<8x32xbf16>
    %cst_29 = arith.constant dense<0.000000e+00> : vector<8x32xf32>
    %61 = tpu.matmul %60, %9, %cst_29 {dimension_numbers = #tpu.dot_dimension_numbers<[1], [0], [0], [1], [0, 0, 1, 1], [], []>} : vector<8x32xbf16>, vector<32x32xbf16>, vector<8x32xf32> -> vector<8x32xf32>
    %62 = arith.truncf %59 : vector<8x32xf32> to vector<8x32xbf16>
    %cst_30 = arith.constant dense<0.000000e+00> : vector<8x32xf32>
    %63 = tpu.matmul %62, %10, %cst_30 {dimension_numbers = #tpu.dot_dimension_numbers<[1], [0], [0], [1], [0, 0, 1, 1], [], []>} : vector<8x32xbf16>, vector<32x32xbf16>, vector<8x32xf32> -> vector<8x32xf32>
    %64 = vector.extract_strided_slice %14 {offsets = [8, 0], sizes = [8, 128], strides = [1, 1]} : vector<64x128xf32> to vector<8x128xf32>
    %65 = arith.truncf %40 : vector<8x32xf32> to vector<8x32xbf16>
    %cst_31 = arith.constant dense<0.000000e+00> : vector<8x128xf32>
    %66 = tpu.matmul %65, %4, %cst_31 {dimension_numbers = #tpu.dot_dimension_numbers<[1], [0], [0], [1], [0, 0, 1, 1], [], []>} : vector<8x32xbf16>, vector<32x128xbf16>, vector<8x128xf32> -> vector<8x128xf32>
    %67 = arith.addf %64, %66 : vector<8x128xf32>
    %68 = arith.negf %67 : vector<8x128xf32>
    %69 = math.exp %68 : vector<8x128xf32>
    %cst_32 = arith.constant 1.000000e+00 : f32
    %70 = vector.broadcast %cst_32 : f32 to vector<8x128xf32>
    %71 = arith.addf %70, %69 : vector<8x128xf32>
    %72 = arith.divf %70, %71 : vector<8x128xf32>
    %73 = math.tanh %67 : vector<8x128xf32>
    %74 = vector.extract_strided_slice %72 {offsets = [0, 32], sizes = [8, 32], strides = [1, 1]} : vector<8x128xf32> to vector<8x32xf32>
    %75 = arith.mulf %74, %37 : vector<8x32xf32>
    %76 = vector.extract_strided_slice %72 {offsets = [0, 0], sizes = [8, 32], strides = [1, 1]} : vector<8x128xf32> to vector<8x32xf32>
    %77 = vector.extract_strided_slice %73 {offsets = [0, 64], sizes = [8, 32], strides = [1, 1]} : vector<8x128xf32> to vector<8x32xf32>
    %78 = arith.mulf %76, %77 : vector<8x32xf32>
    %79 = arith.addf %75, %78 : vector<8x32xf32>
    %80 = vector.extract_strided_slice %72 {offsets = [0, 96], sizes = [8, 32], strides = [1, 1]} : vector<8x128xf32> to vector<8x32xf32>
    %81 = math.tanh %79 : vector<8x32xf32>
    %82 = arith.mulf %80, %81 : vector<8x32xf32>
    %83 = vector.extract_strided_slice %17 {offsets = [48, 0], sizes = [8, 128], strides = [1, 1]} : vector<64x128xf32> to vector<8x128xf32>
    %84 = arith.truncf %59 : vector<8x32xf32> to vector<8x32xbf16>
    %cst_33 = arith.constant dense<0.000000e+00> : vector<8x128xf32>
    %85 = tpu.matmul %84, %7, %cst_33 {dimension_numbers = #tpu.dot_dimension_numbers<[1], [0], [0], [1], [0, 0, 1, 1], [], []>} : vector<8x32xbf16>, vector<32x128xbf16>, vector<8x128xf32> -> vector<8x128xf32>
    %86 = arith.addf %83, %85 : vector<8x128xf32>
    %87 = arith.negf %86 : vector<8x128xf32>
    %88 = math.exp %87 : vector<8x128xf32>
    %cst_34 = arith.constant 1.000000e+00 : f32
    %89 = vector.broadcast %cst_34 : f32 to vector<8x128xf32>
    %90 = arith.addf %89, %88 : vector<8x128xf32>
    %91 = arith.divf %89, %90 : vector<8x128xf32>
    %92 = math.tanh %86 : vector<8x128xf32>
    %93 = vector.extract_strided_slice %91 {offsets = [0, 32], sizes = [8, 32], strides = [1, 1]} : vector<8x128xf32> to vector<8x32xf32>
    %94 = arith.mulf %93, %56 : vector<8x32xf32>
    %95 = vector.extract_strided_slice %91 {offsets = [0, 0], sizes = [8, 32], strides = [1, 1]} : vector<8x128xf32> to vector<8x32xf32>
    %96 = vector.extract_strided_slice %92 {offsets = [0, 64], sizes = [8, 32], strides = [1, 1]} : vector<8x128xf32> to vector<8x32xf32>
    %97 = arith.mulf %95, %96 : vector<8x32xf32>
    %98 = arith.addf %94, %97 : vector<8x32xf32>
    %99 = vector.extract_strided_slice %91 {offsets = [0, 96], sizes = [8, 32], strides = [1, 1]} : vector<8x128xf32> to vector<8x32xf32>
    %100 = math.tanh %98 : vector<8x32xf32>
    %101 = arith.mulf %99, %100 : vector<8x32xf32>
    %102 = arith.truncf %82 : vector<8x32xf32> to vector<8x32xbf16>
    %cst_35 = arith.constant dense<0.000000e+00> : vector<8x32xf32>
    %103 = tpu.matmul %102, %9, %cst_35 {dimension_numbers = #tpu.dot_dimension_numbers<[1], [0], [0], [1], [0, 0, 1, 1], [], []>} : vector<8x32xbf16>, vector<32x32xbf16>, vector<8x32xf32> -> vector<8x32xf32>
    %104 = arith.truncf %101 : vector<8x32xf32> to vector<8x32xbf16>
    %cst_36 = arith.constant dense<0.000000e+00> : vector<8x32xf32>
    %105 = tpu.matmul %104, %10, %cst_36 {dimension_numbers = #tpu.dot_dimension_numbers<[1], [0], [0], [1], [0, 0, 1, 1], [], []>} : vector<8x32xbf16>, vector<32x32xbf16>, vector<8x32xf32> -> vector<8x32xf32>
    %106 = vector.extract_strided_slice %14 {offsets = [16, 0], sizes = [8, 128], strides = [1, 1]} : vector<64x128xf32> to vector<8x128xf32>
    %107 = arith.truncf %82 : vector<8x32xf32> to vector<8x32xbf16>
    %cst_37 = arith.constant dense<0.000000e+00> : vector<8x128xf32>
    %108 = tpu.matmul %107, %4, %cst_37 {dimension_numbers = #tpu.dot_dimension_numbers<[1], [0], [0], [1], [0, 0, 1, 1], [], []>} : vector<8x32xbf16>, vector<32x128xbf16>, vector<8x128xf32> -> vector<8x128xf32>
    %109 = arith.addf %106, %108 : vector<8x128xf32>
    %110 = arith.negf %109 : vector<8x128xf32>
    %111 = math.exp %110 : vector<8x128xf32>
    %cst_38 = arith.constant 1.000000e+00 : f32
    %112 = vector.broadcast %cst_38 : f32 to vector<8x128xf32>
    %113 = arith.addf %112, %111 : vector<8x128xf32>
    %114 = arith.divf %112, %113 : vector<8x128xf32>
    %115 = math.tanh %109 : vector<8x128xf32>
    %116 = vector.extract_strided_slice %114 {offsets = [0, 32], sizes = [8, 32], strides = [1, 1]} : vector<8x128xf32> to vector<8x32xf32>
    %117 = arith.mulf %116, %79 : vector<8x32xf32>
    %118 = vector.extract_strided_slice %114 {offsets = [0, 0], sizes = [8, 32], strides = [1, 1]} : vector<8x128xf32> to vector<8x32xf32>
    %119 = vector.extract_strided_slice %115 {offsets = [0, 64], sizes = [8, 32], strides = [1, 1]} : vector<8x128xf32> to vector<8x32xf32>
    %120 = arith.mulf %118, %119 : vector<8x32xf32>
    %121 = arith.addf %117, %120 : vector<8x32xf32>
    %122 = vector.extract_strided_slice %114 {offsets = [0, 96], sizes = [8, 32], strides = [1, 1]} : vector<8x128xf32> to vector<8x32xf32>
    %123 = math.tanh %121 : vector<8x32xf32>
    %124 = arith.mulf %122, %123 : vector<8x32xf32>
    %125 = vector.extract_strided_slice %17 {offsets = [40, 0], sizes = [8, 128], strides = [1, 1]} : vector<64x128xf32> to vector<8x128xf32>
    %126 = arith.truncf %101 : vector<8x32xf32> to vector<8x32xbf16>
    %cst_39 = arith.constant dense<0.000000e+00> : vector<8x128xf32>
    %127 = tpu.matmul %126, %7, %cst_39 {dimension_numbers = #tpu.dot_dimension_numbers<[1], [0], [0], [1], [0, 0, 1, 1], [], []>} : vector<8x32xbf16>, vector<32x128xbf16>, vector<8x128xf32> -> vector<8x128xf32>
    %128 = arith.addf %125, %127 : vector<8x128xf32>
    %129 = arith.negf %128 : vector<8x128xf32>
    %130 = math.exp %129 : vector<8x128xf32>
    %cst_40 = arith.constant 1.000000e+00 : f32
    %131 = vector.broadcast %cst_40 : f32 to vector<8x128xf32>
    %132 = arith.addf %131, %130 : vector<8x128xf32>
    %133 = arith.divf %131, %132 : vector<8x128xf32>
    %134 = math.tanh %128 : vector<8x128xf32>
    %135 = vector.extract_strided_slice %133 {offsets = [0, 32], sizes = [8, 32], strides = [1, 1]} : vector<8x128xf32> to vector<8x32xf32>
    %136 = arith.mulf %135, %98 : vector<8x32xf32>
    %137 = vector.extract_strided_slice %133 {offsets = [0, 0], sizes = [8, 32], strides = [1, 1]} : vector<8x128xf32> to vector<8x32xf32>
    %138 = vector.extract_strided_slice %134 {offsets = [0, 64], sizes = [8, 32], strides = [1, 1]} : vector<8x128xf32> to vector<8x32xf32>
    %139 = arith.mulf %137, %138 : vector<8x32xf32>
    %140 = arith.addf %136, %139 : vector<8x32xf32>
    %141 = vector.extract_strided_slice %133 {offsets = [0, 96], sizes = [8, 32], strides = [1, 1]} : vector<8x128xf32> to vector<8x32xf32>
    %142 = math.tanh %140 : vector<8x32xf32>
    %143 = arith.mulf %141, %142 : vector<8x32xf32>
    %144 = arith.truncf %124 : vector<8x32xf32> to vector<8x32xbf16>
    %cst_41 = arith.constant dense<0.000000e+00> : vector<8x32xf32>
    %145 = tpu.matmul %144, %9, %cst_41 {dimension_numbers = #tpu.dot_dimension_numbers<[1], [0], [0], [1], [0, 0, 1, 1], [], []>} : vector<8x32xbf16>, vector<32x32xbf16>, vector<8x32xf32> -> vector<8x32xf32>
    %146 = arith.truncf %143 : vector<8x32xf32> to vector<8x32xbf16>
    %cst_42 = arith.constant dense<0.000000e+00> : vector<8x32xf32>
    %147 = tpu.matmul %146, %10, %cst_42 {dimension_numbers = #tpu.dot_dimension_numbers<[1], [0], [0], [1], [0, 0, 1, 1], [], []>} : vector<8x32xbf16>, vector<32x32xbf16>, vector<8x32xf32> -> vector<8x32xf32>
    %148 = vector.extract_strided_slice %14 {offsets = [24, 0], sizes = [8, 128], strides = [1, 1]} : vector<64x128xf32> to vector<8x128xf32>
    %149 = arith.truncf %124 : vector<8x32xf32> to vector<8x32xbf16>
    %cst_43 = arith.constant dense<0.000000e+00> : vector<8x128xf32>
    %150 = tpu.matmul %149, %4, %cst_43 {dimension_numbers = #tpu.dot_dimension_numbers<[1], [0], [0], [1], [0, 0, 1, 1], [], []>} : vector<8x32xbf16>, vector<32x128xbf16>, vector<8x128xf32> -> vector<8x128xf32>
    %151 = arith.addf %148, %150 : vector<8x128xf32>
    %152 = arith.negf %151 : vector<8x128xf32>
    %153 = math.exp %152 : vector<8x128xf32>
    %cst_44 = arith.constant 1.000000e+00 : f32
    %154 = vector.broadcast %cst_44 : f32 to vector<8x128xf32>
    %155 = arith.addf %154, %153 : vector<8x128xf32>
    %156 = arith.divf %154, %155 : vector<8x128xf32>
    %157 = math.tanh %151 : vector<8x128xf32>
    %158 = vector.extract_strided_slice %156 {offsets = [0, 32], sizes = [8, 32], strides = [1, 1]} : vector<8x128xf32> to vector<8x32xf32>
    %159 = arith.mulf %158, %121 : vector<8x32xf32>
    %160 = vector.extract_strided_slice %156 {offsets = [0, 0], sizes = [8, 32], strides = [1, 1]} : vector<8x128xf32> to vector<8x32xf32>
    %161 = vector.extract_strided_slice %157 {offsets = [0, 64], sizes = [8, 32], strides = [1, 1]} : vector<8x128xf32> to vector<8x32xf32>
    %162 = arith.mulf %160, %161 : vector<8x32xf32>
    %163 = arith.addf %159, %162 : vector<8x32xf32>
    %164 = vector.extract_strided_slice %156 {offsets = [0, 96], sizes = [8, 32], strides = [1, 1]} : vector<8x128xf32> to vector<8x32xf32>
    %165 = math.tanh %163 : vector<8x32xf32>
    %166 = arith.mulf %164, %165 : vector<8x32xf32>
    %167 = vector.extract_strided_slice %17 {offsets = [32, 0], sizes = [8, 128], strides = [1, 1]} : vector<64x128xf32> to vector<8x128xf32>
    %168 = arith.truncf %143 : vector<8x32xf32> to vector<8x32xbf16>
    %cst_45 = arith.constant dense<0.000000e+00> : vector<8x128xf32>
    %169 = tpu.matmul %168, %7, %cst_45 {dimension_numbers = #tpu.dot_dimension_numbers<[1], [0], [0], [1], [0, 0, 1, 1], [], []>} : vector<8x32xbf16>, vector<32x128xbf16>, vector<8x128xf32> -> vector<8x128xf32>
    %170 = arith.addf %167, %169 : vector<8x128xf32>
    %171 = arith.negf %170 : vector<8x128xf32>
    %172 = math.exp %171 : vector<8x128xf32>
    %cst_46 = arith.constant 1.000000e+00 : f32
    %173 = vector.broadcast %cst_46 : f32 to vector<8x128xf32>
    %174 = arith.addf %173, %172 : vector<8x128xf32>
    %175 = arith.divf %173, %174 : vector<8x128xf32>
    %176 = math.tanh %170 : vector<8x128xf32>
    %177 = vector.extract_strided_slice %175 {offsets = [0, 32], sizes = [8, 32], strides = [1, 1]} : vector<8x128xf32> to vector<8x32xf32>
    %178 = arith.mulf %177, %140 : vector<8x32xf32>
    %179 = vector.extract_strided_slice %175 {offsets = [0, 0], sizes = [8, 32], strides = [1, 1]} : vector<8x128xf32> to vector<8x32xf32>
    %180 = vector.extract_strided_slice %176 {offsets = [0, 64], sizes = [8, 32], strides = [1, 1]} : vector<8x128xf32> to vector<8x32xf32>
    %181 = arith.mulf %179, %180 : vector<8x32xf32>
    %182 = arith.addf %178, %181 : vector<8x32xf32>
    %183 = vector.extract_strided_slice %175 {offsets = [0, 96], sizes = [8, 32], strides = [1, 1]} : vector<8x128xf32> to vector<8x32xf32>
    %184 = math.tanh %182 : vector<8x32xf32>
    %185 = arith.mulf %183, %184 : vector<8x32xf32>
    %186 = arith.truncf %166 : vector<8x32xf32> to vector<8x32xbf16>
    %cst_47 = arith.constant dense<0.000000e+00> : vector<8x32xf32>
    %187 = tpu.matmul %186, %9, %cst_47 {dimension_numbers = #tpu.dot_dimension_numbers<[1], [0], [0], [1], [0, 0, 1, 1], [], []>} : vector<8x32xbf16>, vector<32x32xbf16>, vector<8x32xf32> -> vector<8x32xf32>
    %188 = arith.truncf %185 : vector<8x32xf32> to vector<8x32xbf16>
    %cst_48 = arith.constant dense<0.000000e+00> : vector<8x32xf32>
    %189 = tpu.matmul %188, %10, %cst_48 {dimension_numbers = #tpu.dot_dimension_numbers<[1], [0], [0], [1], [0, 0, 1, 1], [], []>} : vector<8x32xbf16>, vector<32x32xbf16>, vector<8x32xf32> -> vector<8x32xf32>
    %190 = vector.extract_strided_slice %14 {offsets = [32, 0], sizes = [8, 128], strides = [1, 1]} : vector<64x128xf32> to vector<8x128xf32>
    %191 = arith.truncf %166 : vector<8x32xf32> to vector<8x32xbf16>
    %cst_49 = arith.constant dense<0.000000e+00> : vector<8x128xf32>
    %192 = tpu.matmul %191, %4, %cst_49 {dimension_numbers = #tpu.dot_dimension_numbers<[1], [0], [0], [1], [0, 0, 1, 1], [], []>} : vector<8x32xbf16>, vector<32x128xbf16>, vector<8x128xf32> -> vector<8x128xf32>
    %193 = arith.addf %190, %192 : vector<8x128xf32>
    %194 = arith.negf %193 : vector<8x128xf32>
    %195 = math.exp %194 : vector<8x128xf32>
    %cst_50 = arith.constant 1.000000e+00 : f32
    %196 = vector.broadcast %cst_50 : f32 to vector<8x128xf32>
    %197 = arith.addf %196, %195 : vector<8x128xf32>
    %198 = arith.divf %196, %197 : vector<8x128xf32>
    %199 = math.tanh %193 : vector<8x128xf32>
    %200 = vector.extract_strided_slice %198 {offsets = [0, 32], sizes = [8, 32], strides = [1, 1]} : vector<8x128xf32> to vector<8x32xf32>
    %201 = arith.mulf %200, %163 : vector<8x32xf32>
    %202 = vector.extract_strided_slice %198 {offsets = [0, 0], sizes = [8, 32], strides = [1, 1]} : vector<8x128xf32> to vector<8x32xf32>
    %203 = vector.extract_strided_slice %199 {offsets = [0, 64], sizes = [8, 32], strides = [1, 1]} : vector<8x128xf32> to vector<8x32xf32>
    %204 = arith.mulf %202, %203 : vector<8x32xf32>
    %205 = arith.addf %201, %204 : vector<8x32xf32>
    %206 = vector.extract_strided_slice %198 {offsets = [0, 96], sizes = [8, 32], strides = [1, 1]} : vector<8x128xf32> to vector<8x32xf32>
    %207 = math.tanh %205 : vector<8x32xf32>
    %208 = arith.mulf %206, %207 : vector<8x32xf32>
    %209 = vector.extract_strided_slice %17 {offsets = [24, 0], sizes = [8, 128], strides = [1, 1]} : vector<64x128xf32> to vector<8x128xf32>
    %210 = arith.truncf %185 : vector<8x32xf32> to vector<8x32xbf16>
    %cst_51 = arith.constant dense<0.000000e+00> : vector<8x128xf32>
    %211 = tpu.matmul %210, %7, %cst_51 {dimension_numbers = #tpu.dot_dimension_numbers<[1], [0], [0], [1], [0, 0, 1, 1], [], []>} : vector<8x32xbf16>, vector<32x128xbf16>, vector<8x128xf32> -> vector<8x128xf32>
    %212 = arith.addf %209, %211 : vector<8x128xf32>
    %213 = arith.negf %212 : vector<8x128xf32>
    %214 = math.exp %213 : vector<8x128xf32>
    %cst_52 = arith.constant 1.000000e+00 : f32
    %215 = vector.broadcast %cst_52 : f32 to vector<8x128xf32>
    %216 = arith.addf %215, %214 : vector<8x128xf32>
    %217 = arith.divf %215, %216 : vector<8x128xf32>
    %218 = math.tanh %212 : vector<8x128xf32>
    %219 = vector.extract_strided_slice %217 {offsets = [0, 32], sizes = [8, 32], strides = [1, 1]} : vector<8x128xf32> to vector<8x32xf32>
    %220 = arith.mulf %219, %182 : vector<8x32xf32>
    %221 = vector.extract_strided_slice %217 {offsets = [0, 0], sizes = [8, 32], strides = [1, 1]} : vector<8x128xf32> to vector<8x32xf32>
    %222 = vector.extract_strided_slice %218 {offsets = [0, 64], sizes = [8, 32], strides = [1, 1]} : vector<8x128xf32> to vector<8x32xf32>
    %223 = arith.mulf %221, %222 : vector<8x32xf32>
    %224 = arith.addf %220, %223 : vector<8x32xf32>
    %225 = vector.extract_strided_slice %217 {offsets = [0, 96], sizes = [8, 32], strides = [1, 1]} : vector<8x128xf32> to vector<8x32xf32>
    %226 = math.tanh %224 : vector<8x32xf32>
    %227 = arith.mulf %225, %226 : vector<8x32xf32>
    %228 = arith.truncf %208 : vector<8x32xf32> to vector<8x32xbf16>
    %cst_53 = arith.constant dense<0.000000e+00> : vector<8x32xf32>
    %229 = tpu.matmul %228, %9, %cst_53 {dimension_numbers = #tpu.dot_dimension_numbers<[1], [0], [0], [1], [0, 0, 1, 1], [], []>} : vector<8x32xbf16>, vector<32x32xbf16>, vector<8x32xf32> -> vector<8x32xf32>
    %230 = arith.truncf %227 : vector<8x32xf32> to vector<8x32xbf16>
    %cst_54 = arith.constant dense<0.000000e+00> : vector<8x32xf32>
    %231 = tpu.matmul %230, %10, %cst_54 {dimension_numbers = #tpu.dot_dimension_numbers<[1], [0], [0], [1], [0, 0, 1, 1], [], []>} : vector<8x32xbf16>, vector<32x32xbf16>, vector<8x32xf32> -> vector<8x32xf32>
    %232 = arith.addf %189, %229 : vector<8x32xf32>
    %233 = arith.addf %187, %231 : vector<8x32xf32>
    %234 = vector.extract_strided_slice %14 {offsets = [40, 0], sizes = [8, 128], strides = [1, 1]} : vector<64x128xf32> to vector<8x128xf32>
    %235 = arith.truncf %208 : vector<8x32xf32> to vector<8x32xbf16>
    %cst_55 = arith.constant dense<0.000000e+00> : vector<8x128xf32>
    %236 = tpu.matmul %235, %4, %cst_55 {dimension_numbers = #tpu.dot_dimension_numbers<[1], [0], [0], [1], [0, 0, 1, 1], [], []>} : vector<8x32xbf16>, vector<32x128xbf16>, vector<8x128xf32> -> vector<8x128xf32>
    %237 = arith.addf %234, %236 : vector<8x128xf32>
    %238 = arith.negf %237 : vector<8x128xf32>
    %239 = math.exp %238 : vector<8x128xf32>
    %cst_56 = arith.constant 1.000000e+00 : f32
    %240 = vector.broadcast %cst_56 : f32 to vector<8x128xf32>
    %241 = arith.addf %240, %239 : vector<8x128xf32>
    %242 = arith.divf %240, %241 : vector<8x128xf32>
    %243 = math.tanh %237 : vector<8x128xf32>
    %244 = vector.extract_strided_slice %242 {offsets = [0, 32], sizes = [8, 32], strides = [1, 1]} : vector<8x128xf32> to vector<8x32xf32>
    %245 = arith.mulf %244, %205 : vector<8x32xf32>
    %246 = vector.extract_strided_slice %242 {offsets = [0, 0], sizes = [8, 32], strides = [1, 1]} : vector<8x128xf32> to vector<8x32xf32>
    %247 = vector.extract_strided_slice %243 {offsets = [0, 64], sizes = [8, 32], strides = [1, 1]} : vector<8x128xf32> to vector<8x32xf32>
    %248 = arith.mulf %246, %247 : vector<8x32xf32>
    %249 = arith.addf %245, %248 : vector<8x32xf32>
    %250 = vector.extract_strided_slice %242 {offsets = [0, 96], sizes = [8, 32], strides = [1, 1]} : vector<8x128xf32> to vector<8x32xf32>
    %251 = math.tanh %249 : vector<8x32xf32>
    %252 = arith.mulf %250, %251 : vector<8x32xf32>
    %253 = vector.extract_strided_slice %17 {offsets = [16, 0], sizes = [8, 128], strides = [1, 1]} : vector<64x128xf32> to vector<8x128xf32>
    %254 = arith.truncf %227 : vector<8x32xf32> to vector<8x32xbf16>
    %cst_57 = arith.constant dense<0.000000e+00> : vector<8x128xf32>
    %255 = tpu.matmul %254, %7, %cst_57 {dimension_numbers = #tpu.dot_dimension_numbers<[1], [0], [0], [1], [0, 0, 1, 1], [], []>} : vector<8x32xbf16>, vector<32x128xbf16>, vector<8x128xf32> -> vector<8x128xf32>
    %256 = arith.addf %253, %255 : vector<8x128xf32>
    %257 = arith.negf %256 : vector<8x128xf32>
    %258 = math.exp %257 : vector<8x128xf32>
    %cst_58 = arith.constant 1.000000e+00 : f32
    %259 = vector.broadcast %cst_58 : f32 to vector<8x128xf32>
    %260 = arith.addf %259, %258 : vector<8x128xf32>
    %261 = arith.divf %259, %260 : vector<8x128xf32>
    %262 = math.tanh %256 : vector<8x128xf32>
    %263 = vector.extract_strided_slice %261 {offsets = [0, 32], sizes = [8, 32], strides = [1, 1]} : vector<8x128xf32> to vector<8x32xf32>
    %264 = arith.mulf %263, %224 : vector<8x32xf32>
    %265 = vector.extract_strided_slice %261 {offsets = [0, 0], sizes = [8, 32], strides = [1, 1]} : vector<8x128xf32> to vector<8x32xf32>
    %266 = vector.extract_strided_slice %262 {offsets = [0, 64], sizes = [8, 32], strides = [1, 1]} : vector<8x128xf32> to vector<8x32xf32>
    %267 = arith.mulf %265, %266 : vector<8x32xf32>
    %268 = arith.addf %264, %267 : vector<8x32xf32>
    %269 = vector.extract_strided_slice %261 {offsets = [0, 96], sizes = [8, 32], strides = [1, 1]} : vector<8x128xf32> to vector<8x32xf32>
    %270 = math.tanh %268 : vector<8x32xf32>
    %271 = arith.mulf %269, %270 : vector<8x32xf32>
    %272 = arith.truncf %252 : vector<8x32xf32> to vector<8x32xbf16>
    %cst_59 = arith.constant dense<0.000000e+00> : vector<8x32xf32>
    %273 = tpu.matmul %272, %9, %cst_59 {dimension_numbers = #tpu.dot_dimension_numbers<[1], [0], [0], [1], [0, 0, 1, 1], [], []>} : vector<8x32xbf16>, vector<32x32xbf16>, vector<8x32xf32> -> vector<8x32xf32>
    %274 = arith.truncf %271 : vector<8x32xf32> to vector<8x32xbf16>
    %cst_60 = arith.constant dense<0.000000e+00> : vector<8x32xf32>
    %275 = tpu.matmul %274, %10, %cst_60 {dimension_numbers = #tpu.dot_dimension_numbers<[1], [0], [0], [1], [0, 0, 1, 1], [], []>} : vector<8x32xbf16>, vector<32x32xbf16>, vector<8x32xf32> -> vector<8x32xf32>
    %276 = arith.addf %147, %273 : vector<8x32xf32>
    %277 = arith.addf %145, %275 : vector<8x32xf32>
    %278 = vector.extract_strided_slice %14 {offsets = [48, 0], sizes = [8, 128], strides = [1, 1]} : vector<64x128xf32> to vector<8x128xf32>
    %279 = arith.truncf %252 : vector<8x32xf32> to vector<8x32xbf16>
    %cst_61 = arith.constant dense<0.000000e+00> : vector<8x128xf32>
    %280 = tpu.matmul %279, %4, %cst_61 {dimension_numbers = #tpu.dot_dimension_numbers<[1], [0], [0], [1], [0, 0, 1, 1], [], []>} : vector<8x32xbf16>, vector<32x128xbf16>, vector<8x128xf32> -> vector<8x128xf32>
    %281 = arith.addf %278, %280 : vector<8x128xf32>
    %282 = arith.negf %281 : vector<8x128xf32>
    %283 = math.exp %282 : vector<8x128xf32>
    %cst_62 = arith.constant 1.000000e+00 : f32
    %284 = vector.broadcast %cst_62 : f32 to vector<8x128xf32>
    %285 = arith.addf %284, %283 : vector<8x128xf32>
    %286 = arith.divf %284, %285 : vector<8x128xf32>
    %287 = math.tanh %281 : vector<8x128xf32>
    %288 = vector.extract_strided_slice %286 {offsets = [0, 32], sizes = [8, 32], strides = [1, 1]} : vector<8x128xf32> to vector<8x32xf32>
    %289 = arith.mulf %288, %249 : vector<8x32xf32>
    %290 = vector.extract_strided_slice %286 {offsets = [0, 0], sizes = [8, 32], strides = [1, 1]} : vector<8x128xf32> to vector<8x32xf32>
    %291 = vector.extract_strided_slice %287 {offsets = [0, 64], sizes = [8, 32], strides = [1, 1]} : vector<8x128xf32> to vector<8x32xf32>
    %292 = arith.mulf %290, %291 : vector<8x32xf32>
    %293 = arith.addf %289, %292 : vector<8x32xf32>
    %294 = vector.extract_strided_slice %286 {offsets = [0, 96], sizes = [8, 32], strides = [1, 1]} : vector<8x128xf32> to vector<8x32xf32>
    %295 = math.tanh %293 : vector<8x32xf32>
    %296 = arith.mulf %294, %295 : vector<8x32xf32>
    %297 = vector.extract_strided_slice %17 {offsets = [8, 0], sizes = [8, 128], strides = [1, 1]} : vector<64x128xf32> to vector<8x128xf32>
    %298 = arith.truncf %271 : vector<8x32xf32> to vector<8x32xbf16>
    %cst_63 = arith.constant dense<0.000000e+00> : vector<8x128xf32>
    %299 = tpu.matmul %298, %7, %cst_63 {dimension_numbers = #tpu.dot_dimension_numbers<[1], [0], [0], [1], [0, 0, 1, 1], [], []>} : vector<8x32xbf16>, vector<32x128xbf16>, vector<8x128xf32> -> vector<8x128xf32>
    %300 = arith.addf %297, %299 : vector<8x128xf32>
    %301 = arith.negf %300 : vector<8x128xf32>
    %302 = math.exp %301 : vector<8x128xf32>
    %cst_64 = arith.constant 1.000000e+00 : f32
    %303 = vector.broadcast %cst_64 : f32 to vector<8x128xf32>
    %304 = arith.addf %303, %302 : vector<8x128xf32>
    %305 = arith.divf %303, %304 : vector<8x128xf32>
    %306 = math.tanh %300 : vector<8x128xf32>
    %307 = vector.extract_strided_slice %305 {offsets = [0, 32], sizes = [8, 32], strides = [1, 1]} : vector<8x128xf32> to vector<8x32xf32>
    %308 = arith.mulf %307, %268 : vector<8x32xf32>
    %309 = vector.extract_strided_slice %305 {offsets = [0, 0], sizes = [8, 32], strides = [1, 1]} : vector<8x128xf32> to vector<8x32xf32>
    %310 = vector.extract_strided_slice %306 {offsets = [0, 64], sizes = [8, 32], strides = [1, 1]} : vector<8x128xf32> to vector<8x32xf32>
    %311 = arith.mulf %309, %310 : vector<8x32xf32>
    %312 = arith.addf %308, %311 : vector<8x32xf32>
    %313 = vector.extract_strided_slice %305 {offsets = [0, 96], sizes = [8, 32], strides = [1, 1]} : vector<8x128xf32> to vector<8x32xf32>
    %314 = math.tanh %312 : vector<8x32xf32>
    %315 = arith.mulf %313, %314 : vector<8x32xf32>
    %316 = arith.truncf %296 : vector<8x32xf32> to vector<8x32xbf16>
    %cst_65 = arith.constant dense<0.000000e+00> : vector<8x32xf32>
    %317 = tpu.matmul %316, %9, %cst_65 {dimension_numbers = #tpu.dot_dimension_numbers<[1], [0], [0], [1], [0, 0, 1, 1], [], []>} : vector<8x32xbf16>, vector<32x32xbf16>, vector<8x32xf32> -> vector<8x32xf32>
    %318 = arith.truncf %315 : vector<8x32xf32> to vector<8x32xbf16>
    %cst_66 = arith.constant dense<0.000000e+00> : vector<8x32xf32>
    %319 = tpu.matmul %318, %10, %cst_66 {dimension_numbers = #tpu.dot_dimension_numbers<[1], [0], [0], [1], [0, 0, 1, 1], [], []>} : vector<8x32xbf16>, vector<32x32xbf16>, vector<8x32xf32> -> vector<8x32xf32>
    %320 = arith.addf %105, %317 : vector<8x32xf32>
    %321 = arith.addf %103, %319 : vector<8x32xf32>
    %322 = vector.extract_strided_slice %14 {offsets = [56, 0], sizes = [8, 128], strides = [1, 1]} : vector<64x128xf32> to vector<8x128xf32>
    %323 = arith.truncf %296 : vector<8x32xf32> to vector<8x32xbf16>
    %cst_67 = arith.constant dense<0.000000e+00> : vector<8x128xf32>
    %324 = tpu.matmul %323, %4, %cst_67 {dimension_numbers = #tpu.dot_dimension_numbers<[1], [0], [0], [1], [0, 0, 1, 1], [], []>} : vector<8x32xbf16>, vector<32x128xbf16>, vector<8x128xf32> -> vector<8x128xf32>
    %325 = arith.addf %322, %324 : vector<8x128xf32>
    %326 = arith.negf %325 : vector<8x128xf32>
    %327 = math.exp %326 : vector<8x128xf32>
    %cst_68 = arith.constant 1.000000e+00 : f32
    %328 = vector.broadcast %cst_68 : f32 to vector<8x128xf32>
    %329 = arith.addf %328, %327 : vector<8x128xf32>
    %330 = arith.divf %328, %329 : vector<8x128xf32>
    %331 = math.tanh %325 : vector<8x128xf32>
    %332 = vector.extract_strided_slice %330 {offsets = [0, 32], sizes = [8, 32], strides = [1, 1]} : vector<8x128xf32> to vector<8x32xf32>
    %333 = arith.mulf %332, %293 : vector<8x32xf32>
    %334 = vector.extract_strided_slice %330 {offsets = [0, 0], sizes = [8, 32], strides = [1, 1]} : vector<8x128xf32> to vector<8x32xf32>
    %335 = vector.extract_strided_slice %331 {offsets = [0, 64], sizes = [8, 32], strides = [1, 1]} : vector<8x128xf32> to vector<8x32xf32>
    %336 = arith.mulf %334, %335 : vector<8x32xf32>
    %337 = arith.addf %333, %336 : vector<8x32xf32>
    %338 = vector.extract_strided_slice %330 {offsets = [0, 96], sizes = [8, 32], strides = [1, 1]} : vector<8x128xf32> to vector<8x32xf32>
    %339 = math.tanh %337 : vector<8x32xf32>
    %340 = arith.mulf %338, %339 : vector<8x32xf32>
    %341 = vector.extract_strided_slice %17 {offsets = [0, 0], sizes = [8, 128], strides = [1, 1]} : vector<64x128xf32> to vector<8x128xf32>
    %342 = arith.truncf %315 : vector<8x32xf32> to vector<8x32xbf16>
    %cst_69 = arith.constant dense<0.000000e+00> : vector<8x128xf32>
    %343 = tpu.matmul %342, %7, %cst_69 {dimension_numbers = #tpu.dot_dimension_numbers<[1], [0], [0], [1], [0, 0, 1, 1], [], []>} : vector<8x32xbf16>, vector<32x128xbf16>, vector<8x128xf32> -> vector<8x128xf32>
    %344 = arith.addf %341, %343 : vector<8x128xf32>
    %345 = arith.negf %344 : vector<8x128xf32>
    %346 = math.exp %345 : vector<8x128xf32>
    %cst_70 = arith.constant 1.000000e+00 : f32
    %347 = vector.broadcast %cst_70 : f32 to vector<8x128xf32>
    %348 = arith.addf %347, %346 : vector<8x128xf32>
    %349 = arith.divf %347, %348 : vector<8x128xf32>
    %350 = math.tanh %344 : vector<8x128xf32>
    %351 = vector.extract_strided_slice %349 {offsets = [0, 32], sizes = [8, 32], strides = [1, 1]} : vector<8x128xf32> to vector<8x32xf32>
    %352 = arith.mulf %351, %312 : vector<8x32xf32>
    %353 = vector.extract_strided_slice %349 {offsets = [0, 0], sizes = [8, 32], strides = [1, 1]} : vector<8x128xf32> to vector<8x32xf32>
    %354 = vector.extract_strided_slice %350 {offsets = [0, 64], sizes = [8, 32], strides = [1, 1]} : vector<8x128xf32> to vector<8x32xf32>
    %355 = arith.mulf %353, %354 : vector<8x32xf32>
    %356 = arith.addf %352, %355 : vector<8x32xf32>
    %357 = vector.extract_strided_slice %349 {offsets = [0, 96], sizes = [8, 32], strides = [1, 1]} : vector<8x128xf32> to vector<8x32xf32>
    %358 = math.tanh %356 : vector<8x32xf32>
    %359 = arith.mulf %357, %358 : vector<8x32xf32>
    %360 = arith.truncf %340 : vector<8x32xf32> to vector<8x32xbf16>
    %cst_71 = arith.constant dense<0.000000e+00> : vector<8x32xf32>
    %361 = tpu.matmul %360, %9, %cst_71 {dimension_numbers = #tpu.dot_dimension_numbers<[1], [0], [0], [1], [0, 0, 1, 1], [], []>} : vector<8x32xbf16>, vector<32x32xbf16>, vector<8x32xf32> -> vector<8x32xf32>
    %362 = arith.truncf %359 : vector<8x32xf32> to vector<8x32xbf16>
    %cst_72 = arith.constant dense<0.000000e+00> : vector<8x32xf32>
    %363 = tpu.matmul %362, %10, %cst_72 {dimension_numbers = #tpu.dot_dimension_numbers<[1], [0], [0], [1], [0, 0, 1, 1], [], []>} : vector<8x32xbf16>, vector<32x32xbf16>, vector<8x32xf32> -> vector<8x32xf32>
    %364 = arith.addf %63, %361 : vector<8x32xf32>
    %365 = arith.addf %61, %363 : vector<8x32xf32>
    %366 = tpu.concatenate %365, %321, %277, %233, %232, %276, %320, %364 in 0 : vector<8x32xf32>, vector<8x32xf32>, vector<8x32xf32>, vector<8x32xf32>, vector<8x32xf32>, vector<8x32xf32>, vector<8x32xf32>, vector<8x32xf32> -> vector<64x32xf32>
    %367 = vector.broadcast %11 : vector<1x32xf32> to vector<64x32xf32>
    %368 = arith.addf %366, %367 : vector<64x32xf32>
    %369 = vector.shape_cast %368 : vector<64x32xf32> to vector<8x8x32xf32>
    %c0_73 = arith.constant 0 : index
    %c0_74 = arith.constant 0 : index
    %c0_75 = arith.constant 0 : index
    %370 = vector.load %arg20[%c0_73, %c0_74, %c0_75] : memref<8x8x32xf32, #tpu.memory_space<vmem>>, vector<8x8x32xf32>
    tpu.vector_store %arg20[%c0_73, %c0_74, %c0_75], %369 {strides = array<i32>} : memref<8x8x32xf32, #tpu.memory_space<vmem>>, vector<8x8x32xf32>,
    %371 = arith.truncf %368 : vector<64x32xf32> to vector<64x32xbf16>
    %c0_76 = arith.constant 0 : index
    %c0_77 = arith.constant 0 : index
    %372 = vector.load %arg11[%c0_76, %c0_77] : memref<32x128xbf16, #tpu.memory_space<vmem>>, vector<32x128xbf16>
    %c0_78 = arith.constant 0 : index
    %c0_79 = arith.constant 0 : index
    %373 = vector.load %arg12[%c0_78, %c0_79] : memref<32x128xbf16, #tpu.memory_space<vmem>>, vector<32x128xbf16>
    %c0_80 = arith.constant 0 : index
    %c0_81 = arith.constant 0 : index
    %374 = vector.load %arg13[%c0_80, %c0_81] : memref<1x128xf32, #tpu.memory_space<vmem>>, vector<1x128xf32>
    %c0_82 = arith.constant 0 : index
    %c0_83 = arith.constant 0 : index
    %375 = vector.load %arg14[%c0_82, %c0_83] : memref<32x128xbf16, #tpu.memory_space<vmem>>, vector<32x128xbf16>
    %c0_84 = arith.constant 0 : index
    %c0_85 = arith.constant 0 : index
    %376 = vector.load %arg15[%c0_84, %c0_85] : memref<32x128xbf16, #tpu.memory_space<vmem>>, vector<32x128xbf16>
    %c0_86 = arith.constant 0 : index
    %c0_87 = arith.constant 0 : index
    %377 = vector.load %arg16[%c0_86, %c0_87] : memref<1x128xf32, #tpu.memory_space<vmem>>, vector<1x128xf32>
    %c0_88 = arith.constant 0 : index
    %c0_89 = arith.constant 0 : index
    %378 = vector.load %arg17[%c0_88, %c0_89] : memref<32x16xbf16, #tpu.memory_space<vmem>>, vector<32x16xbf16>
    %c0_90 = arith.constant 0 : index
    %c0_91 = arith.constant 0 : index
    %379 = vector.load %arg18[%c0_90, %c0_91] : memref<32x16xbf16, #tpu.memory_space<vmem>>, vector<32x16xbf16>
    %c0_92 = arith.constant 0 : index
    %c0_93 = arith.constant 0 : index
    %380 = vector.load %arg19[%c0_92, %c0_93] : memref<1x16xf32, #tpu.memory_space<vmem>>, vector<1x16xf32>
    %cst_94 = arith.constant dense<0.000000e+00> : vector<64x128xf32>
    %381 = tpu.matmul %371, %372, %cst_94 {dimension_numbers = #tpu.dot_dimension_numbers<[1], [0], [0], [1], [0, 0, 1, 1], [], []>} : vector<64x32xbf16>, vector<32x128xbf16>, vector<64x128xf32> -> vector<64x128xf32>
    %382 = vector.broadcast %374 : vector<1x128xf32> to vector<64x128xf32>
    %383 = arith.addf %381, %382 : vector<64x128xf32>
    %cst_95 = arith.constant dense<0.000000e+00> : vector<64x128xf32>
    %384 = tpu.matmul %371, %375, %cst_95 {dimension_numbers = #tpu.dot_dimension_numbers<[1], [0], [0], [1], [0, 0, 1, 1], [], []>} : vector<64x32xbf16>, vector<32x128xbf16>, vector<64x128xf32> -> vector<64x128xf32>
    %385 = vector.broadcast %377 : vector<1x128xf32> to vector<64x128xf32>
    %386 = arith.addf %384, %385 : vector<64x128xf32>
    %cst_96 = arith.constant 0.000000e+00 : f32
    %387 = vector.broadcast %cst_96 : f32 to vector<8x32xf32>
    %cst_97 = arith.constant 0.000000e+00 : f32
    %388 = vector.broadcast %cst_97 : f32 to vector<8x32xf32>
    %cst_98 = arith.constant 0.000000e+00 : f32
    %389 = vector.broadcast %cst_98 : f32 to vector<8x32xf32>
    %cst_99 = arith.constant 0.000000e+00 : f32
    %390 = vector.broadcast %cst_99 : f32 to vector<8x32xf32>
    %391 = vector.extract_strided_slice %383 {offsets = [0, 0], sizes = [8, 128], strides = [1, 1]} : vector<64x128xf32> to vector<8x128xf32>
    %392 = arith.truncf %387 : vector<8x32xf32> to vector<8x32xbf16>
    %cst_100 = arith.constant dense<0.000000e+00> : vector<8x128xf32>
    %393 = tpu.matmul %392, %373, %cst_100 {dimension_numbers = #tpu.dot_dimension_numbers<[1], [0], [0], [1], [0, 0, 1, 1], [], []>} : vector<8x32xbf16>, vector<32x128xbf16>, vector<8x128xf32> -> vector<8x128xf32>
    %394 = arith.addf %391, %393 : vector<8x128xf32>
    %395 = arith.negf %394 : vector<8x128xf32>
    %396 = math.exp %395 : vector<8x128xf32>
    %cst_101 = arith.constant 1.000000e+00 : f32
    %397 = vector.broadcast %cst_101 : f32 to vector<8x128xf32>
    %398 = arith.addf %397, %396 : vector<8x128xf32>
    %399 = arith.divf %397, %398 : vector<8x128xf32>
    %400 = math.tanh %394 : vector<8x128xf32>
    %401 = vector.extract_strided_slice %399 {offsets = [0, 32], sizes = [8, 32], strides = [1, 1]} : vector<8x128xf32> to vector<8x32xf32>
    %402 = arith.mulf %401, %388 : vector<8x32xf32>
    %403 = vector.extract_strided_slice %399 {offsets = [0, 0], sizes = [8, 32], strides = [1, 1]} : vector<8x128xf32> to vector<8x32xf32>
    %404 = vector.extract_strided_slice %400 {offsets = [0, 64], sizes = [8, 32], strides = [1, 1]} : vector<8x128xf32> to vector<8x32xf32>
    %405 = arith.mulf %403, %404 : vector<8x32xf32>
    %406 = arith.addf %402, %405 : vector<8x32xf32>
    %407 = vector.extract_strided_slice %399 {offsets = [0, 96], sizes = [8, 32], strides = [1, 1]} : vector<8x128xf32> to vector<8x32xf32>
    %408 = math.tanh %406 : vector<8x32xf32>
    %409 = arith.mulf %407, %408 : vector<8x32xf32>
    %410 = vector.extract_strided_slice %386 {offsets = [56, 0], sizes = [8, 128], strides = [1, 1]} : vector<64x128xf32> to vector<8x128xf32>
    %411 = arith.truncf %389 : vector<8x32xf32> to vector<8x32xbf16>
    %cst_102 = arith.constant dense<0.000000e+00> : vector<8x128xf32>
    %412 = tpu.matmul %411, %376, %cst_102 {dimension_numbers = #tpu.dot_dimension_numbers<[1], [0], [0], [1], [0, 0, 1, 1], [], []>} : vector<8x32xbf16>, vector<32x128xbf16>, vector<8x128xf32> -> vector<8x128xf32>
    %413 = arith.addf %410, %412 : vector<8x128xf32>
    %414 = arith.negf %413 : vector<8x128xf32>
    %415 = math.exp %414 : vector<8x128xf32>
    %cst_103 = arith.constant 1.000000e+00 : f32
    %416 = vector.broadcast %cst_103 : f32 to vector<8x128xf32>
    %417 = arith.addf %416, %415 : vector<8x128xf32>
    %418 = arith.divf %416, %417 : vector<8x128xf32>
    %419 = math.tanh %413 : vector<8x128xf32>
    %420 = vector.extract_strided_slice %418 {offsets = [0, 32], sizes = [8, 32], strides = [1, 1]} : vector<8x128xf32> to vector<8x32xf32>
    %421 = arith.mulf %420, %390 : vector<8x32xf32>
    %422 = vector.extract_strided_slice %418 {offsets = [0, 0], sizes = [8, 32], strides = [1, 1]} : vector<8x128xf32> to vector<8x32xf32>
    %423 = vector.extract_strided_slice %419 {offsets = [0, 64], sizes = [8, 32], strides = [1, 1]} : vector<8x128xf32> to vector<8x32xf32>
    %424 = arith.mulf %422, %423 : vector<8x32xf32>
    %425 = arith.addf %421, %424 : vector<8x32xf32>
    %426 = vector.extract_strided_slice %418 {offsets = [0, 96], sizes = [8, 32], strides = [1, 1]} : vector<8x128xf32> to vector<8x32xf32>
    %427 = math.tanh %425 : vector<8x32xf32>
    %428 = arith.mulf %426, %427 : vector<8x32xf32>
    %429 = arith.truncf %409 : vector<8x32xf32> to vector<8x32xbf16>
    %cst_104 = arith.constant dense<0.000000e+00> : vector<8x16xf32>
    %430 = tpu.matmul %429, %378, %cst_104 {dimension_numbers = #tpu.dot_dimension_numbers<[1], [0], [0], [1], [0, 0, 1, 1], [], []>} : vector<8x32xbf16>, vector<32x16xbf16>, vector<8x16xf32> -> vector<8x16xf32>
    %431 = arith.truncf %428 : vector<8x32xf32> to vector<8x32xbf16>
    %cst_105 = arith.constant dense<0.000000e+00> : vector<8x16xf32>
    %432 = tpu.matmul %431, %379, %cst_105 {dimension_numbers = #tpu.dot_dimension_numbers<[1], [0], [0], [1], [0, 0, 1, 1], [], []>} : vector<8x32xbf16>, vector<32x16xbf16>, vector<8x16xf32> -> vector<8x16xf32>
    %433 = vector.extract_strided_slice %383 {offsets = [8, 0], sizes = [8, 128], strides = [1, 1]} : vector<64x128xf32> to vector<8x128xf32>
    %434 = arith.truncf %409 : vector<8x32xf32> to vector<8x32xbf16>
    %cst_106 = arith.constant dense<0.000000e+00> : vector<8x128xf32>
    %435 = tpu.matmul %434, %373, %cst_106 {dimension_numbers = #tpu.dot_dimension_numbers<[1], [0], [0], [1], [0, 0, 1, 1], [], []>} : vector<8x32xbf16>, vector<32x128xbf16>, vector<8x128xf32> -> vector<8x128xf32>
    %436 = arith.addf %433, %435 : vector<8x128xf32>
    %437 = arith.negf %436 : vector<8x128xf32>
    %438 = math.exp %437 : vector<8x128xf32>
    %cst_107 = arith.constant 1.000000e+00 : f32
    %439 = vector.broadcast %cst_107 : f32 to vector<8x128xf32>
    %440 = arith.addf %439, %438 : vector<8x128xf32>
    %441 = arith.divf %439, %440 : vector<8x128xf32>
    %442 = math.tanh %436 : vector<8x128xf32>
    %443 = vector.extract_strided_slice %441 {offsets = [0, 32], sizes = [8, 32], strides = [1, 1]} : vector<8x128xf32> to vector<8x32xf32>
    %444 = arith.mulf %443, %406 : vector<8x32xf32>
    %445 = vector.extract_strided_slice %441 {offsets = [0, 0], sizes = [8, 32], strides = [1, 1]} : vector<8x128xf32> to vector<8x32xf32>
    %446 = vector.extract_strided_slice %442 {offsets = [0, 64], sizes = [8, 32], strides = [1, 1]} : vector<8x128xf32> to vector<8x32xf32>
    %447 = arith.mulf %445, %446 : vector<8x32xf32>
    %448 = arith.addf %444, %447 : vector<8x32xf32>
    %449 = vector.extract_strided_slice %441 {offsets = [0, 96], sizes = [8, 32], strides = [1, 1]} : vector<8x128xf32> to vector<8x32xf32>
    %450 = math.tanh %448 : vector<8x32xf32>
    %451 = arith.mulf %449, %450 : vector<8x32xf32>
    %452 = vector.extract_strided_slice %386 {offsets = [48, 0], sizes = [8, 128], strides = [1, 1]} : vector<64x128xf32> to vector<8x128xf32>
    %453 = arith.truncf %428 : vector<8x32xf32> to vector<8x32xbf16>
    %cst_108 = arith.constant dense<0.000000e+00> : vector<8x128xf32>
    %454 = tpu.matmul %453, %376, %cst_108 {dimension_numbers = #tpu.dot_dimension_numbers<[1], [0], [0], [1], [0, 0, 1, 1], [], []>} : vector<8x32xbf16>, vector<32x128xbf16>, vector<8x128xf32> -> vector<8x128xf32>
    %455 = arith.addf %452, %454 : vector<8x128xf32>
    %456 = arith.negf %455 : vector<8x128xf32>
    %457 = math.exp %456 : vector<8x128xf32>
    %cst_109 = arith.constant 1.000000e+00 : f32
    %458 = vector.broadcast %cst_109 : f32 to vector<8x128xf32>
    %459 = arith.addf %458, %457 : vector<8x128xf32>
    %460 = arith.divf %458, %459 : vector<8x128xf32>
    %461 = math.tanh %455 : vector<8x128xf32>
    %462 = vector.extract_strided_slice %460 {offsets = [0, 32], sizes = [8, 32], strides = [1, 1]} : vector<8x128xf32> to vector<8x32xf32>
    %463 = arith.mulf %462, %425 : vector<8x32xf32>
    %464 = vector.extract_strided_slice %460 {offsets = [0, 0], sizes = [8, 32], strides = [1, 1]} : vector<8x128xf32> to vector<8x32xf32>
    %465 = vector.extract_strided_slice %461 {offsets = [0, 64], sizes = [8, 32], strides = [1, 1]} : vector<8x128xf32> to vector<8x32xf32>
    %466 = arith.mulf %464, %465 : vector<8x32xf32>
    %467 = arith.addf %463, %466 : vector<8x32xf32>
    %468 = vector.extract_strided_slice %460 {offsets = [0, 96], sizes = [8, 32], strides = [1, 1]} : vector<8x128xf32> to vector<8x32xf32>
    %469 = math.tanh %467 : vector<8x32xf32>
    %470 = arith.mulf %468, %469 : vector<8x32xf32>
    %471 = arith.truncf %451 : vector<8x32xf32> to vector<8x32xbf16>
    %cst_110 = arith.constant dense<0.000000e+00> : vector<8x16xf32>
    %472 = tpu.matmul %471, %378, %cst_110 {dimension_numbers = #tpu.dot_dimension_numbers<[1], [0], [0], [1], [0, 0, 1, 1], [], []>} : vector<8x32xbf16>, vector<32x16xbf16>, vector<8x16xf32> -> vector<8x16xf32>
    %473 = arith.truncf %470 : vector<8x32xf32> to vector<8x32xbf16>
    %cst_111 = arith.constant dense<0.000000e+00> : vector<8x16xf32>
    %474 = tpu.matmul %473, %379, %cst_111 {dimension_numbers = #tpu.dot_dimension_numbers<[1], [0], [0], [1], [0, 0, 1, 1], [], []>} : vector<8x32xbf16>, vector<32x16xbf16>, vector<8x16xf32> -> vector<8x16xf32>
    %475 = vector.extract_strided_slice %383 {offsets = [16, 0], sizes = [8, 128], strides = [1, 1]} : vector<64x128xf32> to vector<8x128xf32>
    %476 = arith.truncf %451 : vector<8x32xf32> to vector<8x32xbf16>
    %cst_112 = arith.constant dense<0.000000e+00> : vector<8x128xf32>
    %477 = tpu.matmul %476, %373, %cst_112 {dimension_numbers = #tpu.dot_dimension_numbers<[1], [0], [0], [1], [0, 0, 1, 1], [], []>} : vector<8x32xbf16>, vector<32x128xbf16>, vector<8x128xf32> -> vector<8x128xf32>
    %478 = arith.addf %475, %477 : vector<8x128xf32>
    %479 = arith.negf %478 : vector<8x128xf32>
    %480 = math.exp %479 : vector<8x128xf32>
    %cst_113 = arith.constant 1.000000e+00 : f32
    %481 = vector.broadcast %cst_113 : f32 to vector<8x128xf32>
    %482 = arith.addf %481, %480 : vector<8x128xf32>
    %483 = arith.divf %481, %482 : vector<8x128xf32>
    %484 = math.tanh %478 : vector<8x128xf32>
    %485 = vector.extract_strided_slice %483 {offsets = [0, 32], sizes = [8, 32], strides = [1, 1]} : vector<8x128xf32> to vector<8x32xf32>
    %486 = arith.mulf %485, %448 : vector<8x32xf32>
    %487 = vector.extract_strided_slice %483 {offsets = [0, 0], sizes = [8, 32], strides = [1, 1]} : vector<8x128xf32> to vector<8x32xf32>
    %488 = vector.extract_strided_slice %484 {offsets = [0, 64], sizes = [8, 32], strides = [1, 1]} : vector<8x128xf32> to vector<8x32xf32>
    %489 = arith.mulf %487, %488 : vector<8x32xf32>
    %490 = arith.addf %486, %489 : vector<8x32xf32>
    %491 = vector.extract_strided_slice %483 {offsets = [0, 96], sizes = [8, 32], strides = [1, 1]} : vector<8x128xf32> to vector<8x32xf32>
    %492 = math.tanh %490 : vector<8x32xf32>
    %493 = arith.mulf %491, %492 : vector<8x32xf32>
    %494 = vector.extract_strided_slice %386 {offsets = [40, 0], sizes = [8, 128], strides = [1, 1]} : vector<64x128xf32> to vector<8x128xf32>
    %495 = arith.truncf %470 : vector<8x32xf32> to vector<8x32xbf16>
    %cst_114 = arith.constant dense<0.000000e+00> : vector<8x128xf32>
    %496 = tpu.matmul %495, %376, %cst_114 {dimension_numbers = #tpu.dot_dimension_numbers<[1], [0], [0], [1], [0, 0, 1, 1], [], []>} : vector<8x32xbf16>, vector<32x128xbf16>, vector<8x128xf32> -> vector<8x128xf32>
    %497 = arith.addf %494, %496 : vector<8x128xf32>
    %498 = arith.negf %497 : vector<8x128xf32>
    %499 = math.exp %498 : vector<8x128xf32>
    %cst_115 = arith.constant 1.000000e+00 : f32
    %500 = vector.broadcast %cst_115 : f32 to vector<8x128xf32>
    %501 = arith.addf %500, %499 : vector<8x128xf32>
    %502 = arith.divf %500, %501 : vector<8x128xf32>
    %503 = math.tanh %497 : vector<8x128xf32>
    %504 = vector.extract_strided_slice %502 {offsets = [0, 32], sizes = [8, 32], strides = [1, 1]} : vector<8x128xf32> to vector<8x32xf32>
    %505 = arith.mulf %504, %467 : vector<8x32xf32>
    %506 = vector.extract_strided_slice %502 {offsets = [0, 0], sizes = [8, 32], strides = [1, 1]} : vector<8x128xf32> to vector<8x32xf32>
    %507 = vector.extract_strided_slice %503 {offsets = [0, 64], sizes = [8, 32], strides = [1, 1]} : vector<8x128xf32> to vector<8x32xf32>
    %508 = arith.mulf %506, %507 : vector<8x32xf32>
    %509 = arith.addf %505, %508 : vector<8x32xf32>
    %510 = vector.extract_strided_slice %502 {offsets = [0, 96], sizes = [8, 32], strides = [1, 1]} : vector<8x128xf32> to vector<8x32xf32>
    %511 = math.tanh %509 : vector<8x32xf32>
    %512 = arith.mulf %510, %511 : vector<8x32xf32>
    %513 = arith.truncf %493 : vector<8x32xf32> to vector<8x32xbf16>
    %cst_116 = arith.constant dense<0.000000e+00> : vector<8x16xf32>
    %514 = tpu.matmul %513, %378, %cst_116 {dimension_numbers = #tpu.dot_dimension_numbers<[1], [0], [0], [1], [0, 0, 1, 1], [], []>} : vector<8x32xbf16>, vector<32x16xbf16>, vector<8x16xf32> -> vector<8x16xf32>
    %515 = arith.truncf %512 : vector<8x32xf32> to vector<8x32xbf16>
    %cst_117 = arith.constant dense<0.000000e+00> : vector<8x16xf32>
    %516 = tpu.matmul %515, %379, %cst_117 {dimension_numbers = #tpu.dot_dimension_numbers<[1], [0], [0], [1], [0, 0, 1, 1], [], []>} : vector<8x32xbf16>, vector<32x16xbf16>, vector<8x16xf32> -> vector<8x16xf32>
    %517 = vector.extract_strided_slice %383 {offsets = [24, 0], sizes = [8, 128], strides = [1, 1]} : vector<64x128xf32> to vector<8x128xf32>
    %518 = arith.truncf %493 : vector<8x32xf32> to vector<8x32xbf16>
    %cst_118 = arith.constant dense<0.000000e+00> : vector<8x128xf32>
    %519 = tpu.matmul %518, %373, %cst_118 {dimension_numbers = #tpu.dot_dimension_numbers<[1], [0], [0], [1], [0, 0, 1, 1], [], []>} : vector<8x32xbf16>, vector<32x128xbf16>, vector<8x128xf32> -> vector<8x128xf32>
    %520 = arith.addf %517, %519 : vector<8x128xf32>
    %521 = arith.negf %520 : vector<8x128xf32>
    %522 = math.exp %521 : vector<8x128xf32>
    %cst_119 = arith.constant 1.000000e+00 : f32
    %523 = vector.broadcast %cst_119 : f32 to vector<8x128xf32>
    %524 = arith.addf %523, %522 : vector<8x128xf32>
    %525 = arith.divf %523, %524 : vector<8x128xf32>
    %526 = math.tanh %520 : vector<8x128xf32>
    %527 = vector.extract_strided_slice %525 {offsets = [0, 32], sizes = [8, 32], strides = [1, 1]} : vector<8x128xf32> to vector<8x32xf32>
    %528 = arith.mulf %527, %490 : vector<8x32xf32>
    %529 = vector.extract_strided_slice %525 {offsets = [0, 0], sizes = [8, 32], strides = [1, 1]} : vector<8x128xf32> to vector<8x32xf32>
    %530 = vector.extract_strided_slice %526 {offsets = [0, 64], sizes = [8, 32], strides = [1, 1]} : vector<8x128xf32> to vector<8x32xf32>
    %531 = arith.mulf %529, %530 : vector<8x32xf32>
    %532 = arith.addf %528, %531 : vector<8x32xf32>
    %533 = vector.extract_strided_slice %525 {offsets = [0, 96], sizes = [8, 32], strides = [1, 1]} : vector<8x128xf32> to vector<8x32xf32>
    %534 = math.tanh %532 : vector<8x32xf32>
    %535 = arith.mulf %533, %534 : vector<8x32xf32>
    %536 = vector.extract_strided_slice %386 {offsets = [32, 0], sizes = [8, 128], strides = [1, 1]} : vector<64x128xf32> to vector<8x128xf32>
    %537 = arith.truncf %512 : vector<8x32xf32> to vector<8x32xbf16>
    %cst_120 = arith.constant dense<0.000000e+00> : vector<8x128xf32>
    %538 = tpu.matmul %537, %376, %cst_120 {dimension_numbers = #tpu.dot_dimension_numbers<[1], [0], [0], [1], [0, 0, 1, 1], [], []>} : vector<8x32xbf16>, vector<32x128xbf16>, vector<8x128xf32> -> vector<8x128xf32>
    %539 = arith.addf %536, %538 : vector<8x128xf32>
    %540 = arith.negf %539 : vector<8x128xf32>
    %541 = math.exp %540 : vector<8x128xf32>
    %cst_121 = arith.constant 1.000000e+00 : f32
    %542 = vector.broadcast %cst_121 : f32 to vector<8x128xf32>
    %543 = arith.addf %542, %541 : vector<8x128xf32>
    %544 = arith.divf %542, %543 : vector<8x128xf32>
    %545 = math.tanh %539 : vector<8x128xf32>
    %546 = vector.extract_strided_slice %544 {offsets = [0, 32], sizes = [8, 32], strides = [1, 1]} : vector<8x128xf32> to vector<8x32xf32>
    %547 = arith.mulf %546, %509 : vector<8x32xf32>
    %548 = vector.extract_strided_slice %544 {offsets = [0, 0], sizes = [8, 32], strides = [1, 1]} : vector<8x128xf32> to vector<8x32xf32>
    %549 = vector.extract_strided_slice %545 {offsets = [0, 64], sizes = [8, 32], strides = [1, 1]} : vector<8x128xf32> to vector<8x32xf32>
    %550 = arith.mulf %548, %549 : vector<8x32xf32>
    %551 = arith.addf %547, %550 : vector<8x32xf32>
    %552 = vector.extract_strided_slice %544 {offsets = [0, 96], sizes = [8, 32], strides = [1, 1]} : vector<8x128xf32> to vector<8x32xf32>
    %553 = math.tanh %551 : vector<8x32xf32>
    %554 = arith.mulf %552, %553 : vector<8x32xf32>
    %555 = arith.truncf %535 : vector<8x32xf32> to vector<8x32xbf16>
    %cst_122 = arith.constant dense<0.000000e+00> : vector<8x16xf32>
    %556 = tpu.matmul %555, %378, %cst_122 {dimension_numbers = #tpu.dot_dimension_numbers<[1], [0], [0], [1], [0, 0, 1, 1], [], []>} : vector<8x32xbf16>, vector<32x16xbf16>, vector<8x16xf32> -> vector<8x16xf32>
    %557 = arith.truncf %554 : vector<8x32xf32> to vector<8x32xbf16>
    %cst_123 = arith.constant dense<0.000000e+00> : vector<8x16xf32>
    %558 = tpu.matmul %557, %379, %cst_123 {dimension_numbers = #tpu.dot_dimension_numbers<[1], [0], [0], [1], [0, 0, 1, 1], [], []>} : vector<8x32xbf16>, vector<32x16xbf16>, vector<8x16xf32> -> vector<8x16xf32>
    %559 = vector.extract_strided_slice %383 {offsets = [32, 0], sizes = [8, 128], strides = [1, 1]} : vector<64x128xf32> to vector<8x128xf32>
    %560 = arith.truncf %535 : vector<8x32xf32> to vector<8x32xbf16>
    %cst_124 = arith.constant dense<0.000000e+00> : vector<8x128xf32>
    %561 = tpu.matmul %560, %373, %cst_124 {dimension_numbers = #tpu.dot_dimension_numbers<[1], [0], [0], [1], [0, 0, 1, 1], [], []>} : vector<8x32xbf16>, vector<32x128xbf16>, vector<8x128xf32> -> vector<8x128xf32>
    %562 = arith.addf %559, %561 : vector<8x128xf32>
    %563 = arith.negf %562 : vector<8x128xf32>
    %564 = math.exp %563 : vector<8x128xf32>
    %cst_125 = arith.constant 1.000000e+00 : f32
    %565 = vector.broadcast %cst_125 : f32 to vector<8x128xf32>
    %566 = arith.addf %565, %564 : vector<8x128xf32>
    %567 = arith.divf %565, %566 : vector<8x128xf32>
    %568 = math.tanh %562 : vector<8x128xf32>
    %569 = vector.extract_strided_slice %567 {offsets = [0, 32], sizes = [8, 32], strides = [1, 1]} : vector<8x128xf32> to vector<8x32xf32>
    %570 = arith.mulf %569, %532 : vector<8x32xf32>
    %571 = vector.extract_strided_slice %567 {offsets = [0, 0], sizes = [8, 32], strides = [1, 1]} : vector<8x128xf32> to vector<8x32xf32>
    %572 = vector.extract_strided_slice %568 {offsets = [0, 64], sizes = [8, 32], strides = [1, 1]} : vector<8x128xf32> to vector<8x32xf32>
    %573 = arith.mulf %571, %572 : vector<8x32xf32>
    %574 = arith.addf %570, %573 : vector<8x32xf32>
    %575 = vector.extract_strided_slice %567 {offsets = [0, 96], sizes = [8, 32], strides = [1, 1]} : vector<8x128xf32> to vector<8x32xf32>
    %576 = math.tanh %574 : vector<8x32xf32>
    %577 = arith.mulf %575, %576 : vector<8x32xf32>
    %578 = vector.extract_strided_slice %386 {offsets = [24, 0], sizes = [8, 128], strides = [1, 1]} : vector<64x128xf32> to vector<8x128xf32>
    %579 = arith.truncf %554 : vector<8x32xf32> to vector<8x32xbf16>
    %cst_126 = arith.constant dense<0.000000e+00> : vector<8x128xf32>
    %580 = tpu.matmul %579, %376, %cst_126 {dimension_numbers = #tpu.dot_dimension_numbers<[1], [0], [0], [1], [0, 0, 1, 1], [], []>} : vector<8x32xbf16>, vector<32x128xbf16>, vector<8x128xf32> -> vector<8x128xf32>
    %581 = arith.addf %578, %580 : vector<8x128xf32>
    %582 = arith.negf %581 : vector<8x128xf32>
    %583 = math.exp %582 : vector<8x128xf32>
    %cst_127 = arith.constant 1.000000e+00 : f32
    %584 = vector.broadcast %cst_127 : f32 to vector<8x128xf32>
    %585 = arith.addf %584, %583 : vector<8x128xf32>
    %586 = arith.divf %584, %585 : vector<8x128xf32>
    %587 = math.tanh %581 : vector<8x128xf32>
    %588 = vector.extract_strided_slice %586 {offsets = [0, 32], sizes = [8, 32], strides = [1, 1]} : vector<8x128xf32> to vector<8x32xf32>
    %589 = arith.mulf %588, %551 : vector<8x32xf32>
    %590 = vector.extract_strided_slice %586 {offsets = [0, 0], sizes = [8, 32], strides = [1, 1]} : vector<8x128xf32> to vector<8x32xf32>
    %591 = vector.extract_strided_slice %587 {offsets = [0, 64], sizes = [8, 32], strides = [1, 1]} : vector<8x128xf32> to vector<8x32xf32>
    %592 = arith.mulf %590, %591 : vector<8x32xf32>
    %593 = arith.addf %589, %592 : vector<8x32xf32>
    %594 = vector.extract_strided_slice %586 {offsets = [0, 96], sizes = [8, 32], strides = [1, 1]} : vector<8x128xf32> to vector<8x32xf32>
    %595 = math.tanh %593 : vector<8x32xf32>
    %596 = arith.mulf %594, %595 : vector<8x32xf32>
    %597 = arith.truncf %577 : vector<8x32xf32> to vector<8x32xbf16>
    %cst_128 = arith.constant dense<0.000000e+00> : vector<8x16xf32>
    %598 = tpu.matmul %597, %378, %cst_128 {dimension_numbers = #tpu.dot_dimension_numbers<[1], [0], [0], [1], [0, 0, 1, 1], [], []>} : vector<8x32xbf16>, vector<32x16xbf16>, vector<8x16xf32> -> vector<8x16xf32>
    %599 = arith.truncf %596 : vector<8x32xf32> to vector<8x32xbf16>
    %cst_129 = arith.constant dense<0.000000e+00> : vector<8x16xf32>
    %600 = tpu.matmul %599, %379, %cst_129 {dimension_numbers = #tpu.dot_dimension_numbers<[1], [0], [0], [1], [0, 0, 1, 1], [], []>} : vector<8x32xbf16>, vector<32x16xbf16>, vector<8x16xf32> -> vector<8x16xf32>
    %601 = arith.addf %558, %598 : vector<8x16xf32>
    %602 = arith.addf %556, %600 : vector<8x16xf32>
    %603 = vector.extract_strided_slice %383 {offsets = [40, 0], sizes = [8, 128], strides = [1, 1]} : vector<64x128xf32> to vector<8x128xf32>
    %604 = arith.truncf %577 : vector<8x32xf32> to vector<8x32xbf16>
    %cst_130 = arith.constant dense<0.000000e+00> : vector<8x128xf32>
    %605 = tpu.matmul %604, %373, %cst_130 {dimension_numbers = #tpu.dot_dimension_numbers<[1], [0], [0], [1], [0, 0, 1, 1], [], []>} : vector<8x32xbf16>, vector<32x128xbf16>, vector<8x128xf32> -> vector<8x128xf32>
    %606 = arith.addf %603, %605 : vector<8x128xf32>
    %607 = arith.negf %606 : vector<8x128xf32>
    %608 = math.exp %607 : vector<8x128xf32>
    %cst_131 = arith.constant 1.000000e+00 : f32
    %609 = vector.broadcast %cst_131 : f32 to vector<8x128xf32>
    %610 = arith.addf %609, %608 : vector<8x128xf32>
    %611 = arith.divf %609, %610 : vector<8x128xf32>
    %612 = math.tanh %606 : vector<8x128xf32>
    %613 = vector.extract_strided_slice %611 {offsets = [0, 32], sizes = [8, 32], strides = [1, 1]} : vector<8x128xf32> to vector<8x32xf32>
    %614 = arith.mulf %613, %574 : vector<8x32xf32>
    %615 = vector.extract_strided_slice %611 {offsets = [0, 0], sizes = [8, 32], strides = [1, 1]} : vector<8x128xf32> to vector<8x32xf32>
    %616 = vector.extract_strided_slice %612 {offsets = [0, 64], sizes = [8, 32], strides = [1, 1]} : vector<8x128xf32> to vector<8x32xf32>
    %617 = arith.mulf %615, %616 : vector<8x32xf32>
    %618 = arith.addf %614, %617 : vector<8x32xf32>
    %619 = vector.extract_strided_slice %611 {offsets = [0, 96], sizes = [8, 32], strides = [1, 1]} : vector<8x128xf32> to vector<8x32xf32>
    %620 = math.tanh %618 : vector<8x32xf32>
    %621 = arith.mulf %619, %620 : vector<8x32xf32>
    %622 = vector.extract_strided_slice %386 {offsets = [16, 0], sizes = [8, 128], strides = [1, 1]} : vector<64x128xf32> to vector<8x128xf32>
    %623 = arith.truncf %596 : vector<8x32xf32> to vector<8x32xbf16>
    %cst_132 = arith.constant dense<0.000000e+00> : vector<8x128xf32>
    %624 = tpu.matmul %623, %376, %cst_132 {dimension_numbers = #tpu.dot_dimension_numbers<[1], [0], [0], [1], [0, 0, 1, 1], [], []>} : vector<8x32xbf16>, vector<32x128xbf16>, vector<8x128xf32> -> vector<8x128xf32>
    %625 = arith.addf %622, %624 : vector<8x128xf32>
    %626 = arith.negf %625 : vector<8x128xf32>
    %627 = math.exp %626 : vector<8x128xf32>
    %cst_133 = arith.constant 1.000000e+00 : f32
    %628 = vector.broadcast %cst_133 : f32 to vector<8x128xf32>
    %629 = arith.addf %628, %627 : vector<8x128xf32>
    %630 = arith.divf %628, %629 : vector<8x128xf32>
    %631 = math.tanh %625 : vector<8x128xf32>
    %632 = vector.extract_strided_slice %630 {offsets = [0, 32], sizes = [8, 32], strides = [1, 1]} : vector<8x128xf32> to vector<8x32xf32>
    %633 = arith.mulf %632, %593 : vector<8x32xf32>
    %634 = vector.extract_strided_slice %630 {offsets = [0, 0], sizes = [8, 32], strides = [1, 1]} : vector<8x128xf32> to vector<8x32xf32>
    %635 = vector.extract_strided_slice %631 {offsets = [0, 64], sizes = [8, 32], strides = [1, 1]} : vector<8x128xf32> to vector<8x32xf32>
    %636 = arith.mulf %634, %635 : vector<8x32xf32>
    %637 = arith.addf %633, %636 : vector<8x32xf32>
    %638 = vector.extract_strided_slice %630 {offsets = [0, 96], sizes = [8, 32], strides = [1, 1]} : vector<8x128xf32> to vector<8x32xf32>
    %639 = math.tanh %637 : vector<8x32xf32>
    %640 = arith.mulf %638, %639 : vector<8x32xf32>
    %641 = arith.truncf %621 : vector<8x32xf32> to vector<8x32xbf16>
    %cst_134 = arith.constant dense<0.000000e+00> : vector<8x16xf32>
    %642 = tpu.matmul %641, %378, %cst_134 {dimension_numbers = #tpu.dot_dimension_numbers<[1], [0], [0], [1], [0, 0, 1, 1], [], []>} : vector<8x32xbf16>, vector<32x16xbf16>, vector<8x16xf32> -> vector<8x16xf32>
    %643 = arith.truncf %640 : vector<8x32xf32> to vector<8x32xbf16>
    %cst_135 = arith.constant dense<0.000000e+00> : vector<8x16xf32>
    %644 = tpu.matmul %643, %379, %cst_135 {dimension_numbers = #tpu.dot_dimension_numbers<[1], [0], [0], [1], [0, 0, 1, 1], [], []>} : vector<8x32xbf16>, vector<32x16xbf16>, vector<8x16xf32> -> vector<8x16xf32>
    %645 = arith.addf %516, %642 : vector<8x16xf32>
    %646 = arith.addf %514, %644 : vector<8x16xf32>
    %647 = vector.extract_strided_slice %383 {offsets = [48, 0], sizes = [8, 128], strides = [1, 1]} : vector<64x128xf32> to vector<8x128xf32>
    %648 = arith.truncf %621 : vector<8x32xf32> to vector<8x32xbf16>
    %cst_136 = arith.constant dense<0.000000e+00> : vector<8x128xf32>
    %649 = tpu.matmul %648, %373, %cst_136 {dimension_numbers = #tpu.dot_dimension_numbers<[1], [0], [0], [1], [0, 0, 1, 1], [], []>} : vector<8x32xbf16>, vector<32x128xbf16>, vector<8x128xf32> -> vector<8x128xf32>
    %650 = arith.addf %647, %649 : vector<8x128xf32>
    %651 = arith.negf %650 : vector<8x128xf32>
    %652 = math.exp %651 : vector<8x128xf32>
    %cst_137 = arith.constant 1.000000e+00 : f32
    %653 = vector.broadcast %cst_137 : f32 to vector<8x128xf32>
    %654 = arith.addf %653, %652 : vector<8x128xf32>
    %655 = arith.divf %653, %654 : vector<8x128xf32>
    %656 = math.tanh %650 : vector<8x128xf32>
    %657 = vector.extract_strided_slice %655 {offsets = [0, 32], sizes = [8, 32], strides = [1, 1]} : vector<8x128xf32> to vector<8x32xf32>
    %658 = arith.mulf %657, %618 : vector<8x32xf32>
    %659 = vector.extract_strided_slice %655 {offsets = [0, 0], sizes = [8, 32], strides = [1, 1]} : vector<8x128xf32> to vector<8x32xf32>
    %660 = vector.extract_strided_slice %656 {offsets = [0, 64], sizes = [8, 32], strides = [1, 1]} : vector<8x128xf32> to vector<8x32xf32>
    %661 = arith.mulf %659, %660 : vector<8x32xf32>
    %662 = arith.addf %658, %661 : vector<8x32xf32>
    %663 = vector.extract_strided_slice %655 {offsets = [0, 96], sizes = [8, 32], strides = [1, 1]} : vector<8x128xf32> to vector<8x32xf32>
    %664 = math.tanh %662 : vector<8x32xf32>
    %665 = arith.mulf %663, %664 : vector<8x32xf32>
    %666 = vector.extract_strided_slice %386 {offsets = [8, 0], sizes = [8, 128], strides = [1, 1]} : vector<64x128xf32> to vector<8x128xf32>
    %667 = arith.truncf %640 : vector<8x32xf32> to vector<8x32xbf16>
    %cst_138 = arith.constant dense<0.000000e+00> : vector<8x128xf32>
    %668 = tpu.matmul %667, %376, %cst_138 {dimension_numbers = #tpu.dot_dimension_numbers<[1], [0], [0], [1], [0, 0, 1, 1], [], []>} : vector<8x32xbf16>, vector<32x128xbf16>, vector<8x128xf32> -> vector<8x128xf32>
    %669 = arith.addf %666, %668 : vector<8x128xf32>
    %670 = arith.negf %669 : vector<8x128xf32>
    %671 = math.exp %670 : vector<8x128xf32>
    %cst_139 = arith.constant 1.000000e+00 : f32
    %672 = vector.broadcast %cst_139 : f32 to vector<8x128xf32>
    %673 = arith.addf %672, %671 : vector<8x128xf32>
    %674 = arith.divf %672, %673 : vector<8x128xf32>
    %675 = math.tanh %669 : vector<8x128xf32>
    %676 = vector.extract_strided_slice %674 {offsets = [0, 32], sizes = [8, 32], strides = [1, 1]} : vector<8x128xf32> to vector<8x32xf32>
    %677 = arith.mulf %676, %637 : vector<8x32xf32>
    %678 = vector.extract_strided_slice %674 {offsets = [0, 0], sizes = [8, 32], strides = [1, 1]} : vector<8x128xf32> to vector<8x32xf32>
    %679 = vector.extract_strided_slice %675 {offsets = [0, 64], sizes = [8, 32], strides = [1, 1]} : vector<8x128xf32> to vector<8x32xf32>
    %680 = arith.mulf %678, %679 : vector<8x32xf32>
    %681 = arith.addf %677, %680 : vector<8x32xf32>
    %682 = vector.extract_strided_slice %674 {offsets = [0, 96], sizes = [8, 32], strides = [1, 1]} : vector<8x128xf32> to vector<8x32xf32>
    %683 = math.tanh %681 : vector<8x32xf32>
    %684 = arith.mulf %682, %683 : vector<8x32xf32>
    %685 = arith.truncf %665 : vector<8x32xf32> to vector<8x32xbf16>
    %cst_140 = arith.constant dense<0.000000e+00> : vector<8x16xf32>
    %686 = tpu.matmul %685, %378, %cst_140 {dimension_numbers = #tpu.dot_dimension_numbers<[1], [0], [0], [1], [0, 0, 1, 1], [], []>} : vector<8x32xbf16>, vector<32x16xbf16>, vector<8x16xf32> -> vector<8x16xf32>
    %687 = arith.truncf %684 : vector<8x32xf32> to vector<8x32xbf16>
    %cst_141 = arith.constant dense<0.000000e+00> : vector<8x16xf32>
    %688 = tpu.matmul %687, %379, %cst_141 {dimension_numbers = #tpu.dot_dimension_numbers<[1], [0], [0], [1], [0, 0, 1, 1], [], []>} : vector<8x32xbf16>, vector<32x16xbf16>, vector<8x16xf32> -> vector<8x16xf32>
    %689 = arith.addf %474, %686 : vector<8x16xf32>
    %690 = arith.addf %472, %688 : vector<8x16xf32>
    %691 = vector.extract_strided_slice %383 {offsets = [56, 0], sizes = [8, 128], strides = [1, 1]} : vector<64x128xf32> to vector<8x128xf32>
    %692 = arith.truncf %665 : vector<8x32xf32> to vector<8x32xbf16>
    %cst_142 = arith.constant dense<0.000000e+00> : vector<8x128xf32>
    %693 = tpu.matmul %692, %373, %cst_142 {dimension_numbers = #tpu.dot_dimension_numbers<[1], [0], [0], [1], [0, 0, 1, 1], [], []>} : vector<8x32xbf16>, vector<32x128xbf16>, vector<8x128xf32> -> vector<8x128xf32>
    %694 = arith.addf %691, %693 : vector<8x128xf32>
    %695 = arith.negf %694 : vector<8x128xf32>
    %696 = math.exp %695 : vector<8x128xf32>
    %cst_143 = arith.constant 1.000000e+00 : f32
    %697 = vector.broadcast %cst_143 : f32 to vector<8x128xf32>
    %698 = arith.addf %697, %696 : vector<8x128xf32>
    %699 = arith.divf %697, %698 : vector<8x128xf32>
    %700 = math.tanh %694 : vector<8x128xf32>
    %701 = vector.extract_strided_slice %699 {offsets = [0, 32], sizes = [8, 32], strides = [1, 1]} : vector<8x128xf32> to vector<8x32xf32>
    %702 = arith.mulf %701, %662 : vector<8x32xf32>
    %703 = vector.extract_strided_slice %699 {offsets = [0, 0], sizes = [8, 32], strides = [1, 1]} : vector<8x128xf32> to vector<8x32xf32>
    %704 = vector.extract_strided_slice %700 {offsets = [0, 64], sizes = [8, 32], strides = [1, 1]} : vector<8x128xf32> to vector<8x32xf32>
    %705 = arith.mulf %703, %704 : vector<8x32xf32>
    %706 = arith.addf %702, %705 : vector<8x32xf32>
    %707 = vector.extract_strided_slice %699 {offsets = [0, 96], sizes = [8, 32], strides = [1, 1]} : vector<8x128xf32> to vector<8x32xf32>
    %708 = math.tanh %706 : vector<8x32xf32>
    %709 = arith.mulf %707, %708 : vector<8x32xf32>
    %710 = vector.extract_strided_slice %386 {offsets = [0, 0], sizes = [8, 128], strides = [1, 1]} : vector<64x128xf32> to vector<8x128xf32>
    %711 = arith.truncf %684 : vector<8x32xf32> to vector<8x32xbf16>
    %cst_144 = arith.constant dense<0.000000e+00> : vector<8x128xf32>
    %712 = tpu.matmul %711, %376, %cst_144 {dimension_numbers = #tpu.dot_dimension_numbers<[1], [0], [0], [1], [0, 0, 1, 1], [], []>} : vector<8x32xbf16>, vector<32x128xbf16>, vector<8x128xf32> -> vector<8x128xf32>
    %713 = arith.addf %710, %712 : vector<8x128xf32>
    %714 = arith.negf %713 : vector<8x128xf32>
    %715 = math.exp %714 : vector<8x128xf32>
    %cst_145 = arith.constant 1.000000e+00 : f32
    %716 = vector.broadcast %cst_145 : f32 to vector<8x128xf32>
    %717 = arith.addf %716, %715 : vector<8x128xf32>
    %718 = arith.divf %716, %717 : vector<8x128xf32>
    %719 = math.tanh %713 : vector<8x128xf32>
    %720 = vector.extract_strided_slice %718 {offsets = [0, 32], sizes = [8, 32], strides = [1, 1]} : vector<8x128xf32> to vector<8x32xf32>
    %721 = arith.mulf %720, %681 : vector<8x32xf32>
    %722 = vector.extract_strided_slice %718 {offsets = [0, 0], sizes = [8, 32], strides = [1, 1]} : vector<8x128xf32> to vector<8x32xf32>
    %723 = vector.extract_strided_slice %719 {offsets = [0, 64], sizes = [8, 32], strides = [1, 1]} : vector<8x128xf32> to vector<8x32xf32>
    %724 = arith.mulf %722, %723 : vector<8x32xf32>
    %725 = arith.addf %721, %724 : vector<8x32xf32>
    %726 = vector.extract_strided_slice %718 {offsets = [0, 96], sizes = [8, 32], strides = [1, 1]} : vector<8x128xf32> to vector<8x32xf32>
    %727 = math.tanh %725 : vector<8x32xf32>
    %728 = arith.mulf %726, %727 : vector<8x32xf32>
    %729 = arith.truncf %709 : vector<8x32xf32> to vector<8x32xbf16>
    %cst_146 = arith.constant dense<0.000000e+00> : vector<8x16xf32>
    %730 = tpu.matmul %729, %378, %cst_146 {dimension_numbers = #tpu.dot_dimension_numbers<[1], [0], [0], [1], [0, 0, 1, 1], [], []>} : vector<8x32xbf16>, vector<32x16xbf16>, vector<8x16xf32> -> vector<8x16xf32>
    %731 = arith.truncf %728 : vector<8x32xf32> to vector<8x32xbf16>
    %cst_147 = arith.constant dense<0.000000e+00> : vector<8x16xf32>
    %732 = tpu.matmul %731, %379, %cst_147 {dimension_numbers = #tpu.dot_dimension_numbers<[1], [0], [0], [1], [0, 0, 1, 1], [], []>} : vector<8x32xbf16>, vector<32x16xbf16>, vector<8x16xf32> -> vector<8x16xf32>
    %733 = arith.addf %432, %730 : vector<8x16xf32>
    %734 = arith.addf %430, %732 : vector<8x16xf32>
    %735 = tpu.concatenate %734, %690, %646, %602, %601, %645, %689, %733 in 0 : vector<8x16xf32>, vector<8x16xf32>, vector<8x16xf32>, vector<8x16xf32>, vector<8x16xf32>, vector<8x16xf32>, vector<8x16xf32>, vector<8x16xf32> -> vector<64x16xf32>
    %736 = vector.broadcast %380 : vector<1x16xf32> to vector<64x16xf32>
    %737 = arith.addf %735, %736 : vector<64x16xf32>
    %738 = vector.shape_cast %737 : vector<64x16xf32> to vector<8x8x16xf32>
    %c0_148 = arith.constant 0 : index
    %c0_149 = arith.constant 0 : index
    %c0_150 = arith.constant 0 : index
    %739 = vector.load %arg21[%c0_148, %c0_149, %c0_150] : memref<8x8x16xf32, #tpu.memory_space<vmem>>, vector<8x8x16xf32>
    tpu.vector_store %arg21[%c0_148, %c0_149, %c0_150], %738 {strides = array<i32>} : memref<8x8x16xf32, #tpu.memory_space<vmem>>, vector<8x8x16xf32>,
    return
  }
  func.func @transform_0(%arg0: i32) -> (i32, i32, i32) {
    %c0_i32 = arith.constant 0 : i32
    %c0_i32_0 = arith.constant 0 : i32
    %c0_i32_1 = arith.constant 0 : i32
    return %c0_i32, %arg0, %c0_i32_0 : i32, i32, i32
  }
  func.func @transform_1(%arg0: i32) -> (i32, i32) {
    %c0_i32 = arith.constant 0 : i32
    %c0_i32_0 = arith.constant 0 : i32
    %c0_i32_1 = arith.constant 0 : i32
    return %c0_i32, %c0_i32_0 : i32, i32
  }
  func.func @transform_2(%arg0: i32) -> (i32, i32) {
    %c0_i32 = arith.constant 0 : i32
    %c0_i32_0 = arith.constant 0 : i32
    %c0_i32_1 = arith.constant 0 : i32
    return %c0_i32, %c0_i32_0 : i32, i32
  }
  func.func @transform_3(%arg0: i32) -> (i32, i32) {
    %c0_i32 = arith.constant 0 : i32
    %c0_i32_0 = arith.constant 0 : i32
    %c0_i32_1 = arith.constant 0 : i32
    return %c0_i32, %c0_i32_0 : i32, i32
  }
  func.func @transform_4(%arg0: i32) -> (i32, i32) {
    %c0_i32 = arith.constant 0 : i32
    %c0_i32_0 = arith.constant 0 : i32
    %c0_i32_1 = arith.constant 0 : i32
    return %c0_i32, %c0_i32_0 : i32, i32
  }
  func.func @transform_5(%arg0: i32) -> (i32, i32) {
    %c0_i32 = arith.constant 0 : i32
    %c0_i32_0 = arith.constant 0 : i32
    %c0_i32_1 = arith.constant 0 : i32
    return %c0_i32, %c0_i32_0 : i32, i32
  }
  func.func @transform_6(%arg0: i32) -> (i32, i32) {
    %c0_i32 = arith.constant 0 : i32
    %c0_i32_0 = arith.constant 0 : i32
    %c0_i32_1 = arith.constant 0 : i32
    return %c0_i32, %c0_i32_0 : i32, i32
  }
  func.func @transform_7(%arg0: i32) -> (i32, i32) {
    %c0_i32 = arith.constant 0 : i32
    %c0_i32_0 = arith.constant 0 : i32
    %c0_i32_1 = arith.constant 0 : i32
    return %c0_i32, %c0_i32_0 : i32, i32
  }
  func.func @transform_8(%arg0: i32) -> (i32, i32) {
    %c0_i32 = arith.constant 0 : i32
    %c0_i32_0 = arith.constant 0 : i32
    %c0_i32_1 = arith.constant 0 : i32
    return %c0_i32, %c0_i32_0 : i32, i32
  }
  func.func @transform_9(%arg0: i32) -> (i32, i32) {
    %c0_i32 = arith.constant 0 : i32
    %c0_i32_0 = arith.constant 0 : i32
    %c0_i32_1 = arith.constant 0 : i32
    return %c0_i32, %c0_i32_0 : i32, i32
  }
  func.func @transform_10(%arg0: i32) -> (i32, i32) {
    %c0_i32 = arith.constant 0 : i32
    %c0_i32_0 = arith.constant 0 : i32
    %c0_i32_1 = arith.constant 0 : i32
    return %c0_i32, %c0_i32_0 : i32, i32
  }
  func.func @transform_11(%arg0: i32) -> (i32, i32) {
    %c0_i32 = arith.constant 0 : i32
    %c0_i32_0 = arith.constant 0 : i32
    %c0_i32_1 = arith.constant 0 : i32
    return %c0_i32, %c0_i32_0 : i32, i32
  }
  func.func @transform_12(%arg0: i32) -> (i32, i32) {
    %c0_i32 = arith.constant 0 : i32
    %c0_i32_0 = arith.constant 0 : i32
    %c0_i32_1 = arith.constant 0 : i32
    return %c0_i32, %c0_i32_0 : i32, i32
  }
  func.func @transform_13(%arg0: i32) -> (i32, i32) {
    %c0_i32 = arith.constant 0 : i32
    %c0_i32_0 = arith.constant 0 : i32
    %c0_i32_1 = arith.constant 0 : i32
    return %c0_i32, %c0_i32_0 : i32, i32
  }
  func.func @transform_14(%arg0: i32) -> (i32, i32) {
    %c0_i32 = arith.constant 0 : i32
    %c0_i32_0 = arith.constant 0 : i32
    %c0_i32_1 = arith.constant 0 : i32
    return %c0_i32, %c0_i32_0 : i32, i32
  }
  func.func @transform_15(%arg0: i32) -> (i32, i32) {
    %c0_i32 = arith.constant 0 : i32
    %c0_i32_0 = arith.constant 0 : i32
    %c0_i32_1 = arith.constant 0 : i32
    return %c0_i32, %c0_i32_0 : i32, i32
  }
  func.func @transform_16(%arg0: i32) -> (i32, i32) {
    %c0_i32 = arith.constant 0 : i32
    %c0_i32_0 = arith.constant 0 : i32
    %c0_i32_1 = arith.constant 0 : i32
    return %c0_i32, %c0_i32_0 : i32, i32
  }
  func.func @transform_17(%arg0: i32) -> (i32, i32) {
    %c0_i32 = arith.constant 0 : i32
    %c0_i32_0 = arith.constant 0 : i32
    %c0_i32_1 = arith.constant 0 : i32
    return %c0_i32, %c0_i32_0 : i32, i32
  }
  func.func @transform_18(%arg0: i32) -> (i32, i32) {
    %c0_i32 = arith.constant 0 : i32
    %c0_i32_0 = arith.constant 0 : i32
    %c0_i32_1 = arith.constant 0 : i32
    return %c0_i32, %c0_i32_0 : i32, i32
  }
  func.func @transform_19(%arg0: i32) -> (i32, i32, i32) {
    %c0_i32 = arith.constant 0 : i32
    %c0_i32_0 = arith.constant 0 : i32
    %c0_i32_1 = arith.constant 0 : i32
    return %c0_i32, %arg0, %c0_i32_0 : i32, i32, i32
  }
  func.func @transform_20(%arg0: i32) -> (i32, i32, i32) {
    %c0_i32 = arith.constant 0 : i32
    %c0_i32_0 = arith.constant 0 : i32
    %c0_i32_1 = arith.constant 0 : i32
    return %c0_i32, %arg0, %c0_i32_0 : i32, i32, i32
  }
}

</mosaic_0001>

<bundles_post_ra>
// kernel: tpu_custom_call.1
= control target key start
LH: loop header
LB: loop body
LE: loop exit
PB: predicated region body
PF: predicated region fallthrough
CT: control target
= control target key end

     0   :  { %s4633_s0 = inlined_call_operand.hbm [shape: f32[8,8,16], index: 0, kind: input, shape index: {}]   ;;  %s4634_s1 = inlined_call_operand.vmem [shape: bf16[16,128], index: 1, kind: input, shape index: {}]   ;;  %s4635_s2 = inlined_call_operand.vmem [shape: bf16[32,128], index: 2, kind: input, shape index: {}]   ;;  %s4636_s3 = inlined_call_operand.vmem [shape: f32[1,128], index: 3, kind: input, shape index: {}]   ;;  %s4637_s4 = inlined_call_operand.hbm [shape: bf16[16,128], index: 4, kind: input, shape index: {}]   ;;  %s4638_s5 = inlined_call_operand.vmem [shape: bf16[32,128], index: 5, kind: input, shape index: {}]   ;;  %s4639_s6 = inlined_call_operand.vmem [shape: f32[1,128], index: 6, kind: input, shape index: {}]   ;;  %s4640_s7 = inlined_call_operand.hbm [shape: bf16[32,32], index: 7, kind: input, shape index: {}]   ;;  %s4641_s8 = inlined_call_operand.hbm [shape: bf16[32,32], index: 8, kind: input, shape index: {}]   ;;  %s4642_s9 = inlined_call_operand.vmem [shape: f32[1,32], index: 9, kind: input, shape index: {}]   ;;  %s4643_s10 = inlined_call_operand.hbm [shape: bf16[32,128], index: 10, kind: input, shape index: {}]   ;;  %s4644_s11 = inlined_call_operand.hbm [shape: bf16[32,128], index: 11, kind: input, shape index: {}]   ;;  %s4645_s12 = inlined_call_operand.vmem [shape: f32[1,128], index: 12, kind: input, shape index: {}]   ;;  %s4646_s13 = inlined_call_operand.hbm [shape: bf16[32,128], index: 13, kind: input, shape index: {}]   ;;  %s4647_s14 = inlined_call_operand.hbm [shape: bf16[32,128], index: 14, kind: input, shape index: {}]   ;;  %s4648_s15 = inlined_call_operand.vmem [shape: f32[1,128], index: 15, kind: input, shape index: {}]   ;;  %s4649_s16 = inlined_call_operand.vmem [shape: bf16[32,16], index: 16, kind: input, shape index: {}]   ;;  %s4650_s17 = inlined_call_operand.vmem [shape: bf16[32,16], index: 17, kind: input, shape index: {}]   ;;  %s4651_s18 = inlined_call_operand.vmem [shape: f32[1,16], index: 18, kind: input, shape index: {}]   ;;  %s4652_s19 = inlined_call_operand.hbm [shape: f32[8,8,32], index: 19, kind: output, shape index: {0}]   ;;  %s4653_s20 = inlined_call_operand.hbm [shape: f32[8,8,16], index: 20, kind: output, shape index: {1}]  }
   0x1   :  { %4656 = sst [smem:[#allocation26_spill]] %s4633_s0 }
   0x2   :  { %4657 = sst [smem:[#allocation27_spill]] %s4634_s1 }
   0x3   :  { %4658 = sst [smem:[#allocation28_spill]] %s4635_s2 }
   0x4   :  { %4659 = sst [smem:[#allocation29_spill]] %s4636_s3 }
   0x5   :  { %4660 = sst [smem:[#allocation30_spill]] %s4637_s4 }
   0x6   :  { %26 = vsyncpa [#allocation3], 0 }
   0x7   :  { %27 = vsyncpa [#allocation6], 0 }
   0x8   :  { %28 = vsyncpa [#allocation9], 0 }
   0x9   :  { %29 = vsyncpa [#allocation12], 0 }
   0xa   :  { %30 = vsyncpa [#allocation15], 0 }
   0xb   :  { %31 = vsyncpa [#allocation4], 0  ;;  %s4661_s23 = sld [smem:[#allocation30_spill]] }
  0x11   :  { %s56_s24 = sshll.u32 %s4661_s23, 4  ;;  %s57_s24 = int_to_ptr.hbm [resolvable:$true] %s56_s24 }
  0x12   :  { %32 = vsyncpa [#allocation18], 0  ;;  %s3656_s2 = smov [#allocation5]   ;;  %s86_s27 = sshll.u32 %s4641_s8, 4  ;;  %s87_s27 = int_to_ptr.hbm [resolvable:$true] %s86_s27 }
  0x13   :  { %s58_s25 = sshll.u32 %s3656_s2, 4  ;;  %s3657_s28 = smov 64   ;;  %s59_s25 = int_to_ptr.vmem [resolvable:$true] %s58_s25 }
  0x14   :  { %s3658_s4 = smov 4   ;;  %s3659_s29 = smov [#allocation8]  }
  0x15   :  { %64 = dma.hbm_to_vmem [thread:$0]  %s57_s24, 128, %s59_s25, [#allocation6], %s3657_s28, %s3657_s28, %s3658_s4  }
  0x16   :  { %s88_s30 = sshll.u32 %s3659_s29, 4  ;;  %s114_s1 = sshll.u32 %s4644_s11, 4  ;;  %s89_s30 = int_to_ptr.vmem [resolvable:$true] %s88_s30  ;;  %s115_s1 = int_to_ptr.hbm [resolvable:$true] %s114_s1 }
  0x17   :  { %94 = dma.hbm_to_vmem [thread:$0]  %s87_s27, 256, %s89_s30, [#allocation9], %s3657_s28, %s3657_s28, %s3658_s4  }
  0x18   :  { %s4662_s23 = sld [smem:[#allocation26_spill]]  ;;  %s3660_s3 = smov [#allocation11]  }
  0x19   :  { %s116_s26 = sshll.u32 %s3660_s3, 4  ;;  %s3661_s24 = smov [#allocation2]   ;;  %s117_s26 = int_to_ptr.vmem [resolvable:$true] %s116_s26 }
  0x1a   :  { %122 = dma.hbm_to_vmem [thread:$0]  %s115_s1, 256, %s117_s26, [#allocation12], %s3657_s28, %s3657_s28, %s3658_s4  }
  0x1b   :  { %s39_s11 = sshll.u32 %s3661_s24, 4  ;;  %s3662_s25 = smov 128   ;;  %s40_s11 = int_to_ptr.vmem [resolvable:$true] %s39_s11 }
  0x1c   :  { %s3663_s29 = smov 8   ;;  %s73_s0 = sshll.u32 %s4640_s7, 4  ;;  %s74_s0 = int_to_ptr.hbm [resolvable:$true] %s73_s0 }
  0x1d   :  { %s3664_s21 = smov [#allocation7]   ;;  %s101_s1 = sshll.u32 %s4643_s10, 4  ;;  %s102_s1 = int_to_ptr.hbm [resolvable:$true] %s101_s1 }
  0x1e   :  { %s37_s2 = sshll.u32 %s4662_s23, 4  ;;  %s75_s8 = sshll.u32 %s3664_s21, 4  ;;  %s38_s2 = int_to_ptr.hbm [resolvable:$true] %s37_s2  ;;  %s76_s8 = int_to_ptr.vmem [resolvable:$true] %s75_s8 }
  0x1f   :  { %45 = dma.hbm_to_vmem [thread:$0]  %s38_s2, 1024, %s40_s11, [#allocation3], %s3662_s25, %s3662_s25, %s3663_s29  }
  0x20   :  { %81 = dma.hbm_to_vmem [thread:$0]  %s74_s0, 256, %s76_s8, [#allocation6], %s3657_s28, %s3657_s28, %s3658_s4  }
  0x21   :  { %s3665_s3 = smov [#allocation10]   ;;  %s129_s11 = sshll.u32 %s4646_s13, 4  ;;  %s130_s11 = int_to_ptr.hbm [resolvable:$true] %s129_s11 }
  0x22   :  { %s103_s26 = sshll.u32 %s3665_s3, 4  ;;  %s142_s10 = sshll.u32 %s4647_s14, 4  ;;  %s104_s26 = int_to_ptr.vmem [resolvable:$true] %s103_s26  ;;  %s143_s10 = int_to_ptr.hbm [resolvable:$true] %s142_s10 }
  0x23   :  { %109 = dma.hbm_to_vmem [thread:$0]  %s102_s1, 256, %s104_s26, [#allocation9], %s3657_s28, %s3657_s28, %s3658_s4  }
  0x24   :  { %s3666_s30 = smov [#allocation13]   ;;  %s3667_s0 = smov [#allocation14]  }
  0x25   :  { %s131_s21 = sshll.u32 %s3666_s30, 4  ;;  %s144_s13 = sshll.u32 %s3667_s0, 4  ;;  %s132_s21 = int_to_ptr.vmem [resolvable:$true] %s131_s21  ;;  %s145_s13 = int_to_ptr.vmem [resolvable:$true] %s144_s13 }
  0x26   :  { %137 = dma.hbm_to_vmem [thread:$0]  %s130_s11, 256, %s132_s21, [#allocation12], %s3657_s28, %s3657_s28, %s3658_s4  }
  0x27   :  { %150 = dma.hbm_to_vmem [thread:$0]  %s143_s10, 256, %s145_s13, [#allocation15], %s3657_s28, %s3657_s28, %s3658_s4  }
  0x28   :  { %3642 = dma.done.wait [#allocation3], 1024  }
  0x29   :  { %3643 = vsyncadd [#allocation3], 4294966272 }
  0x2a   :  { %3644 = dma.done.wait [#allocation6], 384  }
  0x2b   :  { %3645 = vsyncadd [#allocation6], 4294966912 }
  0x2c   :  { %3646 = dma.done.wait [#allocation9], 512  }
  0x2d   :  { %3647 = vsyncadd [#allocation9], 4294966784 }
  0x2e   :  { %3648 = dma.done.wait [#allocation12], 512  }
  0x2f   :  { %3649 = vsyncadd [#allocation12], 4294966784 }
  0x30   :  { %3650 = dma.done.wait [#allocation15], 256  }
  0x31   :  { %3651 = vsyncadd [#allocation15], 4294967040  ;;  %v3097_v0 = vld [vmem:[#allocation5] sm:$0xff]  ;;  %s4663_s22 = sld [smem:[#allocation28_spill]]  ;;  %v193_v3 = vld [vmem:[#allocation2 + $0x8] sm:$0xff]  ;;  %vm236_vm0 = vcmask 130048  }
  0x32   :  { %v192_v2 = vld [vmem:[#allocation2] sm:$0xff]  ;;  %s4664_s1 = sld [smem:[#allocation27_spill]]  ;;  %294 = vmatpush.bf16.msra.mxu1 %v3097_v0  ;;  %v3844_v7 = vld [vmem:[%s4638_s5 + $0x8] sm:$0xff]  ;;  %v3668_v9 = vmov 0   ;;  %v194_v10 = vld [vmem:[#allocation2 + $0x10] sm:$0xff]  ;;  %s3669_s13 = smov 32  }
  0x33   :  { %v200_v5 = vpack.c.bf16 %v193_v3, %v192_v2  ;;  %401 = vmatpush.bf16.msra.mxu3 %v3844_v7  ;;  %v3852_v8 = vld [vmem:[%s4638_s5] sm:$0xff]  ;;  %v195_v11 = vld [vmem:[#allocation2 + $0x18] sm:$0xff]  ;;  %v197_v14 = vld [vmem:[#allocation2 + $0x28] sm:$0xff]  ;;  %s4665_s0 = sld [smem:[#allocation29_spill]]  ;;  %vm328_vm9 = vcmask 261120   ;;  %s2863_s26 = sshll.u32 %s4652_s19, 4  ;;  %s2864_s26 = int_to_ptr.hbm [resolvable:$true] %s2863_s26 }
  0x34   :  { %v201_v12 = vpack.c.bf16 %v195_v11, %v194_v10  ;;  %v196_v13 = vld [vmem:[#allocation2 + $0x20] sm:$0xff]  ;;  %v198_v16 = vld [vmem:[#allocation2 + $0x30] sm:$0xff]  ;;  %v199_v17 = vld [vmem:[#allocation2 + $0x38] sm:$0xff]  ;;  %s2876_s19 = sshll.u32 %s4653_s20, 4  ;;  %s2877_s19 = int_to_ptr.hbm [resolvable:$true] %s2876_s19 }
  0x35   :  { %2910 = vmatmul.msk.bf16.vlgmr.msra.gmra.mxu1 %vm236_vm0, %v200_v5  ;;  %v202_v15 = vpack.c.bf16 %v197_v14, %v196_v13  ;;  %v203_v18 = vpack.c.bf16 %v199_v17, %v198_v16  ;;  %v3877_v19 = vld [vmem:[%s4639_s6] ss:$0 sm:$0xff] }
  0x36   :  { %865 = vmatpush.bf16.msrb.mxu1 %v3844_v7 }
  0x37   :  { %v3828_v1 = vld [vmem:[%s4663_s22 + $0x8] sm:$0xff]  ;;  %v3837_v6 = vld [vmem:[%s4663_s22] sm:$0xff]  ;;  %402 = vmatpush.bf16.msra.mxu3 %v3852_v8 }
  0x38   :  { %v3094_v4 = vld [vmem:[%s4664_s1] sm:$0xff]  ;;  %338 = vmatpush.bf16.msra.mxu2 %v3828_v1 }
  0x39   :  { %256 = vmatpush.bf16.msra.mxu0 %v3094_v4  ;;  %v3885_v22 = vld [vmem:[%s4665_s0] ss:$0 sm:$0xff] }
  0x3a   :  { %866 = vmatpush.bf16.msrb.mxu1 %v3852_v8  ;;  %403 = vmatmul.bf16.vlgmr.msra.gmra.mxu3 %v3668_v9 }
  0x3b   :  { %517 = vmatpush.bf16.msrb.mxu3 %v3844_v7 }
  0x3c   :  { %339 = vmatpush.bf16.msra.mxu2 %v3837_v6  ;;  %2902 = vmatmul.msk.bf16.vlgmr.msra.gmra.mxu0 %vm236_vm0, %v200_v5 }
  0x3d   :  { %808 = vmatpush.bf16.msrb.mxu0 %v3828_v1 }
  0x3f   :  { %340 = vmatmul.bf16.vlgmr.msra.gmra.mxu2 %v3668_v9  ;;  %518 = vmatpush.bf16.msrb.mxu3 %v3852_v8 }
  0x40   :  { %460 = vmatpush.bf16.msrb.mxu2 %v3828_v1 }
  0x41   :  { %809 = vmatpush.bf16.msrb.mxu0 %v3837_v6 }
  0x43   :  { %633 = vmatpush.bf16.msra.mxu3 %v3844_v7 }
  0x44   :  { %461 = vmatpush.bf16.msrb.mxu2 %v3837_v6 }
  0x45   :  { %2911 = vmatmul.msk.bf16.gmra.mxu1 %vm236_vm0, %v201_v12 }
  0x47   :  { %634 = vmatpush.bf16.msra.mxu3 %v3852_v8 }
  0x48   :  { %576 = vmatpush.bf16.msra.mxu2 %v3828_v1 }
  0x4c   :  { %577 = vmatpush.bf16.msra.mxu2 %v3837_v6  ;;  %2903 = vmatmul.msk.bf16.gmra.mxu0 %vm236_vm0, %v201_v12 }
  0x55   :  { %2912 = vmatmul.msk.bf16.gmra.mxu1 %vm236_vm0, %v202_v15 }
  0x5c   :  { %2904 = vmatmul.msk.bf16.gmra.mxu0 %vm236_vm0, %v202_v15 }
  0x65   :  { %2913 = vmatmul.msk.bf16.gmra.mxu1 %vm236_vm0, %v203_v18 }
  0x6c   :  { %2905 = vmatmul.msk.bf16.gmra.mxu0 %vm236_vm0, %v203_v18 }
  0xb2   :  { %v296_v20 = vpop.f32.mrf.mxu1 }
  0xb3   :  { %v3880_v21 = vadd.f32 %v3877_v19, %v296_v20 }
  0xb9   :  { %v258_v23 = vpop.f32.mrf.mxu0 }
  0xba   :  { %v259_v24 = vadd.f32 %v3885_v22, %v258_v23  ;;  %v3888_v25 = vpop.f32.mrf.mxu1 }
  0xbd   :  { %v404_v30 = vpop.f32.mrf.mxu3 }
  0xc2   :  { %v341_v26 = vpop.f32.mrf.mxu2  ;;  %v301_v28 = vpop.f32.mrf.mxu1 }
  0xc3   :  { %v345_v27 = vadd.f32 %v341_v26, %v259_v24  ;;  %v3891_v29 = vadd.f32 %v3877_v19, %v301_v28 }
  0xc5   :  { %3138 = vtanh.f32 %v345_v27  ;;  %v406_v34 = vpop.f32.mrf.mxu3  ;;  %v2922_v44 = vmul.f32 -1.442695, %v345_v27 }
  0xca   :  { %v343_v31 = vpop.f32.mrf.mxu2  ;;  %v3894_v33 = vpop.f32.mrf.mxu1 }
  0xcb   :  { %v3139_v32 = vpop.eup %3138 }
  0xcc   :  { %368 = vrot.lane.b32.xlu1 %v3139_v32, %s3657_s28 }
  0xd2   :  { %v306_v35 = vpop.f32.mrf.mxu1 }
  0xd3   :  { %v3897_v36 = vadd.f32 %v3877_v19, %v306_v35 }
  0xda   :  { %v3899_v37 = vpop.f32.mrf.mxu1 }
  0xe2   :  { %v311_v38 = vpop.f32.mrf.mxu1 }
  0xe3   :  { %v3902_v39 = vadd.f32 %v3877_v19, %v311_v38 }
  0xea   :  { %v313_v40 = vpop.f32.mrf.mxu1 }
  0xeb   :  { %v314_v41 = vadd.f32 %v3877_v19, %v313_v40  ;;  %v260_v40 = vpop.f32.mrf.mxu0 }
  0xed   :  { %v408_v42 = vadd.f32 %v404_v30, %v314_v41  ;;  %v261_v41 = vadd.f32 %v3885_v22, %v260_v40 }
  0xef   :  { %3140 = vtanh.f32 %v408_v42  ;;  %v2931_v59 = vmul.f32 -1.442695, %v408_v42 }
  0xf0   :  { %3142 = vpow2.f32 %v2922_v44 }
  0xf5   :  { %v3141_v43 = vpop.eup %3140 }
  0xf6   :  { %431 = vrot.lane.b32.xlu0 %v3141_v43, %s3657_s28  ;;  %v3143_v45 = vpop.eup %3142 }
  0xf7   :  { %v349_v46 = vadd.f32 1.0, %v3143_v45 }
  0xf9   :  { %3144 = vrcp.f32 %v349_v46  ;;  %vm355_vm1 = vweird.f32 %v349_v46  ;;  %v361_v51 = vand.u32 2147483648, %v349_v46  ;;  %v359_v53 = vand.u32 2147483647, %v349_v46 }
  0xfa   :  { %3146 = vpow2.f32 %v2931_v59 }
  0xfb   :  { %v362_v54 = vor.u32 1.1754944e-38, %v361_v51  ;;  %vm360_vm4 = vcmp.eq.f32.partialorder %v359_v53, 8.507059e+37 }
  0xff   :  { %v3145_v47 = vpop.eup %3144 }
 0x100   :  { %v351_v48 = vmul.f32 %v3145_v47, %v349_v46  ;;  %vm356_vm2 = vweird.f32 %v3145_v47  ;;  %v3147_v60 = vpop.eup %3146 }
 0x101   :  { %vm357_vm3 = vmor %vm355_vm1, %vm356_vm2  ;;  %v412_v61 = vadd.f32 1.0, %v3147_v60 }
 0x102   :  { %v352_v49 = vsub.f32 1.0, %v351_v48 }
 0x103   :  { %3148 = vrcp.f32 %v412_v61  ;;  %v424_v4 = vand.u32 2147483648, %v412_v61  ;;  %vm418_vm6 = vweird.f32 %v412_v61  ;;  %v422_v5 = vand.u32 2147483647, %v412_v61 }
 0x104   :  { %v353_v50 = vmul.f32 %v3145_v47, %v352_v49 }
 0x105   :  { %v425_v11 = vor.u32 1.1754944e-38, %v424_v4  ;;  %vm423_vm8 = vcmp.eq.f32.partialorder %v422_v5, 8.507059e+37 }
 0x106   :  { %v354_v52 = vadd.f32 %v3145_v47, %v353_v50 }
 0x108   :  { %v358_v55 = vsel %vm357_vm3, %v3145_v47, %v354_v52 }
 0x109   :  { %v363_v57 = vsel %vm360_vm4, %v362_v54, %v358_v55  ;;  %v3149_v62 = vpop.eup %3148 }
 0x10a   :  { %v414_v63 = vmul.f32 %v3149_v62, %v412_v61  ;;  %vm419_vm5 = vweird.f32 %v3149_v62  ;;  %v366_v15 = vmul.f32 0.0, %v363_v57 }
 0x10b   :  { %vm420_vm7 = vmor %vm418_vm6, %vm419_vm5 }
 0x10c   :  { %v415_v0 = vsub.f32 1.0, %v414_v63 }
 0x10e   :  { %v416_v2 = vmul.f32 %v3149_v62, %v415_v0 }
 0x110   :  { %v417_v3 = vadd.f32 %v3149_v62, %v416_v2 }
 0x112   :  { %v421_v10 = vsel %vm420_vm7, %v3149_v62, %v417_v3 }
 0x113   :  { %v426_v13 = vsel %vm423_vm8, %v425_v11, %v421_v10 }
 0x114   :  { %v429_v20 = vmul.f32 0.0, %v426_v13 }
 0x13e   :  { %v369_v56 = vpop.permute.xlu1 %368 }
 0x13f   :  { %v371_v58 = vmul.f32 %v369_v56, %v363_v57 }
 0x141   :  { %373 = vrot.lane.b32.xlu1 %v371_v58, %s3669_s13 }
 0x168   :  { %v432_v12 = vpop.permute.xlu0 %431 }
 0x169   :  { %v434_v14 = vmul.f32 %v432_v12, %v426_v13 }
 0x16b   :  { %436 = vrot.lane.b32.xlu0 %v434_v14, %s3669_s13 }
 0x1b3   :  { %v374_v16 = vpop.permute.xlu1 %373 }
 0x1b4   :  { %v3908_v17 = vadd.f32 %v374_v16, %v366_v15 }
 0x1b6   :  { %3150 = vtanh.f32 %v3908_v17 }
 0x1bc   :  { %v3151_v18 = vpop.eup %3150 }
 0x1bd   :  { %379 = vrot.lane.b32.xlu0 %v3151_v18, %s3657_s28 }
 0x1dd   :  { %v437_v23 = vpop.permute.xlu0 %436 }
 0x1de   :  { %v3912_v24 = vadd.f32 %v437_v23, %v429_v20 }
 0x1e0   :  { %3152 = vtanh.f32 %v3912_v24 }
 0x1e6   :  { %v3153_v26 = vpop.eup %3152 }
 0x1e7   :  { %442 = vrot.lane.b32.xlu2 %v3153_v26, %s3657_s28 }
 0x22f   :  { %v380_v27 = vpop.permute.xlu0 %379 }
 0x230   :  { %v382_v28 = vmul.f32 %v380_v27, %v363_v57 }
 0x232   :  { %v446_v30 = vpack.c.bf16 %v382_v28, %v382_v28 }
 0x234   :  { %449 = vrot.lane.b32.xlu1 %v446_v30, %s3669_s13 }
 0x241   :  { %v443_v31 = vpop.permute.xlu2 %442 }
 0x242   :  { %v445_v32 = vmul.f32 %v443_v31, %v426_v13 }
 0x244   :  { %v447_v34 = vpack.c.bf16 %v445_v32, %v445_v32 }
 0x246   :  { %506 = vrot.lane.b32.xlu2 %v447_v34, %s3669_s13 }
 0x2a0   :  { %v3918_v35 = vpop.permute.xlu2 %506 }
 0x2a1   :  { %2934 = vmatmul.msk.bf16.vlgmr.msrb.gmra.mxu3 %vm328_vm9, %v3918_v35 }
 0x2a2   :  { %749 = vmatpush.bf16.msrb.mxu3 %v3844_v7 }
 0x2a6   :  { %v3920_v38 = vpop.permute.xlu1 %449  ;;  %750 = vmatpush.bf16.msrb.mxu3 %v3852_v8 }
 0x2a7   :  { %2932 = vmatmul.msk.bf16.vlgmr.msrb.gmra.mxu2 %vm328_vm9, %v3920_v38 }
 0x2a8   :  { %692 = vmatpush.bf16.msrb.mxu2 %v3828_v1 }
 0x2ac   :  { %693 = vmatpush.bf16.msrb.mxu2 %v3837_v6 }
 0x324   :  { %v520_v43 = vpop.f32.mrf.mxu3 }
 0x325   :  { %v524_v45 = vadd.f32 %v520_v43, %v3902_v39 }
 0x327   :  { %v2935_v50 = vmul.f32 -1.442695, %v524_v45 }
 0x32a   :  { %v463_v42 = vpop.f32.mrf.mxu2 }
 0x32b   :  { %v467_v44 = vadd.f32 %v463_v42, %v261_v41 }
 0x32c   :  { %v522_v47 = vpop.f32.mrf.mxu3 }
 0x32d   :  { %3154 = vtanh.f32 %v467_v44  ;;  %v2933_v54 = vmul.f32 -1.442695, %v467_v44  ;;  %v263_v47 = vpop.f32.mrf.mxu0 }
 0x32e   :  { %3156 = vtanh.f32 %v524_v45 }
 0x32f   :  { %3158 = vpow2.f32 %v2935_v50 }
 0x332   :  { %v465_v46 = vpop.f32.mrf.mxu2 }
 0x333   :  { %v3155_v48 = vpop.eup %3154 }
 0x334   :  { %v3157_v49 = vpop.eup %3156  ;;  %490 = vrot.lane.b32.xlu1 %v3155_v48, %s3657_s28  ;;  %v264_v48 = vadd.f32 %v3885_v22, %v263_v47 }
 0x335   :  { %547 = vrot.lane.b32.xlu2 %v3157_v49, %s3657_s28  ;;  %v3159_v51 = vpop.eup %3158 }
 0x336   :  { %v528_v52 = vadd.f32 1.0, %v3159_v51 }
 0x338   :  { %3160 = vrcp.f32 %v528_v52  ;;  %v540_v60 = vand.u32 2147483648, %v528_v52  ;;  %vm534_vm11 = vweird.f32 %v528_v52  ;;  %v538_v61 = vand.u32 2147483647, %v528_v52 }
 0x339   :  { %3162 = vpow2.f32 %v2933_v54 }
 0x33a   :  { %v541_v63 = vor.u32 1.1754944e-38, %v540_v60  ;;  %vm539_vm13 = vcmp.eq.f32.partialorder %v538_v61, 8.507059e+37 }
 0x33e   :  { %v3161_v53 = vpop.eup %3160 }
 0x33f   :  { %v530_v55 = vmul.f32 %v3161_v53, %v528_v52  ;;  %v3163_v56 = vpop.eup %3162  ;;  %vm535_vm10 = vweird.f32 %v3161_v53 }
 0x340   :  { %v471_v58 = vadd.f32 1.0, %v3163_v56  ;;  %vm536_vm12 = vmor %vm534_vm11, %vm535_vm10 }
 0x341   :  { %v531_v39 = vsub.f32 1.0, %v530_v55 }
 0x342   :  { %3164 = vrcp.f32 %v471_v58  ;;  %v483_v13 = vand.u32 2147483648, %v471_v58  ;;  %vm477_vm15 = vweird.f32 %v471_v58  ;;  %v481_v14 = vand.u32 2147483647, %v471_v58 }
 0x343   :  { %v532_v57 = vmul.f32 %v3161_v53, %v531_v39 }
 0x344   :  { %v484_v16 = vor.u32 1.1754944e-38, %v483_v13  ;;  %vm482_vm2 = vcmp.eq.f32.partialorder %v481_v14, 8.507059e+37 }
 0x345   :  { %v533_v59 = vadd.f32 %v3161_v53, %v532_v57 }
 0x347   :  { %v537_v62 = vsel %vm536_vm12, %v3161_v53, %v533_v59  ;;  %v309_v53 = vadd.f32 %v3877_v19, %v3899_v37 }
 0x348   :  { %v542_v2 = vsel %vm539_vm13, %v541_v63, %v537_v62  ;;  %v3165_v3 = vpop.eup %3164 }
 0x349   :  { %v473_v5 = vmul.f32 %v3165_v3, %v471_v58  ;;  %vm478_vm14 = vweird.f32 %v3165_v3  ;;  %v545_v28 = vmul.f32 %v542_v2, %v3912_v24 }
 0x34a   :  { %vm479_vm1 = vmor %vm477_vm15, %vm478_vm14 }
 0x34b   :  { %v474_v10 = vsub.f32 1.0, %v473_v5 }
 0x34d   :  { %v475_v11 = vmul.f32 %v3165_v3, %v474_v10 }
 0x34f   :  { %v476_v12 = vadd.f32 %v3165_v3, %v475_v11 }
 0x351   :  { %v480_v15 = vsel %vm479_vm1, %v3165_v3, %v476_v12 }
 0x352   :  { %v485_v20 = vsel %vm482_vm2, %v484_v16, %v480_v15 }
 0x353   :  { %v488_v26 = vmul.f32 %v485_v20, %v3908_v17 }
 0x38f   :  { %v548_v0 = vpop.permute.xlu2 %547 }
 0x390   :  { %v550_v4 = vmul.f32 %v548_v0, %v542_v2 }
 0x392   :  { %552 = vrot.lane.b32.xlu0 %v550_v4, %s3669_s13 }
 0x3a6   :  { %v491_v18 = vpop.permute.xlu1 %490 }
 0x3a7   :  { %v493_v23 = vmul.f32 %v491_v18, %v485_v20 }
 0x3a9   :  { %495 = vrot.lane.b32.xlu2 %v493_v23, %s3669_s13 }
 0x403   :  { %v496_v27 = vpop.permute.xlu2 %495 }
 0x404   :  { %v3938_v30 = vadd.f32 %v496_v27, %v488_v26  ;;  %v553_v31 = vpop.permute.xlu0 %552 }
 0x405   :  { %v3940_v32 = vadd.f32 %v553_v31, %v545_v28 }
 0x406   :  { %3166 = vtanh.f32 %v3938_v30 }
 0x407   :  { %3168 = vtanh.f32 %v3940_v32 }
 0x40c   :  { %v3167_v34 = vpop.eup %3166 }
 0x40d   :  { %v3169_v40 = vpop.eup %3168  ;;  %501 = vrot.lane.b32.xlu2 %v3167_v34, %s3657_s28 }
 0x40e   :  { %558 = vrot.lane.b32.xlu0 %v3169_v40, %s3657_s28 }
 0x467   :  { %v502_v41 = vpop.permute.xlu2 %501 }
 0x468   :  { %v504_v17 = vmul.f32 %v502_v41, %v485_v20 }
 0x46a   :  { %v562_v42 = vpack.c.bf16 %v504_v17, %v504_v17 }
 0x46c   :  { %565 = vrot.lane.b32.xlu0 %v562_v42, %s3669_s13 }
 0x480   :  { %v559_v24 = vpop.permute.xlu0 %558 }
 0x481   :  { %v561_v43 = vmul.f32 %v559_v24, %v542_v2 }
 0x483   :  { %v563_v44 = vpack.c.bf16 %v561_v43, %v561_v43 }
 0x485   :  { %622 = vrot.lane.b32.xlu1 %v563_v44, %s3669_s13 }
 0x4de   :  { %v3948_v45 = vpop.permute.xlu0 %565 }
 0x4df   :  { %2936 = vmatmul.msk.bf16.vlgmr.msra.gmra.mxu2 %vm328_vm9, %v3948_v45 }
 0x4f7   :  { %v3952_v46 = vpop.permute.xlu1 %622 }
 0x4f8   :  { %2938 = vmatmul.msk.bf16.vlgmr.msra.gmra.mxu3 %vm328_vm9, %v3952_v46 }
 0x562   :  { %v579_v49 = vpop.f32.mrf.mxu2 }
 0x563   :  { %v583_v50 = vadd.f32 %v579_v49, %v264_v48 }
 0x565   :  { %3170 = vtanh.f32 %v583_v50  ;;  %v2937_v57 = vmul.f32 -1.442695, %v583_v50 }
 0x56a   :  { %v581_v51 = vpop.f32.mrf.mxu2 }
 0x56b   :  { %v3171_v52 = vpop.eup %3170 }
 0x56c   :  { %606 = vrot.lane.b32.xlu0 %v3171_v52, %s3657_s28 }
 0x57b   :  { %v636_v54 = vpop.f32.mrf.mxu3 }
 0x57c   :  { %v640_v55 = vadd.f32 %v636_v54, %v309_v53 }
 0x57e   :  { %3172 = vtanh.f32 %v640_v55  ;;  %v2939_v61 = vmul.f32 -1.442695, %v640_v55 }
 0x57f   :  { %3174 = vpow2.f32 %v2937_v57 }
 0x583   :  { %v638_v39 = vpop.f32.mrf.mxu3 }
 0x584   :  { %v3173_v56 = vpop.eup %3172  ;;  %v265_v39 = vpop.f32.mrf.mxu0 }
 0x585   :  { %663 = vrot.lane.b32.xlu1 %v3173_v56, %s3657_s28  ;;  %v3175_v58 = vpop.eup %3174  ;;  %v266_v56 = vadd.f32 %v3885_v22, %v265_v39 }
 0x586   :  { %v587_v59 = vadd.f32 1.0, %v3175_v58 }
 0x588   :  { %3176 = vrcp.f32 %v587_v59  ;;  %v599_v4 = vand.u32 2147483648, %v587_v59  ;;  %vm593_vm4 = vweird.f32 %v587_v59  ;;  %v597_v5 = vand.u32 2147483647, %v587_v59 }
 0x589   :  { %3178 = vpow2.f32 %v2939_v61 }
 0x58a   :  { %v600_v11 = vor.u32 1.1754944e-38, %v599_v4  ;;  %vm598_vm6 = vcmp.eq.f32.partialorder %v597_v5, 8.507059e+37 }
 0x58e   :  { %v3177_v60 = vpop.eup %3176 }
 0x58f   :  { %v589_v62 = vmul.f32 %v3177_v60, %v587_v59  ;;  %v3179_v2 = vpop.eup %3178  ;;  %vm594_vm3 = vweird.f32 %v3177_v60 }
 0x590   :  { %v644_v37 = vadd.f32 1.0, %v3179_v2  ;;  %vm595_vm5 = vmor %vm593_vm4, %vm594_vm3 }
 0x591   :  { %v590_v63 = vsub.f32 1.0, %v589_v62 }
 0x592   :  { %3180 = vrcp.f32 %v644_v37  ;;  %v656_v26 = vand.u32 2147483648, %v644_v37  ;;  %vm650_vm8 = vweird.f32 %v644_v37  ;;  %v654_v27 = vand.u32 2147483647, %v644_v37 }
 0x593   :  { %v591_v0 = vmul.f32 %v3177_v60, %v590_v63 }
 0x594   :  { %v657_v31 = vor.u32 1.1754944e-38, %v656_v26  ;;  %vm655_vm11 = vcmp.eq.f32.partialorder %v654_v27, 8.507059e+37 }
 0x595   :  { %v592_v3 = vadd.f32 %v3177_v60, %v591_v0 }
 0x597   :  { %v596_v10 = vsel %vm595_vm5, %v3177_v60, %v592_v3 }
 0x598   :  { %v601_v13 = vsel %vm598_vm6, %v600_v11, %v596_v10  ;;  %v3181_v15 = vpop.eup %3180 }
 0x599   :  { %v646_v16 = vmul.f32 %v3181_v15, %v644_v37  ;;  %vm651_vm7 = vweird.f32 %v3181_v15  ;;  %v604_v17 = vmul.f32 %v601_v13, %v3938_v30 }
 0x59a   :  { %vm652_vm10 = vmor %vm650_vm8, %vm651_vm7 }
 0x59b   :  { %v647_v18 = vsub.f32 1.0, %v646_v16 }
 0x59d   :  { %v648_v20 = vmul.f32 %v3181_v15, %v647_v18 }
 0x59f   :  { %v649_v23 = vadd.f32 %v3181_v15, %v648_v20 }
 0x5a1   :  { %v653_v28 = vsel %vm652_vm10, %v3181_v15, %v649_v23 }
 0x5a2   :  { %v658_v40 = vsel %vm655_vm11, %v657_v31, %v653_v28 }
 0x5a3   :  { %v661_v42 = vmul.f32 %v658_v40, %v3940_v32 }
 0x5de   :  { %v607_v12 = vpop.permute.xlu0 %606 }
 0x5df   :  { %v609_v14 = vmul.f32 %v607_v12, %v601_v13 }
 0x5e1   :  { %611 = vrot.lane.b32.xlu1 %v609_v14, %s3669_s13 }
 0x5f7   :  { %v664_v34 = vpop.permute.xlu1 %663 }
 0x5f8   :  { %v666_v41 = vmul.f32 %v664_v34, %v658_v40 }
 0x5fa   :  { %668 = vrot.lane.b32.xlu2 %v666_v41, %s3669_s13 }
 0x653   :  { %v612_v24 = vpop.permute.xlu1 %611 }
 0x654   :  { %v669_v43 = vpop.permute.xlu2 %668  ;;  %v3965_v44 = vadd.f32 %v612_v24, %v604_v17 }
 0x655   :  { %v3967_v47 = vadd.f32 %v669_v43, %v661_v42 }
 0x656   :  { %3182 = vtanh.f32 %v3965_v44 }
 0x657   :  { %3184 = vtanh.f32 %v3967_v47 }
 0x65c   :  { %v3183_v48 = vpop.eup %3182 }
 0x65d   :  { %v3185_v49 = vpop.eup %3184  ;;  %617 = vrot.lane.b32.xlu1 %v3183_v48, %s3657_s28 }
 0x65e   :  { %674 = vrot.lane.b32.xlu2 %v3185_v49, %s3657_s28 }
 0x6b8   :  { %v675_v50 = vpop.permute.xlu2 %674 }
 0x6b9   :  { %v677_v30 = vmul.f32 %v675_v50, %v658_v40 }
 0x6bb   :  { %v679_v51 = vpack.c.bf16 %v677_v30, %v677_v30 }
 0x6bd   :  { %738 = vrot.lane.b32.xlu0 %v679_v51, %s3669_s13 }
 0x6cf   :  { %v618_v32 = vpop.permute.xlu1 %617 }
 0x6d0   :  { %v620_v52 = vmul.f32 %v618_v32, %v601_v13 }
 0x6d2   :  { %v678_v53 = vpack.c.bf16 %v620_v52, %v620_v52 }
 0x6d4   :  { %681 = vrot.lane.b32.xlu2 %v678_v53, %s3669_s13 }
 0x72e   :  { %v3975_v54 = vpop.permute.xlu2 %681 }
 0x72f   :  { %v3977_v55 = vpop.permute.xlu0 %738  ;;  %2940 = vmatmul.msk.bf16.vlgmr.msrb.gmra.mxu2 %vm328_vm9, %v3975_v54 }
 0x730   :  { %2942 = vmatmul.msk.bf16.vlgmr.msrb.gmra.mxu3 %vm328_vm9, %v3977_v55 }
 0x7b2   :  { %v695_v57 = vpop.f32.mrf.mxu2 }
 0x7b3   :  { %v699_v58 = vadd.f32 %v695_v57, %v266_v56  ;;  %v752_v59 = vpop.f32.mrf.mxu3 }
 0x7b4   :  { %v756_v60 = vadd.f32 %v752_v59, %v3897_v36 }
 0x7b5   :  { %3186 = vtanh.f32 %v699_v58  ;;  %v2941_v2 = vmul.f32 -1.442695, %v699_v58 }
 0x7b6   :  { %3188 = vtanh.f32 %v756_v60  ;;  %v2943_v5 = vmul.f32 -1.442695, %v756_v60 }
 0x7b7   :  { %3190 = vpow2.f32 %v2941_v2  ;;  %v4009_v2 = vld [vmem:[#allocation7] sm:$0xff] }
 0x7ba   :  { %v697_v61 = vpop.f32.mrf.mxu2 }
 0x7bb   :  { %v3187_v62 = vpop.eup %3186  ;;  %v754_v63 = vpop.f32.mrf.mxu3 }
 0x7bc   :  { %v3189_v0 = vpop.eup %3188  ;;  %722 = vrot.lane.b32.xlu2 %v3187_v62, %s3657_s28  ;;  %v4001_v63 = vld [vmem:[#allocation8 + $0x8] sm:$0xff] }
 0x7bd   :  { %779 = vrot.lane.b32.xlu0 %v3189_v0, %s3657_s28  ;;  %v3191_v37 = vpop.eup %3190  ;;  %980 = vmatpush.bf16.msra.mxu0 %v4001_v63  ;;  %v4007_v0 = vld [vmem:[#allocation8] sm:$0xff] }
 0x7be   :  { %v703_v3 = vadd.f32 1.0, %v3191_v37  ;;  %967 = vmatpush.bf16.msra.mxu3 %v4001_v63 }
 0x7c0   :  { %3192 = vrcp.f32 %v703_v3  ;;  %v715_v15 = vand.u32 2147483648, %v703_v3  ;;  %vm709_vm13 = vweird.f32 %v703_v3  ;;  %v713_v16 = vand.u32 2147483647, %v703_v3 }
 0x7c1   :  { %3194 = vpow2.f32 %v2943_v5  ;;  %981 = vmatpush.bf16.msra.mxu0 %v4007_v0 }
 0x7c2   :  { %v716_v20 = vor.u32 1.1754944e-38, %v715_v15  ;;  %vm714_vm15 = vcmp.eq.f32.partialorder %v713_v16, 8.507059e+37  ;;  %968 = vmatpush.bf16.msra.mxu3 %v4007_v0 }
 0x7c6   :  { %v3193_v4 = vpop.eup %3192  ;;  %1057 = vmatpush.bf16.msrb.mxu3 %v3844_v7 }
 0x7c7   :  { %v705_v10 = vmul.f32 %v3193_v4, %v703_v3  ;;  %v3195_v12 = vpop.eup %3194  ;;  %vm710_vm12 = vweird.f32 %v3193_v4 }
 0x7c8   :  { %v760_v13 = vadd.f32 1.0, %v3195_v12  ;;  %vm711_vm14 = vmor %vm709_vm13, %vm710_vm12  ;;  %v304_v12 = vadd.f32 %v3877_v19, %v3894_v33 }
 0x7c9   :  { %v706_v36 = vsub.f32 1.0, %v705_v10 }
 0x7ca   :  { %3196 = vrcp.f32 %v760_v13  ;;  %v772_v17 = vand.u32 2147483648, %v760_v13  ;;  %vm766_vm2 = vweird.f32 %v760_v13  ;;  %v770_v42 = vand.u32 2147483647, %v760_v13  ;;  %1058 = vmatpush.bf16.msrb.mxu3 %v3852_v8 }
 0x7cb   :  { %v707_v11 = vmul.f32 %v3193_v4, %v706_v36 }
 0x7cc   :  { %v773_v43 = vor.u32 1.1754944e-38, %v772_v17  ;;  %vm771_vm4 = vcmp.eq.f32.partialorder %v770_v42, 8.507059e+37 }
 0x7cd   :  { %v708_v14 = vadd.f32 %v3193_v4, %v707_v11 }
 0x7cf   :  { %v712_v18 = vsel %vm711_vm14, %v3193_v4, %v708_v14  ;;  %v268_v4 = vpop.f32.mrf.mxu0 }
 0x7d0   :  { %v717_v26 = vsel %vm714_vm15, %v716_v20, %v712_v18  ;;  %v3197_v28 = vpop.eup %3196  ;;  %v269_v11 = vadd.f32 %v3885_v22, %v268_v4 }
 0x7d1   :  { %v762_v31 = vmul.f32 %v3197_v28, %v760_v13  ;;  %vm767_vm1 = vweird.f32 %v3197_v28  ;;  %v720_v30 = vmul.f32 %v717_v26, %v3965_v44 }
 0x7d2   :  { %vm768_vm3 = vmor %vm766_vm2, %vm767_vm1 }
 0x7d3   :  { %v763_v34 = vsub.f32 1.0, %v762_v31 }
 0x7d5   :  { %v764_v40 = vmul.f32 %v3197_v28, %v763_v34 }
 0x7d7   :  { %v765_v41 = vadd.f32 %v3197_v28, %v764_v40  ;;  %v4033_v5 = vpop.f32.mrf.mxu0 }
 0x7d9   :  { %v769_v24 = vsel %vm768_vm3, %v3197_v28, %v765_v41 }
 0x7da   :  { %v774_v49 = vsel %vm771_vm4, %v773_v43, %v769_v24 }
 0x7db   :  { %v777_v53 = vmul.f32 %v774_v49, %v3967_v47  ;;  %v4003_v47 = vld [vmem:[#allocation7 + $0x8] sm:$0xff] }
 0x7dc   :  { %993 = vmatpush.bf16.msra.mxu1 %v4003_v47  ;;  %935 = vmatpush.bf16.msra.mxu2 %v4003_v47 }
 0x7df   :  { %v4035_v10 = vpop.f32.mrf.mxu0 }
 0x7e0   :  { %994 = vmatpush.bf16.msra.mxu1 %v4009_v2  ;;  %936 = vmatpush.bf16.msra.mxu2 %v4009_v2 }
 0x7e4   :  { %1006 = vmatpush.bf16.msrb.mxu2 %v3828_v1 }
 0x7e7   :  { %v4037_v36 = vpop.f32.mrf.mxu0 }
 0x7e8   :  { %1007 = vmatpush.bf16.msrb.mxu2 %v3837_v6 }
 0x816   :  { %v723_v23 = vpop.permute.xlu2 %722 }
 0x817   :  { %v725_v27 = vmul.f32 %v723_v23, %v717_v26 }
 0x819   :  { %727 = vrot.lane.b32.xlu0 %v725_v27, %s3669_s13 }
 0x82f   :  { %v780_v48 = vpop.permute.xlu0 %779 }
 0x830   :  { %v782_v50 = vmul.f32 %v780_v48, %v774_v49 }
 0x832   :  { %784 = vrot.lane.b32.xlu1 %v782_v50, %s3669_s13 }
 0x88b   :  { %v728_v51 = vpop.permute.xlu0 %727 }
 0x88c   :  { %v3990_v32 = vadd.f32 %v728_v51, %v720_v30 }
 0x88e   :  { %3198 = vtanh.f32 %v3990_v32 }
 0x894   :  { %v3199_v52 = vpop.eup %3198 }
 0x895   :  { %733 = vrot.lane.b32.xlu0 %v3199_v52, %s3657_s28 }
 0x8a4   :  { %v785_v39 = vpop.permute.xlu1 %784 }
 0x8a5   :  { %v3995_v56 = vadd.f32 %v785_v39, %v777_v53 }
 0x8a7   :  { %3200 = vtanh.f32 %v3995_v56 }
 0x8ad   :  { %v3201_v57 = vpop.eup %3200 }
 0x8ae   :  { %790 = vrot.lane.b32.xlu1 %v3201_v57, %s3657_s28 }
 0x907   :  { %v734_v58 = vpop.permute.xlu0 %733 }
 0x908   :  { %v736_v44 = vmul.f32 %v734_v58, %v717_v26 }
 0x90a   :  { %v794_v59 = vpack.c.bf16 %v736_v44, %v736_v44 }
 0x90c   :  { %797 = vrot.lane.b32.xlu1 %v794_v59, %s3669_s13 }
 0x920   :  { %v791_v60 = vpop.permute.xlu1 %790 }
 0x921   :  { %v793_v61 = vmul.f32 %v791_v60, %v774_v49 }
 0x923   :  { %v795_v62 = vpack.c.bf16 %v793_v61, %v793_v61 }
 0x925   :  { %854 = vrot.lane.b32.xlu2 %v795_v62, %s3669_s13 }
 0x97e   :  { %v798_v37 = vpop.permute.xlu1 %797 }
 0x97f   :  { %v855_v3 = vpop.permute.xlu2 %854  ;;  %2944 = vmatmul.msk.bf16.vlgmr.msrb.gmra.mxu0 %vm328_vm9, %v798_v37 }
 0x980   :  { %2946 = vmatmul.msk.bf16.vlgmr.msrb.gmra.mxu1 %vm328_vm9, %v855_v3  ;;  %1115 = vmatpush.bf16.msrb.mxu0 %v4003_v47 }
 0x981   :  { %1135 = vmatpush.bf16.msrb.mxu1 %v4001_v63 }
 0x984   :  { %1116 = vmatpush.bf16.msrb.mxu0 %v4009_v2 }
 0x985   :  { %1136 = vmatpush.bf16.msrb.mxu1 %v4007_v0 }
 0x98f   :  { %2966 = vmatmul.msk.bf16.vlgmr.msra.gmra.mxu0 %vm328_vm9, %v855_v3 }
 0x990   :  { %2967 = vmatmul.msk.bf16.vlgmr.msra.gmra.mxu1 %vm328_vm9, %v798_v37  ;;  %1174 = vmatpush.bf16.msra.mxu0 %v3828_v1 }
 0x991   :  { %1225 = vmatpush.bf16.msra.mxu1 %v3844_v7 }
 0x994   :  { %1175 = vmatpush.bf16.msra.mxu0 %v3837_v6 }
 0x995   :  { %1226 = vmatpush.bf16.msra.mxu1 %v3852_v8 }
 0x9fc   :  { %v811_v13 = vpop.f32.mrf.mxu0 }
 0x9fd   :  { %v815_v1 = vadd.f32 %v811_v13, %v269_v11  ;;  %v868_v14 = vpop.f32.mrf.mxu1 }
 0x9fe   :  { %v872_v7 = vadd.f32 %v868_v14, %v304_v12 }
 0x9ff   :  { %3202 = vtanh.f32 %v815_v1  ;;  %v2945_v34 = vmul.f32 -1.442695, %v815_v1 }
 0xa00   :  { %3204 = vtanh.f32 %v872_v7  ;;  %v2947_v33 = vmul.f32 -1.442695, %v872_v7 }
 0xa02   :  { %3206 = vpow2.f32 %v2947_v33 }
 0xa04   :  { %v813_v6 = vpop.f32.mrf.mxu0 }
 0xa05   :  { %v3203_v15 = vpop.eup %3202  ;;  %v870_v16 = vpop.f32.mrf.mxu1 }
 0xa06   :  { %v3205_v18 = vpop.eup %3204  ;;  %838 = vrot.lane.b32.xlu1 %v3203_v15, %s3657_s28 }
 0xa07   :  { %895 = vrot.lane.b32.xlu2 %v3205_v18, %s3657_s28 }
 0xa08   :  { %v3207_v27 = vpop.eup %3206 }
 0xa09   :  { %v876_v28 = vadd.f32 1.0, %v3207_v27 }
 0xa0b   :  { %3208 = vrcp.f32 %v876_v28  ;;  %v888_v48 = vand.u32 2147483648, %v876_v28  ;;  %vm882_vm6 = vweird.f32 %v876_v28  ;;  %v886_v49 = vand.u32 2147483647, %v876_v28 }
 0xa0c   :  { %v4044_v20 = vpop.f32.mrf.mxu0  ;;  %3210 = vpow2.f32 %v2945_v34  ;;  %v3395_v34 = vld [vmem:[%s4663_s22] sm:$0xff] }
 0xa0d   :  { %v4046_v23 = vpop.f32.mrf.mxu1  ;;  %v889_v30 = vor.u32 1.1754944e-38, %v888_v48  ;;  %vm887_vm8 = vcmp.eq.f32.partialorder %v886_v49, 8.507059e+37 }
 0xa11   :  { %v3209_v31 = vpop.eup %3208 }
 0xa12   :  { %v878_v40 = vmul.f32 %v3209_v31, %v876_v28  ;;  %v3211_v17 = vpop.eup %3210  ;;  %vm883_vm5 = vweird.f32 %v3209_v31 }
 0xa13   :  { %v819_v24 = vadd.f32 1.0, %v3211_v17  ;;  %vm884_vm7 = vmor %vm882_vm6, %vm883_vm5 }
 0xa14   :  { %v985_v26 = vpop.f32.mrf.mxu0  ;;  %v879_v41 = vsub.f32 1.0, %v878_v40  ;;  %v4091_v40 = vld [vmem:[%s4642_s9] ss:$0 sm:$0xff] }
 0xa15   :  { %v998_v19 = vpop.f32.mrf.mxu1  ;;  %3212 = vrcp.f32 %v819_v24  ;;  %v831_v60 = vand.u32 2147483648, %v819_v24  ;;  %vm825_vm11 = vweird.f32 %v819_v24  ;;  %v829_v61 = vand.u32 2147483647, %v819_v24 }
 0xa16   :  { %v880_v42 = vmul.f32 %v3209_v31, %v879_v41 }
 0xa17   :  { %v832_v37 = vor.u32 1.1754944e-38, %v831_v60  ;;  %vm830_vm13 = vcmp.eq.f32.partialorder %v829_v61, 8.507059e+37 }
 0xa18   :  { %v881_v43 = vadd.f32 %v3209_v31, %v880_v42 }
 0xa1a   :  { %v885_v50 = vsel %vm884_vm7, %v3209_v31, %v881_v43  ;;  %v3394_v31 = vld [vmem:[%s4663_s22 + $0x8] sm:$0xff] }
 0xa1b   :  { %v890_v52 = vsel %vm887_vm8, %v889_v30, %v885_v50  ;;  %v3213_v53 = vpop.eup %3212 }
 0xa1c   :  { %v821_v57 = vmul.f32 %v3213_v53, %v819_v24  ;;  %vm826_vm10 = vweird.f32 %v3213_v53  ;;  %v893_v1 = vmul.f32 %v890_v52, %v3995_v56  ;;  %v271_v24 = vadd.f32 %v3885_v22, %v4033_v5 }
 0xa1d   :  { %vm827_vm12 = vmor %vm825_vm11, %vm826_vm10 }
 0xa1e   :  { %v822_v58 = vsub.f32 1.0, %v821_v57 }
 0xa20   :  { %v823_v44 = vmul.f32 %v3213_v53, %v822_v58 }
 0xa22   :  { %v824_v59 = vadd.f32 %v3213_v53, %v823_v44 }
 0xa24   :  { %v828_v62 = vsel %vm827_vm12, %v3213_v53, %v824_v59 }
 0xa25   :  { %v833_v4 = vsel %vm830_vm13, %v832_v37, %v828_v62 }
 0xa26   :  { %v836_v12 = vmul.f32 %v833_v4, %v3990_v32 }
 0xa61   :  { %v896_v51 = vpop.permute.xlu2 %895 }
 0xa62   :  { %v898_v39 = vmul.f32 %v896_v51, %v890_v52 }
 0xa64   :  { %900 = vrot.lane.b32.xlu0 %v898_v39, %s3669_s13 }
 0xa78   :  { %v839_v3 = vpop.permute.xlu1 %838 }
 0xa79   :  { %v841_v11 = vmul.f32 %v839_v3, %v833_v4 }
 0xa7b   :  { %843 = vrot.lane.b32.xlu2 %v841_v11, %s3669_s13 }
 0xad5   :  { %v844_v13 = vpop.permute.xlu2 %843 }
 0xad6   :  { %v4052_v14 = vadd.f32 %v844_v13, %v836_v12  ;;  %v901_v7 = vpop.permute.xlu0 %900 }
 0xad7   :  { %v4054_v6 = vadd.f32 %v901_v7, %v893_v1 }
 0xad8   :  { %3214 = vtanh.f32 %v4052_v14 }
 0xad9   :  { %3216 = vtanh.f32 %v4054_v6 }
 0xade   :  { %v3215_v15 = vpop.eup %3214 }
 0xadf   :  { %v3217_v16 = vpop.eup %3216  ;;  %849 = vrot.lane.b32.xlu2 %v3215_v15, %s3657_s28 }
 0xae0   :  { %906 = vrot.lane.b32.xlu0 %v3217_v16, %s3657_s28 }
 0xb39   :  { %v850_v18 = vpop.permute.xlu2 %849 }
 0xb3a   :  { %v852_v32 = vmul.f32 %v850_v18, %v833_v4 }
 0xb3c   :  { %v910_v26 = vpack.c.bf16 %v852_v32, %v852_v32 }
 0xb3e   :  { %912 = vrot.lane.b32.xlu0 %v910_v26, %s3669_s13 }
 0xb52   :  { %v907_v56 = vpop.permute.xlu0 %906 }
 0xb53   :  { %v909_v19 = vmul.f32 %v907_v56, %v890_v52 }
 0xb55   :  { %v942_v33 = vpack.c.bf16 %v909_v19, %v909_v19 }
 0xb57   :  { %944 = vrot.lane.b32.xlu1 %v942_v33, %s3669_s13 }
 0xbb0   :  { %v913_v27 = vpop.permute.xlu0 %912 }
 0xbb1   :  { %2956 = vmatmul.msk.bf16.vlgmr.msra.gmra.mxu2 %vm328_vm9, %v913_v27 }
 0xbb2   :  { %1148 = vmatpush.bf16.msra.mxu2 %v4001_v63 }
 0xbb6   :  { %1149 = vmatpush.bf16.msra.mxu2 %v4007_v0 }
 0xbc1   :  { %2968 = vmatmul.msk.bf16.vlgmr.msrb.gmra.mxu2 %vm328_vm9, %v913_v27 }
 0xbc2   :  { %1283 = vmatpush.bf16.msrb.mxu2 %v4003_v47 }
 0xbc6   :  { %1284 = vmatpush.bf16.msrb.mxu2 %v4009_v2 }
 0xbc9   :  { %v945_v28 = vpop.permute.xlu1 %944 }
 0xbca   :  { %2965 = vmatmul.msk.bf16.vlgmr.msra.gmra.mxu3 %vm328_vm9, %v945_v28 }
 0xbcb   :  { %1161 = vmatpush.bf16.msra.mxu3 %v4003_v47 }
 0xbcf   :  { %1162 = vmatpush.bf16.msra.mxu3 %v4009_v2 }
 0xbd1   :  { %2974 = vmatmul.msk.bf16.vlgmr.msra.gmra.mxu2 %vm328_vm9, %v3977_v55  ;;  %v3396_v55 = vld [vmem:[%s4638_s5 + $0x8] sm:$0xff] }
 0xbd2   :  { %1342 = vmatpush.bf16.msra.mxu2 %v3394_v31 }
 0xbd6   :  { %1343 = vmatpush.bf16.msra.mxu2 %v3395_v34 }
 0xbda   :  { %2970 = vmatmul.msk.bf16.vlgmr.msrb.gmra.mxu3 %vm328_vm9, %v945_v28 }
 0xbdb   :  { %1303 = vmatpush.bf16.msrb.mxu3 %v4001_v63 }
 0xbdf   :  { %1304 = vmatpush.bf16.msrb.mxu3 %v4007_v0 }
 0xbea   :  { %2975 = vmatmul.msk.bf16.vlgmr.msra.gmra.mxu3 %vm328_vm9, %v3975_v54 }
 0xbeb   :  { %1393 = vmatpush.bf16.msra.mxu3 %v3396_v55 }
 0xbef   :  { %1394 = vmatpush.bf16.msra.mxu3 %v3852_v8 }
 0xc34   :  { %v938_v41 = vpop.f32.mrf.mxu2 }
 0xc35   :  { %v984_v17 = vadd.f32 %v4044_v20, %v938_v41 }
 0xc37   :  { %v4095_v42 = vadd.f32 %v4091_v40, %v984_v17 }
 0xc39   :  { %1519 = vst.msk [vmem:[#allocation16 + $0x20] sm:$0xff] %vm328_vm9, %v4095_v42 }
 0xc3c   :  { %v940_v54 = vpop.f32.mrf.mxu2 }
 0xc44   :  { %v1009_v43 = vpop.f32.mrf.mxu2 }
 0xc45   :  { %v1013_v8 = vadd.f32 %v1009_v43, %v271_v24 }
 0xc47   :  { %3218 = vtanh.f32 %v1013_v8  ;;  %v2969_v44 = vmul.f32 -1.442695, %v1013_v8 }
 0xc4c   :  { %v1011_v48 = vpop.f32.mrf.mxu2 }
 0xc4d   :  { %v3219_v49 = vpop.eup %3218  ;;  %v970_v50 = vpop.f32.mrf.mxu3 }
 0xc4e   :  { %v997_v30 = vadd.f32 %v4046_v23, %v970_v50  ;;  %1036 = vrot.lane.b32.xlu0 %v3219_v49, %s3657_s28 }
 0xc50   :  { %v4104_v20 = vadd.f32 %v4091_v40, %v997_v30 }
 0xc52   :  { %1518 = vst.msk [vmem:[#allocation16 + $0x18] sm:$0xff] %vm328_vm9, %v4104_v20 }
 0xc54   :  { %v4108_v51 = vpop.f32.mrf.mxu2 }
 0xc55   :  { %v972_v52 = vpop.f32.mrf.mxu3 }
 0xc5c   :  { %v1153_v22 = vpop.f32.mrf.mxu2 }
 0xc5d   :  { %v1060_v5 = vpop.f32.mrf.mxu3 }
 0xc5e   :  { %v1064_v53 = vadd.f32 %v1060_v5, %v3891_v29 }
 0xc60   :  { %3220 = vtanh.f32 %v1064_v53  ;;  %v2971_v62 = vmul.f32 -1.442695, %v1064_v53 }
 0xc61   :  { %3222 = vpow2.f32 %v2969_v44 }
 0xc65   :  { %v1062_v39 = vpop.f32.mrf.mxu3 }
 0xc66   :  { %v3221_v57 = vpop.eup %3220 }
 0xc67   :  { %1087 = vrot.lane.b32.xlu1 %v3221_v57, %s3657_s28  ;;  %v3223_v59 = vpop.eup %3222 }
 0xc68   :  { %v1017_v60 = vadd.f32 1.0, %v3223_v59 }
 0xc6a   :  { %3224 = vrcp.f32 %v1017_v60  ;;  %v1029_v13 = vand.u32 2147483648, %v1017_v60  ;;  %vm1023_vm15 = vweird.f32 %v1017_v60  ;;  %v1027_v1 = vand.u32 2147483647, %v1017_v60 }
 0xc6b   :  { %3226 = vpow2.f32 %v2971_v62 }
 0xc6c   :  { %v1030_v15 = vor.u32 1.1754944e-38, %v1029_v13  ;;  %vm1028_vm2 = vcmp.eq.f32.partialorder %v1027_v1, 8.507059e+37 }
 0xc6d   :  { %v4112_v23 = vpop.f32.mrf.mxu3 }
 0xc70   :  { %v3225_v61 = vpop.eup %3224 }
 0xc71   :  { %v1019_v37 = vmul.f32 %v3225_v61, %v1017_v60  ;;  %v3227_v29 = vpop.eup %3226  ;;  %vm1024_vm14 = vweird.f32 %v3225_v61 }
 0xc72   :  { %v1068_v11 = vadd.f32 1.0, %v3227_v29  ;;  %vm1025_vm1 = vmor %vm1023_vm15, %vm1024_vm14 }
 0xc73   :  { %v1020_v3 = vsub.f32 1.0, %v1019_v37 }
 0xc74   :  { %3228 = vrcp.f32 %v1068_v11  ;;  %v1080_v28 = vand.u32 2147483648, %v1068_v11  ;;  %vm1074_vm4 = vweird.f32 %v1068_v11  ;;  %v1078_v31 = vand.u32 2147483647, %v1068_v11 }
 0xc75   :  { %v1166_v58 = vpop.f32.mrf.mxu3  ;;  %v1021_v4 = vmul.f32 %v3225_v61, %v1020_v3  ;;  %v3398_v3 = vld [vmem:[%s4639_s6] ss:$0 sm:$0xff] }
 0xc76   :  { %v1081_v55 = vor.u32 1.1754944e-38, %v1080_v28  ;;  %vm1079_vm6 = vcmp.eq.f32.partialorder %v1078_v31, 8.507059e+37 }
 0xc77   :  { %v1022_v12 = vadd.f32 %v3225_v61, %v1021_v4  ;;  %v299_v4 = vadd.f32 %v3398_v3, %v3888_v25 }
 0xc79   :  { %v1026_v7 = vsel %vm1025_vm1, %v3225_v61, %v1022_v12 }
 0xc7a   :  { %v1031_v18 = vsel %vm1028_vm2, %v1030_v15, %v1026_v7  ;;  %v3229_v26 = vpop.eup %3228 }
 0xc7b   :  { %v1070_v56 = vmul.f32 %v3229_v26, %v1068_v11  ;;  %vm1075_vm3 = vweird.f32 %v3229_v26  ;;  %v1034_v24 = vmul.f32 %v1031_v18, %v4052_v14 }
 0xc7c   :  { %vm1076_vm5 = vmor %vm1074_vm4, %vm1075_vm3 }
 0xc7d   :  { %v1071_v19 = vsub.f32 1.0, %v1070_v56 }
 0xc7f   :  { %v1072_v33 = vmul.f32 %v3229_v26, %v1071_v19 }
 0xc81   :  { %v1073_v27 = vadd.f32 %v3229_v26, %v1072_v33 }
 0xc83   :  { %v1077_v34 = vsel %vm1076_vm5, %v3229_v26, %v1073_v27 }
 0xc84   :  { %v1082_v17 = vsel %vm1079_vm6, %v1081_v55, %v1077_v34 }
 0xc85   :  { %v1085_v43 = vmul.f32 %v1082_v17, %v4054_v6 }
 0xcc0   :  { %v1037_v16 = vpop.permute.xlu0 %1036 }
 0xcc1   :  { %v1039_v32 = vmul.f32 %v1037_v16, %v1031_v18 }
 0xcc3   :  { %1041 = vrot.lane.b32.xlu1 %v1039_v32, %s3669_s13 }
 0xcd9   :  { %v1088_v41 = vpop.permute.xlu1 %1087 }
 0xcda   :  { %v1090_v54 = vmul.f32 %v1088_v41, %v1082_v17 }
 0xcdc   :  { %1092 = vrot.lane.b32.xlu2 %v1090_v54, %s3669_s13 }
 0xd35   :  { %v1042_v8 = vpop.permute.xlu1 %1041 }
 0xd36   :  { %v1093_v48 = vpop.permute.xlu2 %1092  ;;  %v4118_v49 = vadd.f32 %v1042_v8, %v1034_v24 }
 0xd37   :  { %v4120_v50 = vadd.f32 %v1093_v48, %v1085_v43 }
 0xd38   :  { %3230 = vtanh.f32 %v4118_v49 }
 0xd39   :  { %3232 = vtanh.f32 %v4120_v50 }
 0xd3e   :  { %v3231_v30 = vpop.eup %3230 }
 0xd3f   :  { %v3233_v52 = vpop.eup %3232  ;;  %1047 = vrot.lane.b32.xlu1 %v3231_v30, %s3657_s28 }
 0xd40   :  { %1098 = vrot.lane.b32.xlu2 %v3233_v52, %s3657_s28 }
 0xd9a   :  { %v1099_v22 = vpop.permute.xlu2 %1098 }
 0xd9b   :  { %v1101_v14 = vmul.f32 %v1099_v22, %v1082_v17 }
 0xd9d   :  { %v1122_v5 = vpack.c.bf16 %v1101_v14, %v1101_v14 }
 0xd9f   :  { %1124 = vrot.lane.b32.xlu0 %v1122_v5, %s3669_s13 }
 0xdb1   :  { %v1048_v6 = vpop.permute.xlu1 %1047 }
 0xdb2   :  { %v1050_v53 = vmul.f32 %v1048_v6, %v1031_v18 }
 0xdb4   :  { %v1102_v39 = vpack.c.bf16 %v1050_v53, %v1050_v53 }
 0xdb6   :  { %1104 = vrot.lane.b32.xlu2 %v1102_v39, %s3669_s13 }
 0xe10   :  { %v1105_v57 = vpop.permute.xlu2 %1104 }
 0xe11   :  { %v1125_v58 = vpop.permute.xlu0 %1124  ;;  %2972 = vmatmul.msk.bf16.vlgmr.msrb.gmra.mxu0 %vm328_vm9, %v1105_v57 }
 0xe12   :  { %2973 = vmatmul.msk.bf16.vlgmr.msrb.gmra.mxu1 %vm328_vm9, %v1125_v58  ;;  %1316 = vmatpush.bf16.msrb.mxu0 %v4001_v63 }
 0xe13   :  { %1329 = vmatpush.bf16.msrb.mxu1 %v4003_v47 }
 0xe16   :  { %1317 = vmatpush.bf16.msrb.mxu0 %v4007_v0 }
 0xe17   :  { %1330 = vmatpush.bf16.msrb.mxu1 %v4009_v2 }
 0xe21   :  { %2976 = vmatmul.msk.bf16.vlgmr.msra.gmra.mxu0 %vm328_vm9, %v1105_v57 }
 0xe22   :  { %2978 = vmatmul.msk.bf16.vlgmr.msra.gmra.mxu1 %vm328_vm9, %v1125_v58  ;;  %1451 = vmatpush.bf16.msra.mxu0 %v4003_v47 }
 0xe23   :  { %1471 = vmatpush.bf16.msra.mxu1 %v4001_v63 }
 0xe26   :  { %1452 = vmatpush.bf16.msra.mxu0 %v4009_v2 }
 0xe27   :  { %1472 = vmatpush.bf16.msra.mxu1 %v4007_v0 }
 0xe31   :  { %2982 = vmatmul.msk.bf16.vlgmr.msrb.gmra.mxu0 %vm328_vm9, %v3952_v46 }
 0xe32   :  { %2983 = vmatmul.msk.bf16.vlgmr.msrb.gmra.mxu1 %vm328_vm9, %v3948_v45 }
 0xe8e   :  { %v1118_v44 = vpop.f32.mrf.mxu0 }
 0xe8f   :  { %v1152_v59 = vadd.f32 %v4108_v51, %v1118_v44  ;;  %v1138_v60 = vpop.f32.mrf.mxu1  ;;  %v4159_v51 = vld [vmem:[%s4665_s0] ss:$0 sm:$0xff] }
 0xe90   :  { %v1165_v61 = vadd.f32 %v4112_v23, %v1138_v60  ;;  %v274_v23 = vadd.f32 %v4159_v51, %v4035_v10 }
 0xe91   :  { %v4147_v62 = vadd.f32 %v4091_v40, %v1152_v59 }
 0xe92   :  { %v4150_v37 = vadd.f32 %v4091_v40, %v1165_v61 }
 0xe93   :  { %1520 = vst.msk [vmem:[#allocation16 + $0x28] sm:$0xff] %vm328_vm9, %v4147_v62 }
 0xe94   :  { %1517 = vst.msk [vmem:[#allocation16 + $0x10] sm:$0xff] %vm328_vm9, %v4150_v37 }
 0xe96   :  { %v1120_v46 = vpop.f32.mrf.mxu0 }
 0xe97   :  { %v1140_v45 = vpop.f32.mrf.mxu1 }
 0xe9e   :  { %v1177_v29 = vpop.f32.mrf.mxu0 }
 0xe9f   :  { %v1181_v11 = vadd.f32 %v1177_v29, %v274_v23  ;;  %v1228_v12 = vpop.f32.mrf.mxu1 }
 0xea0   :  { %v1232_v13 = vadd.f32 %v1228_v12, %v299_v4 }
 0xea1   :  { %3234 = vtanh.f32 %v1181_v11  ;;  %v2977_v26 = vmul.f32 -1.442695, %v1181_v11 }
 0xea2   :  { %3236 = vtanh.f32 %v1232_v13  ;;  %v2979_v27 = vmul.f32 -1.442695, %v1232_v13 }
 0xea3   :  { %3238 = vpow2.f32 %v2977_v26 }
 0xea6   :  { %v1179_v1 = vpop.f32.mrf.mxu0 }
 0xea7   :  { %v3235_v7 = vpop.eup %3234  ;;  %v1230_v15 = vpop.f32.mrf.mxu1 }
 0xea8   :  { %v3237_v16 = vpop.eup %3236  ;;  %1204 = vrot.lane.b32.xlu2 %v3235_v7, %s3657_s28 }
 0xea9   :  { %1255 = vrot.lane.b32.xlu0 %v3237_v16, %s3657_s28  ;;  %v3239_v56 = vpop.eup %3238 }
 0xeaa   :  { %v1185_v19 = vadd.f32 1.0, %v3239_v56 }
 0xeac   :  { %3240 = vrcp.f32 %v1185_v19  ;;  %v1197_v54 = vand.u32 2147483648, %v1185_v19  ;;  %vm1191_vm8 = vweird.f32 %v1185_v19  ;;  %v1195_v24 = vand.u32 2147483647, %v1185_v19 }
 0xead   :  { %3242 = vpow2.f32 %v2979_v27 }
 0xeae   :  { %v4169_v10 = vpop.f32.mrf.mxu0  ;;  %v1198_v8 = vor.u32 1.1754944e-38, %v1197_v54  ;;  %vm1196_vm11 = vcmp.eq.f32.partialorder %v1195_v24, 8.507059e+37 }
 0xeaf   :  { %v4171_v18 = vpop.f32.mrf.mxu1 }
 0xeb2   :  { %v3241_v33 = vpop.eup %3240 }
 0xeb3   :  { %v1187_v28 = vmul.f32 %v3241_v33, %v1185_v19  ;;  %v3243_v55 = vpop.eup %3242  ;;  %vm1192_vm7 = vweird.f32 %v3241_v33 }
 0xeb4   :  { %v1236_v41 = vadd.f32 1.0, %v3243_v55  ;;  %vm1193_vm10 = vmor %vm1191_vm8, %vm1192_vm7 }
 0xeb5   :  { %v1188_v31 = vsub.f32 1.0, %v1187_v28 }
 0xeb6   :  { %v1321_v32 = vpop.f32.mrf.mxu0  ;;  %3244 = vrcp.f32 %v1236_v41  ;;  %v1248_v39 = vand.u32 2147483648, %v1236_v41  ;;  %vm1242_vm13 = vweird.f32 %v1236_v41  ;;  %v1246_v57 = vand.u32 2147483647, %v1236_v41 }
 0xeb7   :  { %v1334_v25 = vpop.f32.mrf.mxu1  ;;  %v1189_v34 = vmul.f32 %v3241_v33, %v1188_v31 }
 0xeb8   :  { %v1249_v44 = vor.u32 1.1754944e-38, %v1248_v39  ;;  %vm1247_vm15 = vcmp.eq.f32.partialorder %v1246_v57, 8.507059e+37 }
 0xeb9   :  { %v1190_v17 = vadd.f32 %v3241_v33, %v1189_v34 }
 0xebb   :  { %v1194_v43 = vsel %vm1193_vm10, %v3241_v33, %v1190_v17 }
 0xebc   :  { %v1199_v30 = vsel %vm1196_vm11, %v1198_v8, %v1194_v43  ;;  %v3245_v22 = vpop.eup %3244 }
 0xebd   :  { %v1238_v14 = vmul.f32 %v3245_v22, %v1236_v41  ;;  %vm1243_vm12 = vweird.f32 %v3245_v22  ;;  %v1202_v46 = vmul.f32 %v1199_v30, %v4118_v49 }
 0xebe   :  { %vm1244_vm14 = vmor %vm1242_vm13, %vm1243_vm12 }
 0xebf   :  { %v1239_v5 = vsub.f32 1.0, %v1238_v14 }
 0xec1   :  { %v1240_v6 = vmul.f32 %v3245_v22, %v1239_v5 }
 0xec3   :  { %v1241_v53 = vadd.f32 %v3245_v22, %v1240_v6 }
 0xec5   :  { %v1245_v58 = vsel %vm1244_vm14, %v3245_v22, %v1241_v53 }
 0xec6   :  { %v1250_v60 = vsel %vm1247_vm15, %v1249_v44, %v1245_v58 }
 0xec7   :  { %v1253_v4 = vmul.f32 %v1250_v60, %v4120_v50 }
 0xf02   :  { %v1205_v48 = vpop.permute.xlu2 %1204 }
 0xf03   :  { %v1207_v52 = vmul.f32 %v1205_v48, %v1199_v30 }
 0xf05   :  { %1209 = vrot.lane.b32.xlu0 %v1207_v52, %s3669_s13 }
 0xf1b   :  { %v1256_v59 = vpop.permute.xlu0 %1255 }
 0xf1c   :  { %v1258_v61 = vmul.f32 %v1256_v59, %v1250_v60 }
 0xf1e   :  { %1260 = vrot.lane.b32.xlu1 %v1258_v61, %s3669_s13 }
 0xf77   :  { %v1210_v45 = vpop.permute.xlu0 %1209 }
 0xf78   :  { %v4176_v23 = vadd.f32 %v1210_v45, %v1202_v46 }
 0xf7a   :  { %3246 = vtanh.f32 %v4176_v23 }
 0xf80   :  { %v3247_v3 = vpop.eup %3246 }
 0xf81   :  { %1215 = vrot.lane.b32.xlu0 %v3247_v3, %s3657_s28 }
 0xf90   :  { %v1261_v29 = vpop.permute.xlu1 %1260 }
 0xf91   :  { %v4181_v11 = vadd.f32 %v1261_v29, %v1253_v4 }
 0xf93   :  { %3248 = vtanh.f32 %v4181_v11 }
 0xf99   :  { %v3249_v12 = vpop.eup %3248 }
 0xf9a   :  { %1266 = vrot.lane.b32.xlu1 %v3249_v12, %s3657_s28 }
 0xff3   :  { %v1216_v13 = vpop.permute.xlu0 %1215 }
 0xff4   :  { %v1218_v49 = vmul.f32 %v1216_v13, %v1199_v30 }
 0xff6   :  { %v1270_v1 = vpack.c.bf16 %v1218_v49, %v1218_v49 }
 0xff8   :  { %1272 = vrot.lane.b32.xlu1 %v1270_v1, %s3669_s13 }
0x100c   :  { %v1267_v7 = vpop.permute.xlu1 %1266 }
0x100d   :  { %v1269_v15 = vmul.f32 %v1267_v7, %v1250_v60 }
0x100f   :  { %v1290_v16 = vpack.c.bf16 %v1269_v15, %v1269_v15 }
0x1011   :  { %1292 = vrot.lane.b32.xlu2 %v1290_v16, %s3669_s13 }
0x106a   :  { %v1273_v32 = vpop.permute.xlu1 %1272 }
0x106b   :  { %v1293_v50 = vpop.permute.xlu2 %1292  ;;  %2980 = vmatmul.msk.bf16.vlgmr.msrb.gmra.mxu2 %vm328_vm9, %v1273_v32 }
0x106c   :  { %2981 = vmatmul.msk.bf16.vlgmr.msrb.gmra.mxu3 %vm328_vm9, %v1293_v50  ;;  %1484 = vmatpush.bf16.msrb.mxu2 %v4001_v63 }
0x106d   :  { %1497 = vmatpush.bf16.msrb.mxu3 %v4003_v47 }
0x1070   :  { %1485 = vmatpush.bf16.msrb.mxu2 %v4007_v0 }
0x1071   :  { %1498 = vmatpush.bf16.msrb.mxu3 %v4009_v2 }
0x107b   :  { %2984 = vmatmul.msk.bf16.vlgmr.msra.gmra.mxu2 %vm328_vm9, %v1273_v32 }
0x107c   :  { %2986 = vmatmul.msk.bf16.vlgmr.msra.gmra.mxu3 %vm328_vm9, %v1293_v50 }
0x108b   :  { %2990 = vmatmul.msk.bf16.vlgmr.msrb.gmra.mxu2 %vm328_vm9, %v3918_v35 }
0x108c   :  { %2991 = vmatmul.msk.bf16.vlgmr.msrb.gmra.mxu3 %vm328_vm9, %v3920_v38 }
0x10ee   :  { %v1286_v25 = vpop.f32.mrf.mxu2 }
0x10ef   :  { %v1320_v26 = vadd.f32 %v4169_v10, %v1286_v25  ;;  %v1306_v63 = vpop.f32.mrf.mxu3  ;;  %v276_v10 = vadd.f32 %v4159_v51, %v4037_v36 }
0x10f0   :  { %v1333_v47 = vadd.f32 %v4171_v18, %v1306_v63 }
0x10f1   :  { %v4202_v0 = vadd.f32 %v4091_v40, %v1320_v26 }
0x10f2   :  { %v4205_v2 = vadd.f32 %v4091_v40, %v1333_v47 }
0x10f3   :  { %1521 = vst.msk [vmem:[#allocation16 + $0x30] sm:$0xff] %vm328_vm9, %v4202_v0 }
0x10f4   :  { %1516 = vst.msk [vmem:[#allocation16 + $0x8] sm:$0xff] %vm328_vm9, %v4205_v2 }
0x10f6   :  { %v1288_v35 = vpop.f32.mrf.mxu2 }
0x10f7   :  { %v1308_v38 = vpop.f32.mrf.mxu3 }
0x10fe   :  { %v1345_v56 = vpop.f32.mrf.mxu2 }
0x10ff   :  { %v1349_v19 = vadd.f32 %v1345_v56, %v276_v10  ;;  %v1396_v18 = vpop.f32.mrf.mxu3 }
0x1100   :  { %v1400_v33 = vadd.f32 %v1396_v18, %v3880_v21  ;;  %v3109_v18 = vld [vmem:[#allocation13 + $0x8] sm:$0xff] }
0x1101   :  { %3250 = vtanh.f32 %v1349_v19  ;;  %v2985_v43 = vmul.f32 -1.442695, %v1349_v19  ;;  %1631 = vmatpush.bf16.msrb.mxu1 %v3109_v18 }
0x1102   :  { %3252 = vtanh.f32 %v1400_v33  ;;  %v2987_v17 = vmul.f32 -1.442695, %v1400_v33  ;;  %v4230_v33 = vld [vmem:[#allocation11 + $0x8] sm:$0xff] }
0x1103   :  { %1672 = vmatpush.bf16.msra.mxu2 %v4230_v33 }
0x1104   :  { %3254 = vpow2.f32 %v2987_v17 }
0x1106   :  { %v1347_v27 = vpop.f32.mrf.mxu2 }
0x1107   :  { %v3251_v28 = vpop.eup %3250  ;;  %v1398_v31 = vpop.f32.mrf.mxu3  ;;  %v3108_v27 = vld [vmem:[#allocation13] sm:$0xff] }
0x1108   :  { %v3253_v34 = vpop.eup %3252  ;;  %1372 = vrot.lane.b32.xlu1 %v3251_v28, %s3657_s28  ;;  %1632 = vmatpush.bf16.msrb.mxu1 %v3108_v27  ;;  %v3105_v28 = vld [vmem:[#allocation10 + $0x8] sm:$0xff]  ;;  %v4233_v31 = vld [vmem:[#allocation11] sm:$0xff] }
0x1109   :  { %1423 = vrot.lane.b32.xlu2 %v3253_v34, %s3657_s28  ;;  %1587 = vmatpush.bf16.msrb.mxu0 %v3105_v28  ;;  %v3104_v34 = vld [vmem:[#allocation10] sm:$0xff] }
0x110a   :  { %v3255_v54 = vpop.eup %3254  ;;  %1673 = vmatpush.bf16.msra.mxu2 %v4233_v31 }
0x110b   :  { %v1404_v21 = vadd.f32 1.0, %v3255_v54 }
0x110d   :  { %3256 = vrcp.f32 %v1404_v21  ;;  %v1416_v5 = vand.u32 2147483648, %v1404_v21  ;;  %vm1410_vm2 = vweird.f32 %v1404_v21  ;;  %v1414_v6 = vand.u32 2147483647, %v1404_v21  ;;  %1674 = vmatmul.bf16.vlgmr.msra.gmra.mxu2 %v3668_v9  ;;  %1588 = vmatpush.bf16.msrb.mxu0 %v3104_v34 }
0x110e   :  { %v4216_v55 = vpop.f32.mrf.mxu2  ;;  %3258 = vpow2.f32 %v2985_v43  ;;  %1794 = vmatpush.bf16.msrb.mxu2 %v4230_v33 }
0x110f   :  { %v4218_v41 = vpop.f32.mrf.mxu3  ;;  %v1417_v39 = vor.u32 1.1754944e-38, %v1416_v5  ;;  %vm1415_vm4 = vcmp.eq.f32.partialorder %v1414_v6, 8.507059e+37 }
0x1112   :  { %1795 = vmatpush.bf16.msrb.mxu2 %v4233_v31 }
0x1113   :  { %v3257_v24 = vpop.eup %3256 }
0x1114   :  { %v1406_v8 = vmul.f32 %v3257_v24, %v1404_v21  ;;  %v3259_v30 = vpop.eup %3258  ;;  %vm1411_vm1 = vweird.f32 %v3257_v24 }
0x1115   :  { %v1353_v22 = vadd.f32 1.0, %v3259_v30  ;;  %vm1412_vm3 = vmor %vm1410_vm2, %vm1411_vm1  ;;  %v4255_v30 = vld [vmem:[#allocation14] sm:$0xff] }
0x1116   :  { %v1489_v36 = vpop.f32.mrf.mxu2  ;;  %v1407_v48 = vsub.f32 1.0, %v1406_v8  ;;  %1910 = vmatpush.bf16.msra.mxu2 %v4230_v33 }
0x1117   :  { %v1502_v51 = vpop.f32.mrf.mxu3  ;;  %3260 = vrcp.f32 %v1353_v22  ;;  %v1365_v3 = vand.u32 2147483648, %v1353_v22  ;;  %vm1359_vm6 = vweird.f32 %v1353_v22  ;;  %v1363_v4 = vand.u32 2147483647, %v1353_v22 }
0x1118   :  { %v1408_v52 = vmul.f32 %v3257_v24, %v1407_v48 }
0x1119   :  { %v1366_v12 = vor.u32 1.1754944e-38, %v1365_v3  ;;  %vm1364_vm8 = vcmp.eq.f32.partialorder %v1363_v4, 8.507059e+37 }
0x111a   :  { %v1409_v14 = vadd.f32 %v3257_v24, %v1408_v52  ;;  %1911 = vmatpush.bf16.msra.mxu2 %v4233_v31 }
0x111c   :  { %v1413_v53 = vsel %vm1412_vm3, %v3257_v24, %v1409_v14 }
0x111d   :  { %v1418_v58 = vsel %vm1415_vm4, %v1417_v39, %v1413_v53  ;;  %v3261_v44 = vpop.eup %3260 }
0x111e   :  { %v1355_v60 = vmul.f32 %v3261_v44, %v1353_v22  ;;  %vm1360_vm5 = vweird.f32 %v3261_v44  ;;  %v1421_v15 = vmul.f32 %v1418_v58, %v4181_v11 }
0x111f   :  { %vm1361_vm7 = vmor %vm1359_vm6, %vm1360_vm5 }
0x1120   :  { %v1356_v61 = vsub.f32 1.0, %v1355_v60 }
0x1122   :  { %v1357_v46 = vmul.f32 %v3261_v44, %v1356_v61 }
0x1124   :  { %v1358_v45 = vadd.f32 %v3261_v44, %v1357_v46 }
0x1126   :  { %v1362_v29 = vsel %vm1361_vm7, %v3261_v44, %v1358_v45 }
0x1127   :  { %v1367_v49 = vsel %vm1364_vm8, %v1366_v12, %v1362_v29 }
0x1128   :  { %v1370_v7 = vmul.f32 %v1367_v49, %v4176_v23 }
0x1163   :  { %v1424_v57 = vpop.permute.xlu2 %1423 }
0x1164   :  { %v1426_v59 = vmul.f32 %v1424_v57, %v1418_v58 }
0x1166   :  { %1428 = vrot.lane.b32.xlu0 %v1426_v59, %s3669_s13 }
0x117a   :  { %v1373_v13 = vpop.permute.xlu1 %1372 }
0x117b   :  { %v1375_v1 = vmul.f32 %v1373_v13, %v1367_v49 }
0x117d   :  { %1377 = vrot.lane.b32.xlu2 %v1375_v1, %s3669_s13 }
0x11d7   :  { %v1378_v16 = vpop.permute.xlu2 %1377 }
0x11d8   :  { %v1429_v32 = vpop.permute.xlu0 %1428  ;;  %v1380_v50 = vadd.f32 %v1378_v16, %v1370_v7 }
0x11d9   :  { %v1431_v25 = vadd.f32 %v1429_v32, %v1421_v15 }
0x11da   :  { %3262 = vtanh.f32 %v1380_v50 }
0x11db   :  { %3264 = vtanh.f32 %v1431_v25 }
0x11e0   :  { %v3263_v26 = vpop.eup %3262 }
0x11e1   :  { %v3265_v63 = vpop.eup %3264  ;;  %1383 = vrot.lane.b32.xlu2 %v3263_v26, %s3657_s28 }
0x11e2   :  { %1434 = vrot.lane.b32.xlu0 %v3265_v63, %s3657_s28 }
0x123b   :  { %v1384_v47 = vpop.permute.xlu2 %1383 }
0x123c   :  { %v1386_v35 = vmul.f32 %v1384_v47, %v1367_v49 }
0x123e   :  { %v1438_v38 = vpack.c.bf16 %v1386_v35, %v1386_v35 }
0x1240   :  { %1440 = vrot.lane.b32.xlu0 %v1438_v38, %s3669_s13 }
0x1254   :  { %v1435_v23 = vpop.permute.xlu0 %1434 }
0x1255   :  { %v1437_v10 = vmul.f32 %v1435_v23, %v1418_v58 }
0x1257   :  { %v1458_v11 = vpack.c.bf16 %v1437_v10, %v1437_v10 }
0x1259   :  { %1460 = vrot.lane.b32.xlu1 %v1458_v11, %s3669_s13 }
0x12b2   :  { %v1441_v56 = vpop.permute.xlu0 %1440 }
0x12b3   :  { %2988 = vmatmul.msk.bf16.vlgmr.msra.gmra.mxu0 %vm328_vm9, %v1441_v56 }
0x12b4   :  { %2142 = vmatpush.bf16.msra.mxu0 %v4230_v33 }
0x12b8   :  { %2143 = vmatpush.bf16.msra.mxu0 %v4233_v31 }
0x12cb   :  { %v1461_v19 = vpop.permute.xlu1 %1460 }
0x12cc   :  { %2989 = vmatmul.msk.bf16.vlgmr.msra.gmra.mxu1 %vm328_vm9, %v1461_v19 }
0x1330   :  { %v1454_v36 = vpop.f32.mrf.mxu0 }
0x1331   :  { %v1488_v51 = vadd.f32 %v4216_v55, %v1454_v36  ;;  %v4252_v55 = vld [vmem:[#allocation14 + $0x8] sm:$0xff] }
0x1332   :  { %1735 = vmatpush.bf16.msra.mxu3 %v4252_v55  ;;  %2199 = vmatpush.bf16.msra.mxu1 %v4252_v55 }
0x1333   :  { %v1514_v17 = vadd.f32 %v4091_v40, %v1488_v51 }
0x1335   :  { %1522 = vst.msk [vmem:[#allocation16 + $0x38] sm:$0xff] %vm328_vm9, %v1514_v17 }
0x1336   :  { %1736 = vmatpush.bf16.msra.mxu3 %v4255_v30  ;;  %2200 = vmatpush.bf16.msra.mxu1 %v4255_v30 }
0x1338   :  { %v1456_v54 = vpop.f32.mrf.mxu0 }
0x1339   :  { %1737 = vmatmul.bf16.vlgmr.msra.gmra.mxu3 %v3668_v9  ;;  %v1526_v9 = vpack.c.bf16 %v1514_v17, %v4202_v0 }
0x133a   :  { %1851 = vmatpush.bf16.msrb.mxu3 %v4252_v55 }
0x133e   :  { %1852 = vmatpush.bf16.msrb.mxu3 %v4255_v30 }
0x1342   :  { %1967 = vmatpush.bf16.msra.mxu3 %v4252_v55 }
0x1346   :  { %1968 = vmatpush.bf16.msra.mxu3 %v4255_v30 }
0x1349   :  { %v1474_v21 = vpop.f32.mrf.mxu1 }
0x134a   :  { %v1501_v24 = vadd.f32 %v4218_v41, %v1474_v21  ;;  %v4279_v41 = vld [vmem:[%s4645_s12] ss:$0 sm:$0xff] }
0x134c   :  { %v1507_v43 = vadd.f32 %v4091_v40, %v1501_v24  ;;  %v1524_v40 = vpack.c.bf16 %v4104_v20, %v4150_v37  ;;  %v1675_v20 = vpop.f32.mrf.mxu2 }
0x134e   :  { %1515 = vst.msk [vmem:[#allocation16] sm:$0xff] %vm328_vm9, %v1507_v43  ;;  %v1523_v8 = vpack.c.bf16 %v4205_v2, %v1507_v43  ;;  %v1525_v2 = vpack.c.bf16 %v4147_v62, %v4095_v42  ;;  %v3136_v42 = vld [vmem:[%s4648_s15] ss:$0 sm:$0xff] }
0x1350   :  { %3000 = vmatmul.msk.bf16.vlgmr.msrb.gmra.mxu0 %vm328_vm9, %v1523_v8  ;;  %3012 = vmatmul.msk.bf16.vlgmr.msrb.gmra.mxu1 %vm328_vm9, %v1523_v8 }
0x1351   :  { %v1476_v48 = vpop.f32.mrf.mxu1 }
0x1354   :  { %v1677_v37 = vpop.f32.mrf.mxu2 }
0x1360   :  { %3001 = vmatmul.msk.bf16.gmra.mxu0 %vm328_vm9, %v1524_v40  ;;  %3013 = vmatmul.msk.bf16.gmra.mxu1 %vm328_vm9, %v1524_v40 }
0x1370   :  { %3002 = vmatmul.msk.bf16.gmra.mxu0 %vm328_vm9, %v1525_v2  ;;  %3014 = vmatmul.msk.bf16.gmra.mxu1 %vm328_vm9, %v1525_v2 }
0x1380   :  { %3003 = vmatmul.msk.bf16.gmra.mxu0 %vm328_vm9, %v1526_v9  ;;  %3015 = vmatmul.msk.bf16.gmra.mxu1 %vm328_vm9, %v1526_v9 }
0x13bc   :  { %v1738_v59 = vpop.f32.mrf.mxu3 }
0x13c4   :  { %v1740_v45 = vpop.f32.mrf.mxu3 }
0x13cd   :  { %v1590_v62 = vpop.f32.mrf.mxu0  ;;  %v1634_v52 = vpop.f32.mrf.mxu1 }
0x13ce   :  { %v1591_v22 = vadd.f32 %v4279_v41, %v1590_v62  ;;  %v4285_v0 = vadd.f32 %v3136_v42, %v1634_v52 }
0x13d0   :  { %v1679_v14 = vadd.f32 %v1675_v20, %v1591_v22 }
0x13d2   :  { %3266 = vtanh.f32 %v1679_v14  ;;  %v3024_v47 = vmul.f32 -1.442695, %v1679_v14 }
0x13d5   :  { %v4287_v5 = vpop.f32.mrf.mxu0  ;;  %v1636_v6 = vpop.f32.mrf.mxu1 }
0x13d6   :  { %v4289_v53 = vadd.f32 %v3136_v42, %v1636_v6 }
0x13d8   :  { %v3267_v39 = vpop.eup %3266 }
0x13d9   :  { %1702 = vrot.lane.b32.xlu1 %v3267_v39, %s3657_s28 }
0x13dd   :  { %v4292_v57 = vpop.f32.mrf.mxu0  ;;  %v1639_v58 = vpop.f32.mrf.mxu1 }
0x13de   :  { %v4294_v44 = vadd.f32 %v3136_v42, %v1639_v58 }
0x13e5   :  { %v4296_v60 = vpop.f32.mrf.mxu0  ;;  %v1641_v61 = vpop.f32.mrf.mxu1 }
0x13e6   :  { %v4298_v46 = vadd.f32 %v3136_v42, %v1641_v61 }
0x13ed   :  { %v4300_v3 = vpop.f32.mrf.mxu0  ;;  %v1644_v4 = vpop.f32.mrf.mxu1 }
0x13ee   :  { %v4302_v29 = vadd.f32 %v3136_v42, %v1644_v4 }
0x13f5   :  { %v1602_v12 = vpop.f32.mrf.mxu0  ;;  %v1646_v13 = vpop.f32.mrf.mxu1 }
0x13f6   :  { %v4305_v49 = vadd.f32 %v4279_v41, %v1602_v12  ;;  %v4307_v1 = vadd.f32 %v3136_v42, %v1646_v13 }
0x13fd   :  { %v1605_v7 = vpop.f32.mrf.mxu0  ;;  %v1649_v15 = vpop.f32.mrf.mxu1 }
0x13fe   :  { %v4310_v16 = vadd.f32 %v4279_v41, %v1605_v7  ;;  %v4312_v32 = vadd.f32 %v3136_v42, %v1649_v15 }
0x1405   :  { %v1651_v50 = vpop.f32.mrf.mxu1 }
0x1406   :  { %v1652_v25 = vadd.f32 %v3136_v42, %v1651_v50 }
0x1408   :  { %v1742_v26 = vadd.f32 %v1738_v59, %v1652_v25 }
0x140a   :  { %3268 = vtanh.f32 %v1742_v26  ;;  %v3033_v56 = vmul.f32 -1.442695, %v1742_v26 }
0x140b   :  { %3270 = vpow2.f32 %v3024_v47  ;;  %v1593_v47 = vadd.f32 %v4279_v41, %v4287_v5 }
0x1410   :  { %v3269_v63 = vpop.eup %3268 }
0x1411   :  { %1765 = vrot.lane.b32.xlu2 %v3269_v63, %s3657_s28  ;;  %v3271_v35 = vpop.eup %3270 }
0x1412   :  { %v1683_v38 = vadd.f32 1.0, %v3271_v35 }
0x1414   :  { %3272 = vrcp.f32 %v1683_v38  ;;  %v1695_v27 = vand.u32 2147483648, %v1683_v38  ;;  %vm1689_vm11 = vweird.f32 %v1683_v38  ;;  %v1693_v28 = vand.u32 2147483647, %v1683_v38 }
0x1415   :  { %3274 = vpow2.f32 %v3033_v56 }
0x1416   :  { %v1696_v51 = vor.u32 1.1754944e-38, %v1695_v27  ;;  %vm1694_vm13 = vcmp.eq.f32.partialorder %v1693_v28, 8.507059e+37 }
0x141a   :  { %v3273_v23 = vpop.eup %3272 }
0x141b   :  { %v1685_v10 = vmul.f32 %v3273_v23, %v1683_v38  ;;  %vm1690_vm10 = vweird.f32 %v3273_v23  ;;  %v3275_v34 = vpop.eup %3274 }
0x141c   :  { %vm1691_vm12 = vmor %vm1689_vm11, %vm1690_vm10  ;;  %v1746_v17 = vadd.f32 1.0, %v3275_v34 }
0x141d   :  { %v1686_v11 = vsub.f32 1.0, %v1685_v10 }
0x141e   :  { %3276 = vrcp.f32 %v1746_v17  ;;  %v1758_v9 = vand.u32 2147483648, %v1746_v17  ;;  %vm1752_vm15 = vweird.f32 %v1746_v17  ;;  %v1756_v20 = vand.u32 2147483647, %v1746_v17 }
0x141f   :  { %v1687_v19 = vmul.f32 %v3273_v23, %v1686_v11 }
0x1420   :  { %v1759_v42 = vor.u32 1.1754944e-38, %v1758_v9  ;;  %vm1757_vm2 = vcmp.eq.f32.partialorder %v1756_v20, 8.507059e+37 }
0x1421   :  { %v1688_v18 = vadd.f32 %v3273_v23, %v1687_v19 }
0x1423   :  { %v1692_v36 = vsel %vm1691_vm12, %v3273_v23, %v1688_v18 }
0x1424   :  { %v1697_v21 = vsel %vm1694_vm13, %v1696_v51, %v1692_v36  ;;  %v3277_v43 = vpop.eup %3276 }
0x1425   :  { %v1748_v8 = vmul.f32 %v3277_v43, %v1746_v17  ;;  %vm1753_vm14 = vweird.f32 %v3277_v43  ;;  %v1700_v14 = vmul.f32 0.0, %v1697_v21 }
0x1426   :  { %vm1754_vm1 = vmor %vm1752_vm15, %vm1753_vm14 }
0x1427   :  { %v1749_v48 = vsub.f32 1.0, %v1748_v8 }
0x1429   :  { %v1750_v40 = vmul.f32 %v3277_v43, %v1749_v48 }
0x142b   :  { %v1751_v2 = vadd.f32 %v3277_v43, %v1750_v40 }
0x142d   :  { %v1755_v37 = vsel %vm1754_vm1, %v3277_v43, %v1751_v2 }
0x142e   :  { %v1760_v52 = vsel %vm1757_vm2, %v1759_v42, %v1755_v37 }
0x142f   :  { %v1763_v59 = vmul.f32 0.0, %v1760_v52 }
0x144b   :  { %v1703_v54 = vpop.permute.xlu1 %1702 }
0x144c   :  { %v1705_v24 = vmul.f32 %v1703_v54, %v1697_v21 }
0x144e   :  { %1707 = vrot.lane.b32.xlu0 %v1705_v24, %s3669_s13 }
0x146b   :  { %v1766_v62 = vpop.permute.xlu2 %1765 }
0x146c   :  { %v1768_v22 = vmul.f32 %v1766_v62, %v1760_v52 }
0x146e   :  { %1770 = vrot.lane.b32.xlu1 %v1768_v22, %s3669_s13 }
0x14c0   :  { %v1708_v6 = vpop.permute.xlu0 %1707 }
0x14c1   :  { %v4317_v39 = vadd.f32 %v1708_v6, %v1700_v14 }
0x14c3   :  { %3278 = vtanh.f32 %v4317_v39 }
0x14c9   :  { %v3279_v58 = vpop.eup %3278 }
0x14ca   :  { %1713 = vrot.lane.b32.xlu2 %v3279_v58, %s3657_s28 }
0x14e0   :  { %v1771_v61 = vpop.permute.xlu1 %1770 }
0x14e1   :  { %v4321_v45 = vadd.f32 %v1771_v61, %v1763_v59 }
0x14e3   :  { %3280 = vtanh.f32 %v4321_v45 }
0x14e9   :  { %v3281_v4 = vpop.eup %3280 }
0x14ea   :  { %1776 = vrot.lane.b32.xlu0 %v3281_v4, %s3657_s28 }
0x1524   :  { %v1714_v12 = vpop.permute.xlu2 %1713 }
0x1525   :  { %v1716_v13 = vmul.f32 %v1714_v12, %v1697_v21 }
0x1527   :  { %v1780_v7 = vpack.c.bf16 %v1716_v13, %v1716_v13 }
0x1529   :  { %1783 = vrot.lane.b32.xlu1 %v1780_v7, %s3669_s13 }
0x155c   :  { %v1777_v15 = vpop.permute.xlu0 %1776 }
0x155d   :  { %v1779_v50 = vmul.f32 %v1777_v15, %v1760_v52 }
0x155f   :  { %v1781_v25 = vpack.c.bf16 %v1779_v50, %v1779_v50 }
0x1561   :  { %1840 = vrot.lane.b32.xlu2 %v1781_v25, %s3669_s13 }
0x159b   :  { %v4327_v26 = vpop.permute.xlu1 %1783 }
0x159c   :  { %3034 = vmatmul.msk.bf16.vlgmr.msrb.gmra.mxu2 %vm328_vm9, %v4327_v26 }
0x159d   :  { %2026 = vmatpush.bf16.msrb.mxu2 %v4230_v33 }
0x15a1   :  { %2027 = vmatpush.bf16.msrb.mxu2 %v4233_v31 }
0x15bb   :  { %v4333_v63 = vpop.permute.xlu2 %1840 }
0x15bc   :  { %3036 = vmatmul.msk.bf16.vlgmr.msrb.gmra.mxu3 %vm328_vm9, %v4333_v63 }
0x15bd   :  { %2083 = vmatpush.bf16.msrb.mxu3 %v4252_v55 }
0x15c1   :  { %2084 = vmatpush.bf16.msrb.mxu3 %v4255_v30 }
0x161f   :  { %v1797_v35 = vpop.f32.mrf.mxu2 }
0x1620   :  { %v1801_v38 = vadd.f32 %v1797_v35, %v1593_v47 }
0x1622   :  { %3282 = vtanh.f32 %v1801_v38  ;;  %v3035_v27 = vmul.f32 -1.442695, %v1801_v38 }
0x1627   :  { %v1799_v23 = vpop.f32.mrf.mxu2 }
0x1628   :  { %v3283_v10 = vpop.eup %3282 }
0x1629   :  { %1824 = vrot.lane.b32.xlu0 %v3283_v10, %s3657_s28 }
0x163f   :  { %v1854_v11 = vpop.f32.mrf.mxu3 }
0x1640   :  { %v1858_v56 = vadd.f32 %v1854_v11, %v4312_v32 }
0x1642   :  { %3284 = vtanh.f32 %v1858_v56  ;;  %v3037_v17 = vmul.f32 -1.442695, %v1858_v56 }
0x1643   :  { %3286 = vpow2.f32 %v3035_v27  ;;  %v1596_v27 = vadd.f32 %v4279_v41, %v4292_v57 }
0x1647   :  { %v1856_v19 = vpop.f32.mrf.mxu3 }
0x1648   :  { %v3285_v18 = vpop.eup %3284 }
0x1649   :  { %1881 = vrot.lane.b32.xlu1 %v3285_v18, %s3657_s28  ;;  %v3287_v28 = vpop.eup %3286 }
0x164a   :  { %v1805_v34 = vadd.f32 1.0, %v3287_v28 }
0x164c   :  { %3288 = vrcp.f32 %v1805_v34  ;;  %v1817_v24 = vand.u32 2147483648, %v1805_v34  ;;  %vm1811_vm4 = vweird.f32 %v1805_v34  ;;  %v1815_v32 = vand.u32 2147483647, %v1805_v34 }
0x164d   :  { %3290 = vpow2.f32 %v3037_v17 }
0x164e   :  { %v1818_v48 = vor.u32 1.1754944e-38, %v1817_v24  ;;  %vm1816_vm6 = vcmp.eq.f32.partialorder %v1815_v32, 8.507059e+37 }
0x1652   :  { %v3289_v5 = vpop.eup %3288 }
0x1653   :  { %v1807_v36 = vmul.f32 %v3289_v5, %v1805_v34  ;;  %vm1812_vm3 = vweird.f32 %v3289_v5  ;;  %v3291_v43 = vpop.eup %3290 }
0x1654   :  { %vm1813_vm5 = vmor %vm1811_vm4, %vm1812_vm3  ;;  %v1862_v40 = vadd.f32 1.0, %v3291_v43 }
0x1655   :  { %v1808_v51 = vsub.f32 1.0, %v1807_v36 }
0x1656   :  { %3292 = vrcp.f32 %v1862_v40  ;;  %v1874_v14 = vand.u32 2147483648, %v1862_v40  ;;  %vm1868_vm8 = vweird.f32 %v1862_v40  ;;  %v1872_v6 = vand.u32 2147483647, %v1862_v40 }
0x1657   :  { %v1809_v54 = vmul.f32 %v3289_v5, %v1808_v51 }
0x1658   :  { %v1875_v59 = vor.u32 1.1754944e-38, %v1874_v14  ;;  %vm1873_vm11 = vcmp.eq.f32.partialorder %v1872_v6, 8.507059e+37 }
0x1659   :  { %v1810_v21 = vadd.f32 %v3289_v5, %v1809_v54 }
0x165b   :  { %v1814_v8 = vsel %vm1813_vm5, %v3289_v5, %v1810_v21 }
0x165c   :  { %v1819_v2 = vsel %vm1816_vm6, %v1818_v48, %v1814_v8  ;;  %v3293_v37 = vpop.eup %3292 }
0x165d   :  { %v1864_v42 = vmul.f32 %v3293_v37, %v1862_v40  ;;  %vm1869_vm7 = vweird.f32 %v3293_v37  ;;  %v1822_v13 = vmul.f32 %v1819_v2, %v4317_v39 }
0x165e   :  { %vm1870_vm10 = vmor %vm1868_vm8, %vm1869_vm7 }
0x165f   :  { %v1865_v62 = vsub.f32 1.0, %v1864_v42 }
0x1661   :  { %v1866_v52 = vmul.f32 %v3293_v37, %v1865_v62 }
0x1663   :  { %v1867_v22 = vadd.f32 %v3293_v37, %v1866_v52 }
0x1665   :  { %v1871_v58 = vsel %vm1870_vm10, %v3293_v37, %v1867_v22 }
0x1666   :  { %v1876_v4 = vsel %vm1873_vm11, %v1875_v59, %v1871_v58 }
0x1667   :  { %v1879_v25 = vmul.f32 %v1876_v4, %v4321_v45 }
0x169b   :  { %v1825_v9 = vpop.permute.xlu0 %1824 }
0x169c   :  { %v1827_v20 = vmul.f32 %v1825_v9, %v1819_v2 }
0x169e   :  { %1829 = vrot.lane.b32.xlu2 %v1827_v20, %s3669_s13 }
0x16bb   :  { %v1882_v61 = vpop.permute.xlu1 %1881 }
0x16bc   :  { %v1884_v12 = vmul.f32 %v1882_v61, %v1876_v4 }
0x16be   :  { %1886 = vrot.lane.b32.xlu0 %v1884_v12, %s3669_s13 }
0x16f8   :  { %v1830_v7 = vpop.permute.xlu2 %1829 }
0x16f9   :  { %v4347_v15 = vadd.f32 %v1830_v7, %v1822_v13 }
0x16fb   :  { %3294 = vtanh.f32 %v4347_v15 }
0x1701   :  { %v3295_v50 = vpop.eup %3294 }
0x1702   :  { %1835 = vrot.lane.b32.xlu1 %v3295_v50, %s3657_s28 }
0x1730   :  { %v1887_v47 = vpop.permute.xlu0 %1886 }
0x1731   :  { %v4352_v35 = vadd.f32 %v1887_v47, %v1879_v25 }
0x1733   :  { %3296 = vtanh.f32 %v4352_v35 }
0x1739   :  { %v3297_v38 = vpop.eup %3296 }
0x173a   :  { %1892 = vrot.lane.b32.xlu2 %v3297_v38, %s3657_s28 }
0x1774   :  { %v1836_v23 = vpop.permute.xlu1 %1835 }
0x1775   :  { %v1838_v39 = vmul.f32 %v1836_v23, %v1819_v2 }
0x1777   :  { %v1896_v10 = vpack.c.bf16 %v1838_v39, %v1838_v39 }
0x1779   :  { %1899 = vrot.lane.b32.xlu0 %v1896_v10, %s3669_s13 }
0x1794   :  { %v1893_v11 = vpop.permute.xlu2 %1892 }
0x1795   :  { %v1895_v56 = vmul.f32 %v1893_v11, %v1876_v4 }
0x1797   :  { %v1897_v19 = vpack.c.bf16 %v1895_v56, %v1895_v56 }
0x1799   :  { %1956 = vrot.lane.b32.xlu1 %v1897_v19, %s3669_s13 }
0x17eb   :  { %v4358_v18 = vpop.permute.xlu0 %1899 }
0x17ec   :  { %3038 = vmatmul.msk.bf16.vlgmr.msra.gmra.mxu2 %vm328_vm9, %v4358_v18 }
0x180b   :  { %v4362_v45 = vpop.permute.xlu1 %1956 }
0x180c   :  { %3040 = vmatmul.msk.bf16.vlgmr.msra.gmra.mxu3 %vm328_vm9, %v4362_v45 }
0x186f   :  { %v1913_v28 = vpop.f32.mrf.mxu2 }
0x1870   :  { %v1917_v34 = vadd.f32 %v1913_v28, %v1596_v27 }
0x1872   :  { %3298 = vtanh.f32 %v1917_v34  ;;  %v3039_v24 = vmul.f32 -1.442695, %v1917_v34 }
0x1877   :  { %v1915_v5 = vpop.f32.mrf.mxu2 }
0x1878   :  { %v3299_v36 = vpop.eup %3298 }
0x1879   :  { %1940 = vrot.lane.b32.xlu2 %v3299_v36, %s3657_s28 }
0x188f   :  { %v1970_v51 = vpop.f32.mrf.mxu3 }
0x1890   :  { %v1974_v17 = vadd.f32 %v1970_v51, %v4307_v1 }
0x1892   :  { %3300 = vtanh.f32 %v1974_v17  ;;  %v3041_v22 = vmul.f32 -1.442695, %v1974_v17 }
0x1893   :  { %3302 = vpow2.f32 %v3039_v24  ;;  %v1598_v24 = vadd.f32 %v4279_v41, %v4296_v60 }
0x1897   :  { %v1972_v54 = vpop.f32.mrf.mxu3 }
0x1898   :  { %v3301_v21 = vpop.eup %3300 }
0x1899   :  { %1997 = vrot.lane.b32.xlu0 %v3301_v21, %s3657_s28  ;;  %v3303_v32 = vpop.eup %3302 }
0x189a   :  { %v1921_v43 = vadd.f32 1.0, %v3303_v32 }
0x189c   :  { %3304 = vrcp.f32 %v1921_v43  ;;  %v1933_v9 = vand.u32 2147483648, %v1921_v43  ;;  %vm1927_vm13 = vweird.f32 %v1921_v43  ;;  %v1931_v20 = vand.u32 2147483647, %v1921_v43 }
0x189d   :  { %3306 = vpow2.f32 %v3041_v22 }
0x189e   :  { %v1934_v37 = vor.u32 1.1754944e-38, %v1933_v9  ;;  %vm1932_vm15 = vcmp.eq.f32.partialorder %v1931_v20, 8.507059e+37 }
0x18a2   :  { %v3305_v57 = vpop.eup %3304 }
0x18a3   :  { %v1923_v8 = vmul.f32 %v3305_v57, %v1921_v43  ;;  %vm1928_vm12 = vweird.f32 %v3305_v57  ;;  %v3307_v14 = vpop.eup %3306 }
0x18a4   :  { %vm1929_vm14 = vmor %vm1927_vm13, %vm1928_vm12  ;;  %v1978_v6 = vadd.f32 1.0, %v3307_v14 }
0x18a5   :  { %v1924_v48 = vsub.f32 1.0, %v1923_v8 }
0x18a6   :  { %3308 = vrcp.f32 %v1978_v6  ;;  %v1990_v13 = vand.u32 2147483648, %v1978_v6  ;;  %vm1984_vm2 = vweird.f32 %v1978_v6  ;;  %v1988_v7 = vand.u32 2147483647, %v1978_v6 }
0x18a7   :  { %v1925_v40 = vmul.f32 %v3305_v57, %v1924_v48 }
0x18a8   :  { %v1991_v25 = vor.u32 1.1754944e-38, %v1990_v13  ;;  %vm1989_vm4 = vcmp.eq.f32.partialorder %v1988_v7, 8.507059e+37 }
0x18a9   :  { %v1926_v2 = vadd.f32 %v3305_v57, %v1925_v40 }
0x18ab   :  { %v1930_v1 = vsel %vm1929_vm14, %v3305_v57, %v1926_v2 }
0x18ac   :  { %v1935_v42 = vsel %vm1932_vm15, %v1934_v37, %v1930_v1  ;;  %v3309_v58 = vpop.eup %3308 }
0x18ad   :  { %v1980_v59 = vmul.f32 %v3309_v58, %v1978_v6  ;;  %vm1985_vm1 = vweird.f32 %v3309_v58  ;;  %v1938_v39 = vmul.f32 %v1935_v42, %v4347_v15 }
0x18ae   :  { %vm1986_vm3 = vmor %vm1984_vm2, %vm1985_vm1 }
0x18af   :  { %v1981_v61 = vsub.f32 1.0, %v1980_v59 }
0x18b1   :  { %v1982_v4 = vmul.f32 %v3309_v58, %v1981_v61 }
0x18b3   :  { %v1983_v12 = vadd.f32 %v3309_v58, %v1982_v4 }
0x18b5   :  { %v1987_v50 = vsel %vm1986_vm3, %v3309_v58, %v1983_v12 }
0x18b6   :  { %v1992_v38 = vsel %vm1989_vm4, %v1991_v25, %v1987_v50 }
0x18b7   :  { %v1995_v19 = vmul.f32 %v1992_v38, %v4352_v35 }
0x18d3   :  { %v1941_v62 = vpop.permute.xlu2 %1940 }
0x18d4   :  { %v1943_v52 = vmul.f32 %v1941_v62, %v1935_v42 }
0x18d6   :  { %1945 = vrot.lane.b32.xlu1 %v1943_v52, %s3669_s13 }
0x190b   :  { %v1998_v47 = vpop.permute.xlu0 %1997 }
0x190c   :  { %v2000_v23 = vmul.f32 %v1998_v47, %v1992_v38 }
0x190e   :  { %2002 = vrot.lane.b32.xlu2 %v2000_v23, %s3669_s13 }
0x1948   :  { %v1946_v10 = vpop.permute.xlu1 %1945 }
0x1949   :  { %v4374_v11 = vadd.f32 %v1946_v10, %v1938_v39 }
0x194b   :  { %3310 = vtanh.f32 %v4374_v11 }
0x1951   :  { %v3311_v56 = vpop.eup %3310 }
0x1952   :  { %1951 = vrot.lane.b32.xlu0 %v3311_v56, %s3657_s28 }
0x1968   :  { %v2003_v27 = vpop.permute.xlu2 %2002 }
0x1969   :  { %v4379_v28 = vadd.f32 %v2003_v27, %v1995_v19 }
0x196b   :  { %3312 = vtanh.f32 %v4379_v28 }
0x1971   :  { %v3313_v34 = vpop.eup %3312 }
0x1972   :  { %2008 = vrot.lane.b32.xlu1 %v3313_v34, %s3657_s28 }
0x19c4   :  { %v1952_v5 = vpop.permute.xlu0 %1951 }
0x19c5   :  { %v1954_v15 = vmul.f32 %v1952_v5, %v1935_v42 }
0x19c7   :  { %v2012_v36 = vpack.c.bf16 %v1954_v15, %v1954_v15 }
0x19c9   :  { %2015 = vrot.lane.b32.xlu2 %v2012_v36, %s3669_s13 }
0x19e4   :  { %v2009_v51 = vpop.permute.xlu1 %2008 }
0x19e5   :  { %v2011_v17 = vmul.f32 %v2009_v51, %v1992_v38 }
0x19e7   :  { %v2013_v54 = vpack.c.bf16 %v2011_v17, %v2011_v17 }
0x19e9   :  { %2072 = vrot.lane.b32.xlu0 %v2013_v54, %s3669_s13 }
0x1a23   :  { %v4385_v21 = vpop.permute.xlu2 %2015 }
0x1a24   :  { %3042 = vmatmul.msk.bf16.vlgmr.msrb.gmra.mxu2 %vm328_vm9, %v4385_v21 }
0x1a5b   :  { %v4389_v35 = vpop.permute.xlu0 %2072 }
0x1a5c   :  { %3044 = vmatmul.msk.bf16.vlgmr.msrb.gmra.mxu3 %vm328_vm9, %v4389_v35 }
0x1aa7   :  { %v2029_v32 = vpop.f32.mrf.mxu2 }
0x1aa8   :  { %v2033_v43 = vadd.f32 %v2029_v32, %v1598_v24 }
0x1aaa   :  { %3314 = vtanh.f32 %v2033_v43  ;;  %v3043_v20 = vmul.f32 -1.442695, %v2033_v43 }
0x1aaf   :  { %v2031_v57 = vpop.f32.mrf.mxu2 }
0x1ab0   :  { %v3315_v8 = vpop.eup %3314 }
0x1ab1   :  { %2056 = vrot.lane.b32.xlu1 %v3315_v8, %s3657_s28 }
0x1adf   :  { %v2086_v48 = vpop.f32.mrf.mxu3 }
0x1ae0   :  { %v2090_v40 = vadd.f32 %v2086_v48, %v4302_v29 }
0x1ae2   :  { %3316 = vtanh.f32 %v2090_v40  ;;  %v3045_v52 = vmul.f32 -1.442695, %v2090_v40 }
0x1ae3   :  { %3318 = vpow2.f32 %v3043_v20 }
0x1ae7   :  { %v2088_v2 = vpop.f32.mrf.mxu3 }
0x1ae8   :  { %v3317_v9 = vpop.eup %3316 }
0x1ae9   :  { %2113 = vrot.lane.b32.xlu2 %v3317_v9, %s3657_s28  ;;  %v3319_v1 = vpop.eup %3318  ;;  %v4421_v9 = vld [vmem:[%s4650_s17] sm:$0xff] }
0x1aea   :  { %v2037_v37 = vadd.f32 1.0, %v3319_v1  ;;  %v4432_v1 = vld [vmem:[%s4649_s16 + $0x8] sm:$0xff] }
0x1aeb   :  { %2327 = vmatpush.bf16.msrb.mxu1 %v4432_v1  ;;  %2269 = vmatpush.bf16.msra.mxu2 %v4432_v1 }
0x1aec   :  { %3320 = vrcp.f32 %v2037_v37  ;;  %v2049_v6 = vand.u32 2147483648, %v2037_v37  ;;  %vm2043_vm6 = vweird.f32 %v2037_v37  ;;  %v2047_v29 = vand.u32 2147483647, %v2037_v37 }
0x1aed   :  { %3322 = vpow2.f32 %v3045_v52 }
0x1aee   :  { %v2050_v61 = vor.u32 1.1754944e-38, %v2049_v6  ;;  %vm2048_vm8 = vcmp.eq.f32.partialorder %v2047_v29, 8.507059e+37 }
0x1af2   :  { %v3321_v60 = vpop.eup %3320 }
0x1af3   :  { %v2039_v42 = vmul.f32 %v3321_v60, %v2037_v37  ;;  %vm2044_vm5 = vweird.f32 %v3321_v60  ;;  %v3323_v58 = vpop.eup %3322  ;;  %v4438_v37 = vld [vmem:[%s4649_s16] sm:$0xff] }
0x1af4   :  { %vm2045_vm7 = vmor %vm2043_vm6, %vm2044_vm5  ;;  %v2094_v4 = vadd.f32 1.0, %v3323_v58  ;;  %2328 = vmatpush.bf16.msrb.mxu1 %v4438_v37  ;;  %2270 = vmatpush.bf16.msra.mxu2 %v4438_v37 }
0x1af5   :  { %v2040_v62 = vsub.f32 1.0, %v2039_v42  ;;  %v4456_v42 = vpop.f32.mrf.mxu0 }
0x1af6   :  { %3324 = vrcp.f32 %v2094_v4  ;;  %v2106_v39 = vand.u32 2147483648, %v2094_v4  ;;  %vm2100_vm11 = vweird.f32 %v2094_v4  ;;  %v2104_v10 = vand.u32 2147483647, %v2094_v4 }
0x1af7   :  { %v2041_v22 = vmul.f32 %v3321_v60, %v2040_v62  ;;  %v1601_v62 = vadd.f32 %v4279_v41, %v4300_v3 }
0x1af8   :  { %v2107_v19 = vor.u32 1.1754944e-38, %v2106_v39  ;;  %vm2105_vm13 = vcmp.eq.f32.partialorder %v2104_v10, 8.507059e+37  ;;  %2340 = vmatpush.bf16.msrb.mxu2 %v4230_v33 }
0x1af9   :  { %v2042_v14 = vadd.f32 %v3321_v60, %v2041_v22 }
0x1afb   :  { %v2046_v59 = vsel %vm2045_vm7, %v3321_v60, %v2042_v14 }
0x1afc   :  { %v2051_v12 = vsel %vm2048_vm8, %v2050_v61, %v2046_v59  ;;  %v3325_v50 = vpop.eup %3324  ;;  %2341 = vmatpush.bf16.msrb.mxu2 %v4233_v31 }
0x1afd   :  { %v2096_v25 = vmul.f32 %v3325_v50, %v2094_v4  ;;  %vm2101_vm10 = vweird.f32 %v3325_v50  ;;  %v2054_v15 = vmul.f32 %v2051_v12, %v4374_v11 }
0x1afe   :  { %vm2102_vm12 = vmor %vm2100_vm11, %vm2101_vm10 }
0x1aff   :  { %v2097_v47 = vsub.f32 1.0, %v2096_v25 }
0x1b01   :  { %v2098_v38 = vmul.f32 %v3325_v50, %v2097_v47 }
0x1b03   :  { %v2099_v23 = vadd.f32 %v3325_v50, %v2098_v38 }
0x1b05   :  { %v2103_v56 = vsel %vm2102_vm12, %v3325_v50, %v2099_v23 }
0x1b06   :  { %v2108_v34 = vsel %vm2105_vm13, %v2107_v19, %v2103_v56 }
0x1b07   :  { %v2111_v54 = vmul.f32 %v2108_v34, %v4379_v28  ;;  %v4415_v28 = vld [vmem:[%s4650_s17 + $0x8] sm:$0xff] }
0x1b08   :  { %2314 = vmatpush.bf16.msrb.mxu0 %v4415_v28  ;;  %2301 = vmatpush.bf16.msra.mxu3 %v4415_v28 }
0x1b0c   :  { %2315 = vmatpush.bf16.msrb.mxu0 %v4421_v9  ;;  %2302 = vmatpush.bf16.msra.mxu3 %v4421_v9 }
0x1b10   :  { %2391 = vmatpush.bf16.msrb.mxu3 %v4252_v55 }
0x1b14   :  { %2392 = vmatpush.bf16.msrb.mxu3 %v4255_v30 }
0x1b23   :  { %v2057_v13 = vpop.permute.xlu1 %2056 }
0x1b24   :  { %v2059_v7 = vmul.f32 %v2057_v13, %v2051_v12 }
0x1b26   :  { %2061 = vrot.lane.b32.xlu0 %v2059_v7, %s3669_s13 }
0x1b43   :  { %v2114_v27 = vpop.permute.xlu2 %2113 }
0x1b44   :  { %v2116_v5 = vmul.f32 %v2114_v27, %v2108_v34 }
0x1b46   :  { %2118 = vrot.lane.b32.xlu1 %v2116_v5, %s3669_s13 }
0x1b98   :  { %v2062_v36 = vpop.permute.xlu0 %2061 }
0x1b99   :  { %v4401_v51 = vadd.f32 %v2062_v36, %v2054_v15 }
0x1b9b   :  { %3326 = vtanh.f32 %v4401_v51 }
0x1ba1   :  { %v3327_v17 = vpop.eup %3326 }
0x1ba2   :  { %2067 = vrot.lane.b32.xlu2 %v3327_v17, %s3657_s28 }
0x1bb8   :  { %v2119_v24 = vpop.permute.xlu1 %2118 }
0x1bb9   :  { %v4406_v32 = vadd.f32 %v2119_v24, %v2111_v54 }
0x1bbb   :  { %3328 = vtanh.f32 %v4406_v32 }
0x1bc1   :  { %v3329_v43 = vpop.eup %3328 }
0x1bc2   :  { %2124 = vrot.lane.b32.xlu0 %v3329_v43, %s3657_s28 }
0x1bfc   :  { %v2068_v57 = vpop.permute.xlu2 %2067 }
0x1bfd   :  { %v2070_v11 = vmul.f32 %v2068_v57, %v2051_v12 }
0x1bff   :  { %v2128_v8 = vpack.c.bf16 %v2070_v11, %v2070_v11 }
0x1c01   :  { %2131 = vrot.lane.b32.xlu1 %v2128_v8, %s3669_s13 }
0x1c34   :  { %v2125_v48 = vpop.permute.xlu0 %2124 }
0x1c35   :  { %v2127_v40 = vmul.f32 %v2125_v48, %v2108_v34 }
0x1c37   :  { %v2129_v2 = vpack.c.bf16 %v2127_v40, %v2127_v40 }
0x1c39   :  { %2188 = vrot.lane.b32.xlu2 %v2129_v2, %s3669_s13 }
0x1c73   :  { %v2132_v20 = vpop.permute.xlu1 %2131 }
0x1c74   :  { %3046 = vmatmul.msk.bf16.vlgmr.msra.gmra.mxu0 %vm328_vm9, %v2132_v20 }
0x1c75   :  { %2449 = vmatpush.bf16.msra.mxu0 %v4432_v1 }
0x1c79   :  { %2450 = vmatpush.bf16.msra.mxu0 %v4438_v37 }
0x1c93   :  { %v2189_v60 = vpop.permute.xlu2 %2188 }
0x1c94   :  { %3048 = vmatmul.msk.bf16.vlgmr.msra.gmra.mxu1 %vm328_vm9, %v2189_v60  ;;  %3068 = vmatmul.msk.bf16.vlgmr.msrb.gmra.mxu0 %vm328_vm9, %v2189_v60 }
0x1c95   :  { %2508 = vmatpush.bf16.msrb.mxu0 %v4230_v33  ;;  %2469 = vmatpush.bf16.msra.mxu1 %v4415_v28 }
0x1c99   :  { %2509 = vmatpush.bf16.msrb.mxu0 %v4233_v31  ;;  %2470 = vmatpush.bf16.msra.mxu1 %v4421_v9 }
0x1ca4   :  { %3069 = vmatmul.msk.bf16.vlgmr.msrb.gmra.mxu1 %vm328_vm9, %v2132_v20 }
0x1ca5   :  { %2559 = vmatpush.bf16.msrb.mxu1 %v4252_v55 }
0x1ca9   :  { %2560 = vmatpush.bf16.msrb.mxu1 %v4255_v30 }
0x1cf1   :  { %v2145_v52 = vpop.f32.mrf.mxu0 }
0x1cf2   :  { %v2149_v22 = vadd.f32 %v2145_v52, %v1601_v62 }
0x1cf4   :  { %3330 = vtanh.f32 %v2149_v22  ;;  %v3047_v3 = vmul.f32 -1.442695, %v2149_v22 }
0x1cf9   :  { %v2147_v33 = vpop.f32.mrf.mxu0 }
0x1cfa   :  { %v3331_v14 = vpop.eup %3330 }
0x1cfb   :  { %2172 = vrot.lane.b32.xlu0 %v3331_v14, %s3657_s28 }
0x1d11   :  { %v2202_v31 = vpop.f32.mrf.mxu1  ;;  %v4461_v6 = vpop.f32.mrf.mxu0 }
0x1d12   :  { %v2206_v29 = vadd.f32 %v2202_v31, %v4298_v46 }
0x1d14   :  { %3332 = vtanh.f32 %v2206_v29  ;;  %v3049_v47 = vmul.f32 -1.442695, %v2206_v29 }
0x1d15   :  { %3334 = vpow2.f32 %v3047_v3 }
0x1d19   :  { %v2204_v58 = vpop.f32.mrf.mxu1  ;;  %v2319_v59 = vpop.f32.mrf.mxu0 }
0x1d1a   :  { %v3333_v61 = vpop.eup %3332 }
0x1d1b   :  { %2229 = vrot.lane.b32.xlu1 %v3333_v61, %s3657_s28  ;;  %v3335_v12 = vpop.eup %3334 }
0x1d1c   :  { %v2153_v13 = vadd.f32 1.0, %v3335_v12 }
0x1d1e   :  { %3336 = vrcp.f32 %v2153_v13  ;;  %v2165_v23 = vand.u32 2147483648, %v2153_v13  ;;  %vm2159_vm15 = vweird.f32 %v2153_v13  ;;  %v2163_v39 = vand.u32 2147483647, %v2153_v13 }
0x1d1f   :  { %3338 = vpow2.f32 %v3049_v47 }
0x1d20   :  { %v2166_v19 = vor.u32 1.1754944e-38, %v2165_v23  ;;  %vm2164_vm2 = vcmp.eq.f32.partialorder %v2163_v39, 8.507059e+37 }
0x1d21   :  { %v4465_v4 = vpop.f32.mrf.mxu1 }
0x1d24   :  { %v3337_v7 = vpop.eup %3336 }
0x1d25   :  { %v2155_v50 = vmul.f32 %v3337_v7, %v2153_v13  ;;  %vm2160_vm14 = vweird.f32 %v3337_v7  ;;  %v3339_v10 = vpop.eup %3338  ;;  %v3399_v13 = vld [vmem:[#allocation11 + $0x8] sm:$0xff] }
0x1d26   :  { %vm2161_vm1 = vmor %vm2159_vm15, %vm2160_vm14  ;;  %v2210_v27 = vadd.f32 1.0, %v3339_v10 }
0x1d27   :  { %v2156_v25 = vsub.f32 1.0, %v2155_v50 }
0x1d28   :  { %3340 = vrcp.f32 %v2210_v27  ;;  %v2222_v57 = vand.u32 2147483648, %v2210_v27  ;;  %vm2216_vm4 = vweird.f32 %v2210_v27  ;;  %v2220_v11 = vand.u32 2147483647, %v2210_v27 }
0x1d29   :  { %v2332_v41 = vpop.f32.mrf.mxu1  ;;  %v2157_v38 = vmul.f32 %v3337_v7, %v2156_v25 }
0x1d2a   :  { %v2223_v48 = vor.u32 1.1754944e-38, %v2222_v57  ;;  %vm2221_vm6 = vcmp.eq.f32.partialorder %v2220_v11, 8.507059e+37 }
0x1d2b   :  { %v2158_v46 = vadd.f32 %v3337_v7, %v2157_v38 }
0x1d2d   :  { %v2162_v56 = vsel %vm2161_vm1, %v3337_v7, %v2158_v46  ;;  %v3400_v7 = vld [vmem:[#allocation11] sm:$0xff] }
0x1d2e   :  { %v2167_v5 = vsel %vm2164_vm2, %v2166_v19, %v2162_v56  ;;  %v3341_v36 = vpop.eup %3340 }
0x1d2f   :  { %v2212_v17 = vmul.f32 %v3341_v36, %v2210_v27  ;;  %vm2217_vm3 = vweird.f32 %v3341_v36  ;;  %v2170_v60 = vmul.f32 %v2167_v5, %v4401_v51 }
0x1d30   :  { %vm2218_vm5 = vmor %vm2216_vm4, %vm2217_vm3 }
0x1d31   :  { %v2213_v54 = vsub.f32 1.0, %v2212_v17 }
0x1d33   :  { %v2214_v24 = vmul.f32 %v3341_v36, %v2213_v54 }
0x1d35   :  { %v2215_v43 = vadd.f32 %v3341_v36, %v2214_v24 }
0x1d37   :  { %v2219_v8 = vsel %vm2218_vm5, %v3341_v36, %v2215_v43 }
0x1d38   :  { %v2224_v2 = vsel %vm2221_vm6, %v2223_v48, %v2219_v8 }
0x1d39   :  { %v2227_v33 = vmul.f32 %v2224_v2, %v4406_v32 }
0x1d6d   :  { %v2173_v34 = vpop.permute.xlu0 %2172 }
0x1d6e   :  { %v2175_v15 = vmul.f32 %v2173_v34, %v2167_v5 }
0x1d70   :  { %2177 = vrot.lane.b32.xlu2 %v2175_v15, %s3669_s13 }
0x1d8d   :  { %v2230_v40 = vpop.permute.xlu1 %2229 }
0x1d8e   :  { %v2232_v20 = vmul.f32 %v2230_v40, %v2224_v2 }
0x1d90   :  { %2234 = vrot.lane.b32.xlu0 %v2232_v20, %s3669_s13 }
0x1dca   :  { %v2178_v62 = vpop.permute.xlu2 %2177 }
0x1dcb   :  { %v4470_v52 = vadd.f32 %v2178_v62, %v2170_v60 }
0x1dcd   :  { %3342 = vtanh.f32 %v4470_v52 }
0x1dd3   :  { %v3343_v22 = vpop.eup %3342 }
0x1dd4   :  { %2183 = vrot.lane.b32.xlu1 %v3343_v22, %s3657_s28 }
0x1e02   :  { %v2235_v14 = vpop.permute.xlu0 %2234 }
0x1e03   :  { %v4475_v31 = vadd.f32 %v2235_v14, %v2227_v33 }
0x1e05   :  { %3344 = vtanh.f32 %v4475_v31 }
0x1e0b   :  { %v3345_v29 = vpop.eup %3344 }
0x1e0c   :  { %2240 = vrot.lane.b32.xlu2 %v3345_v29, %s3657_s28 }
0x1e46   :  { %v2184_v58 = vpop.permute.xlu1 %2183 }
0x1e47   :  { %v2186_v51 = vmul.f32 %v2184_v58, %v2167_v5 }
0x1e49   :  { %v2244_v59 = vpack.c.bf16 %v2186_v51, %v2186_v51 }
0x1e4b   :  { %2246 = vrot.lane.b32.xlu0 %v2244_v59, %s3669_s13 }
0x1e66   :  { %v2241_v61 = vpop.permute.xlu2 %2240 }
0x1e67   :  { %v2243_v41 = vmul.f32 %v2241_v61, %v2224_v2 }
0x1e69   :  { %v2276_v3 = vpack.c.bf16 %v2243_v41, %v2243_v41 }
0x1e6b   :  { %2278 = vrot.lane.b32.xlu1 %v2276_v3, %s3669_s13 }
0x1ebd   :  { %v2247_v12 = vpop.permute.xlu0 %2246 }
0x1ebe   :  { %3058 = vmatmul.msk.bf16.vlgmr.msra.gmra.mxu2 %vm328_vm9, %v2247_v12 }
0x1ebf   :  { %2482 = vmatpush.bf16.msra.mxu2 %v4415_v28 }
0x1ec3   :  { %2483 = vmatpush.bf16.msra.mxu2 %v4421_v9 }
0x1ece   :  { %3070 = vmatmul.msk.bf16.vlgmr.msrb.gmra.mxu2 %vm328_vm9, %v2247_v12 }
0x1ecf   :  { %2617 = vmatpush.bf16.msrb.mxu2 %v4432_v1 }
0x1ed3   :  { %2618 = vmatpush.bf16.msrb.mxu2 %v4438_v37 }
0x1edd   :  { %v2279_v32 = vpop.permute.xlu1 %2278 }
0x1ede   :  { %3067 = vmatmul.msk.bf16.vlgmr.msra.gmra.mxu3 %vm328_vm9, %v2279_v32  ;;  %3076 = vmatmul.msk.bf16.vlgmr.msra.gmra.mxu2 %vm328_vm9, %v4389_v35  ;;  %v4502_v35 = vld [vmem:[%s4651_s18] ss:$0 sm:$0xff] }
0x1edf   :  { %2495 = vmatpush.bf16.msra.mxu3 %v4432_v1  ;;  %2676 = vmatpush.bf16.msra.mxu2 %v3399_v13 }
0x1ee3   :  { %2496 = vmatpush.bf16.msra.mxu3 %v4438_v37  ;;  %2677 = vmatpush.bf16.msra.mxu2 %v3400_v7 }
0x1eee   :  { %3072 = vmatmul.msk.bf16.vlgmr.msrb.gmra.mxu3 %vm328_vm9, %v2279_v32 }
0x1eef   :  { %2637 = vmatpush.bf16.msrb.mxu3 %v4415_v28 }
0x1ef3   :  { %2638 = vmatpush.bf16.msrb.mxu3 %v4421_v9 }
0x1efe   :  { %3077 = vmatmul.msk.bf16.vlgmr.msra.gmra.mxu3 %vm328_vm9, %v4385_v21 }
0x1eff   :  { %2727 = vmatpush.bf16.msra.mxu3 %v4252_v55 }
0x1f03   :  { %2728 = vmatpush.bf16.msra.mxu3 %v4255_v30 }
0x1f41   :  { %v2272_v50 = vpop.f32.mrf.mxu2 }
0x1f42   :  { %v2318_v25 = vadd.f32 %v4461_v6, %v2272_v50 }
0x1f44   :  { %v2845_v47 = vadd.f32 %v4502_v35, %v2318_v25 }
0x1f46   :  { %2853 = vst.msk [vmem:[#allocation17 + $0x20] sm:$0xff] %vm236_vm0, %v2845_v47 }
0x1f49   :  { %v2274_v38 = vpop.f32.mrf.mxu2 }
0x1f51   :  { %v2343_v46 = vpop.f32.mrf.mxu2 }
0x1f52   :  { %v2347_v21 = vadd.f32 %v2343_v46, %v4305_v49 }
0x1f54   :  { %3346 = vtanh.f32 %v2347_v21  ;;  %v3071_v36 = vmul.f32 -1.442695, %v2347_v21 }
0x1f59   :  { %v2345_v55 = vpop.f32.mrf.mxu2 }
0x1f5a   :  { %v3347_v23 = vpop.eup %3346 }
0x1f5b   :  { %2370 = vrot.lane.b32.xlu2 %v3347_v23, %s3657_s28 }
0x1f61   :  { %v2304_v30 = vpop.f32.mrf.mxu3  ;;  %v4509_v39 = vpop.f32.mrf.mxu2 }
0x1f62   :  { %v2331_v10 = vadd.f32 %v4465_v4, %v2304_v30 }
0x1f64   :  { %v2844_v6 = vadd.f32 %v4502_v35, %v2331_v10 }
0x1f66   :  { %2852 = vst.msk [vmem:[#allocation17 + $0x18] sm:$0xff] %vm236_vm0, %v2844_v6 }
0x1f69   :  { %v2306_v56 = vpop.f32.mrf.mxu3  ;;  %v2487_v19 = vpop.f32.mrf.mxu2 }
0x1f71   :  { %v2394_v27 = vpop.f32.mrf.mxu3 }
0x1f72   :  { %v2398_v34 = vadd.f32 %v2394_v27, %v4294_v44 }
0x1f74   :  { %3348 = vtanh.f32 %v2398_v34  ;;  %v3073_v22 = vmul.f32 -1.442695, %v2398_v34 }
0x1f75   :  { %3350 = vpow2.f32 %v3071_v36 }
0x1f79   :  { %v2396_v49 = vpop.f32.mrf.mxu3 }
0x1f7a   :  { %v3349_v5 = vpop.eup %3348 }
0x1f7b   :  { %2421 = vrot.lane.b32.xlu0 %v3349_v5, %s3657_s28  ;;  %v3351_v4 = vpop.eup %3350 }
0x1f7c   :  { %v2351_v54 = vadd.f32 1.0, %v3351_v4 }
0x1f7e   :  { %3352 = vrcp.f32 %v2351_v54  ;;  %v2363_v44 = vand.u32 2147483648, %v2351_v54  ;;  %vm2357_vm8 = vweird.f32 %v2351_v54  ;;  %v2361_v48 = vand.u32 2147483647, %v2351_v54 }
0x1f7f   :  { %3354 = vpow2.f32 %v3073_v22 }
0x1f80   :  { %v2364_v2 = vor.u32 1.1754944e-38, %v2363_v44  ;;  %vm2362_vm11 = vcmp.eq.f32.partialorder %v2361_v48, 8.507059e+37 }
0x1f81   :  { %v4516_v15 = vpop.f32.mrf.mxu3 }
0x1f84   :  { %v3353_v24 = vpop.eup %3352 }
0x1f85   :  { %v2353_v43 = vmul.f32 %v3353_v24, %v2351_v54  ;;  %vm2358_vm7 = vweird.f32 %v3353_v24  ;;  %v3355_v33 = vpop.eup %3354 }
0x1f86   :  { %vm2359_vm10 = vmor %vm2357_vm8, %vm2358_vm7  ;;  %v2402_v14 = vadd.f32 1.0, %v3355_v33 }
0x1f87   :  { %v2354_v57 = vsub.f32 1.0, %v2353_v43 }
0x1f88   :  { %3356 = vrcp.f32 %v2402_v14  ;;  %v2414_v41 = vand.u32 2147483648, %v2402_v14  ;;  %vm2408_vm13 = vweird.f32 %v2402_v14  ;;  %v2412_v3 = vand.u32 2147483647, %v2402_v14 }
0x1f89   :  { %v2500_v17 = vpop.f32.mrf.mxu3  ;;  %v2355_v11 = vmul.f32 %v3353_v24, %v2354_v57 }
0x1f8a   :  { %v2415_v32 = vor.u32 1.1754944e-38, %v2414_v41  ;;  %vm2413_vm15 = vcmp.eq.f32.partialorder %v2412_v3, 8.507059e+37 }
0x1f8b   :  { %v2356_v8 = vadd.f32 %v3353_v24, %v2355_v11 }
0x1f8d   :  { %v2360_v40 = vsel %vm2359_vm10, %v3353_v24, %v2356_v8 }
0x1f8e   :  { %v2365_v60 = vsel %vm2362_vm11, %v2364_v2, %v2360_v40  ;;  %v3357_v29 = vpop.eup %3356 }
0x1f8f   :  { %v2404_v58 = vmul.f32 %v3357_v29, %v2402_v14  ;;  %vm2409_vm12 = vweird.f32 %v3357_v29  ;;  %v2368_v25 = vmul.f32 %v2365_v60, %v4470_v52 }
0x1f90   :  { %vm2410_vm14 = vmor %vm2408_vm13, %vm2409_vm12 }
0x1f91   :  { %v2405_v51 = vsub.f32 1.0, %v2404_v58 }
0x1f93   :  { %v2406_v59 = vmul.f32 %v3357_v29, %v2405_v51 }
0x1f95   :  { %v2407_v61 = vadd.f32 %v3357_v29, %v2406_v59 }
0x1f97   :  { %v2411_v12 = vsel %vm2410_vm14, %v3357_v29, %v2407_v61 }
0x1f98   :  { %v2416_v7 = vsel %vm2413_vm15, %v2415_v32, %v2411_v12 }
0x1f99   :  { %v2419_v21 = vmul.f32 %v2416_v7, %v4475_v31 }
0x1fb5   :  { %v2371_v20 = vpop.permute.xlu2 %2370 }
0x1fb6   :  { %v2373_v62 = vmul.f32 %v2371_v20, %v2365_v60 }
0x1fb8   :  { %2375 = vrot.lane.b32.xlu1 %v2373_v62, %s3669_s13 }
0x1fed   :  { %v2422_v13 = vpop.permute.xlu0 %2421 }
0x1fee   :  { %v2424_v50 = vmul.f32 %v2422_v13, %v2416_v7 }
0x1ff0   :  { %2426 = vrot.lane.b32.xlu2 %v2424_v50, %s3669_s13 }
0x202a   :  { %v2376_v47 = vpop.permute.xlu1 %2375 }
0x202b   :  { %v4521_v38 = vadd.f32 %v2376_v47, %v2368_v25 }
0x202d   :  { %3358 = vtanh.f32 %v4521_v38 }
0x2033   :  { %v3359_v46 = vpop.eup %3358 }
0x2034   :  { %2381 = vrot.lane.b32.xlu0 %v3359_v46, %s3657_s28 }
0x204a   :  { %v2427_v55 = vpop.permute.xlu2 %2426 }
0x204b   :  { %v4526_v23 = vadd.f32 %v2427_v55, %v2419_v21 }
0x204d   :  { %3360 = vtanh.f32 %v4526_v23 }
0x2053   :  { %v3361_v30 = vpop.eup %3360 }
0x2054   :  { %2432 = vrot.lane.b32.xlu1 %v3361_v30, %s3657_s28 }
0x20a6   :  { %v2382_v10 = vpop.permute.xlu0 %2381 }
0x20a7   :  { %v2384_v52 = vmul.f32 %v2382_v10, %v2365_v60 }
0x20a9   :  { %v2436_v6 = vpack.c.bf16 %v2384_v52, %v2384_v52 }
0x20ab   :  { %2438 = vrot.lane.b32.xlu2 %v2436_v6, %s3669_s13 }
0x20c6   :  { %v2433_v56 = vpop.permute.xlu1 %2432 }
0x20c7   :  { %v2435_v19 = vmul.f32 %v2433_v56, %v2416_v7 }
0x20c9   :  { %v2456_v27 = vpack.c.bf16 %v2435_v19, %v2435_v19 }
0x20cb   :  { %2458 = vrot.lane.b32.xlu0 %v2456_v27, %s3669_s13 }
0x2105   :  { %v2439_v34 = vpop.permute.xlu2 %2438 }
0x2106   :  { %3074 = vmatmul.msk.bf16.vlgmr.msra.gmra.mxu0 %vm328_vm9, %v2439_v34 }
0x2107   :  { %2650 = vmatpush.bf16.msra.mxu0 %v4415_v28 }
0x210b   :  { %2651 = vmatpush.bf16.msra.mxu0 %v4421_v9 }
0x2116   :  { %3078 = vmatmul.msk.bf16.vlgmr.msrb.gmra.mxu0 %vm328_vm9, %v2439_v34 }
0x2117   :  { %2785 = vmatpush.bf16.msrb.mxu0 %v4432_v1 }
0x211b   :  { %2786 = vmatpush.bf16.msrb.mxu0 %v4438_v37 }
0x2126   :  { %3084 = vmatmul.msk.bf16.vlgmr.msra.gmra.mxu0 %vm328_vm9, %v4362_v45 }
0x213d   :  { %v2459_v31 = vpop.permute.xlu0 %2458 }
0x213e   :  { %3075 = vmatmul.msk.bf16.vlgmr.msra.gmra.mxu1 %vm328_vm9, %v2459_v31 }
0x213f   :  { %2663 = vmatpush.bf16.msra.mxu1 %v4432_v1 }
0x2143   :  { %2664 = vmatpush.bf16.msra.mxu1 %v4438_v37 }
0x214e   :  { %3080 = vmatmul.msk.bf16.vlgmr.msrb.gmra.mxu1 %vm328_vm9, %v2459_v31 }
0x214f   :  { %2805 = vmatpush.bf16.msrb.mxu1 %v4415_v28 }
0x2153   :  { %2806 = vmatpush.bf16.msrb.mxu1 %v4421_v9 }
0x215e   :  { %3085 = vmatmul.msk.bf16.vlgmr.msra.gmra.mxu1 %vm328_vm9, %v4358_v18 }
0x2183   :  { %v2452_v49 = vpop.f32.mrf.mxu0 }
0x2184   :  { %v2486_v5 = vadd.f32 %v4509_v39, %v2452_v49 }
0x2186   :  { %v2846_v45 = vadd.f32 %v4502_v35, %v2486_v5 }
0x2188   :  { %2854 = vst.msk [vmem:[#allocation17 + $0x28] sm:$0xff] %vm236_vm0, %v2846_v45 }
0x218b   :  { %v2454_v36 = vpop.f32.mrf.mxu0 }
0x2193   :  { %v2511_v17 = vpop.f32.mrf.mxu0 }
0x2194   :  { %v2515_v4 = vadd.f32 %v2511_v17, %v4310_v16 }
0x2196   :  { %3362 = vtanh.f32 %v2515_v4  ;;  %v3079_v20 = vmul.f32 -1.442695, %v2515_v4 }
0x219b   :  { %v2513_v54 = vpop.f32.mrf.mxu0 }
0x219c   :  { %v3363_v24 = vpop.eup %3362 }
0x219d   :  { %2538 = vrot.lane.b32.xlu1 %v3363_v24, %s3657_s28 }
0x21a3   :  { %v4553_v43 = vpop.f32.mrf.mxu0 }
0x21ab   :  { %v2655_v57 = vpop.f32.mrf.mxu0 }
0x21bb   :  { %v2472_v18 = vpop.f32.mrf.mxu1 }
0x21bc   :  { %v2499_v11 = vadd.f32 %v4516_v15, %v2472_v18 }
0x21be   :  { %v2843_v39 = vadd.f32 %v4502_v35, %v2499_v11 }
0x21c0   :  { %2851 = vst.msk [vmem:[#allocation17 + $0x10] sm:$0xff] %vm236_vm0, %v2843_v39 }
0x21c3   :  { %v2474_v8 = vpop.f32.mrf.mxu1 }
0x21cb   :  { %v2562_v44 = vpop.f32.mrf.mxu1 }
0x21cc   :  { %v2566_v48 = vadd.f32 %v2562_v44, %v4289_v53 }
0x21ce   :  { %3364 = vtanh.f32 %v2566_v48  ;;  %v3081_v29 = vmul.f32 -1.442695, %v2566_v48 }
0x21cf   :  { %3366 = vpow2.f32 %v3079_v20 }
0x21d3   :  { %v2564_v16 = vpop.f32.mrf.mxu1 }
0x21d4   :  { %v3365_v40 = vpop.eup %3364 }
0x21d5   :  { %2589 = vrot.lane.b32.xlu2 %v3365_v40, %s3657_s28  ;;  %v3367_v62 = vpop.eup %3366 }
0x21d6   :  { %v2519_v15 = vadd.f32 1.0, %v3367_v62 }
0x21d8   :  { %3368 = vrcp.f32 %v2519_v15  ;;  %v2531_v51 = vand.u32 2147483648, %v2519_v15  ;;  %vm2525_vm2 = vweird.f32 %v2519_v15  ;;  %v2529_v59 = vand.u32 2147483647, %v2519_v15 }
0x21d9   :  { %3370 = vpow2.f32 %v3081_v29 }
0x21da   :  { %v2532_v3 = vor.u32 1.1754944e-38, %v2531_v51  ;;  %vm2530_vm4 = vcmp.eq.f32.partialorder %v2529_v59, 8.507059e+37 }
0x21db   :  { %v4560_v2 = vpop.f32.mrf.mxu1 }
0x21de   :  { %v3369_v22 = vpop.eup %3368 }
0x21df   :  { %v2521_v33 = vmul.f32 %v3369_v22, %v2519_v15  ;;  %vm2526_vm1 = vweird.f32 %v3369_v22  ;;  %v3371_v61 = vpop.eup %3370 }
0x21e0   :  { %vm2527_vm3 = vmor %vm2525_vm2, %vm2526_vm1  ;;  %v2570_v12 = vadd.f32 1.0, %v3371_v61 }
0x21e1   :  { %v2522_v14 = vsub.f32 1.0, %v2521_v33 }
0x21e2   :  { %3372 = vrcp.f32 %v2570_v12  ;;  %v2582_v55 = vand.u32 2147483648, %v2570_v12  ;;  %vm2576_vm6 = vweird.f32 %v2570_v12  ;;  %v2580_v30 = vand.u32 2147483647, %v2570_v12 }
0x21e3   :  { %v2668_v60 = vpop.f32.mrf.mxu1  ;;  %v2523_v58 = vmul.f32 %v3369_v22, %v2522_v14 }
0x21e4   :  { %v2583_v52 = vor.u32 1.1754944e-38, %v2582_v55  ;;  %vm2581_vm8 = vcmp.eq.f32.partialorder %v2580_v30, 8.507059e+37 }
0x21e5   :  { %v2524_v53 = vadd.f32 %v3369_v22, %v2523_v58 }
0x21e7   :  { %v2528_v41 = vsel %vm2527_vm3, %v3369_v22, %v2524_v53 }
0x21e8   :  { %v2533_v32 = vsel %vm2530_vm4, %v2532_v3, %v2528_v41  ;;  %v3373_v50 = vpop.eup %3372 }
0x21e9   :  { %v2572_v25 = vmul.f32 %v3373_v50, %v2570_v12  ;;  %vm2577_vm5 = vweird.f32 %v3373_v50  ;;  %v2536_v27 = vmul.f32 %v2533_v32, %v4521_v38 }
0x21ea   :  { %vm2578_vm7 = vmor %vm2576_vm6, %vm2577_vm5 }
0x21eb   :  { %v2573_v47 = vsub.f32 1.0, %v2572_v25 }
0x21ed   :  { %v2574_v46 = vmul.f32 %v3373_v50, %v2573_v47 }
0x21ef   :  { %v2575_v21 = vadd.f32 %v3373_v50, %v2574_v46 }
0x21f1   :  { %v2579_v10 = vsel %vm2578_vm7, %v3373_v50, %v2575_v21 }
0x21f2   :  { %v2584_v56 = vsel %vm2581_vm8, %v2583_v52, %v2579_v10 }
0x21f3   :  { %v2587_v5 = vmul.f32 %v2584_v56, %v4526_v23 }
0x220f   :  { %v2539_v13 = vpop.permute.xlu1 %2538 }
0x2210   :  { %v2541_v7 = vmul.f32 %v2539_v13, %v2533_v32 }
0x2212   :  { %2543 = vrot.lane.b32.xlu0 %v2541_v7, %s3669_s13 }
0x222f   :  { %v2590_v6 = vpop.permute.xlu2 %2589 }
0x2230   :  { %v2592_v19 = vmul.f32 %v2590_v6, %v2584_v56 }
0x2232   :  { %2594 = vrot.lane.b32.xlu1 %v2592_v19, %s3669_s13 }
0x2284   :  { %v2544_v34 = vpop.permute.xlu0 %2543 }
0x2285   :  { %v4565_v31 = vadd.f32 %v2544_v34, %v2536_v27 }
0x2287   :  { %3374 = vtanh.f32 %v4565_v31 }
0x228d   :  { %v3375_v49 = vpop.eup %3374 }
0x228e   :  { %2549 = vrot.lane.b32.xlu2 %v3375_v49, %s3657_s28 }
0x22a4   :  { %v2595_v45 = vpop.permute.xlu1 %2594 }
0x22a5   :  { %v4570_v36 = vadd.f32 %v2595_v45, %v2587_v5 }
0x22a7   :  { %3376 = vtanh.f32 %v4570_v36 }
0x22ad   :  { %v3377_v17 = vpop.eup %3376 }
0x22ae   :  { %2600 = vrot.lane.b32.xlu0 %v3377_v17, %s3657_s28 }
0x22e8   :  { %v2550_v4 = vpop.permute.xlu2 %2549 }
0x22e9   :  { %v2552_v38 = vmul.f32 %v2550_v4, %v2533_v32 }
0x22eb   :  { %v2604_v54 = vpack.c.bf16 %v2552_v38, %v2552_v38 }
0x22ed   :  { %2606 = vrot.lane.b32.xlu1 %v2604_v54, %s3669_s13 }
0x2320   :  { %v2601_v24 = vpop.permute.xlu0 %2600 }
0x2321   :  { %v2603_v57 = vmul.f32 %v2601_v24, %v2584_v56 }
0x2323   :  { %v2624_v18 = vpack.c.bf16 %v2603_v57, %v2603_v57 }
0x2325   :  { %2626 = vrot.lane.b32.xlu2 %v2624_v18, %s3669_s13 }
0x235f   :  { %v2607_v11 = vpop.permute.xlu1 %2606 }
0x2360   :  { %3082 = vmatmul.msk.bf16.vlgmr.msrb.gmra.mxu2 %vm328_vm9, %v2607_v11 }
0x2361   :  { %2818 = vmatpush.bf16.msrb.mxu2 %v4415_v28 }
0x2365   :  { %2819 = vmatpush.bf16.msrb.mxu2 %v4421_v9 }
0x2370   :  { %3086 = vmatmul.msk.bf16.vlgmr.msra.gmra.mxu2 %vm328_vm9, %v2607_v11 }
0x237f   :  { %v2627_v23 = vpop.permute.xlu2 %2626 }
0x2380   :  { %3083 = vmatmul.msk.bf16.vlgmr.msrb.gmra.mxu3 %vm328_vm9, %v2627_v23  ;;  %3092 = vmatmul.msk.bf16.vlgmr.msrb.gmra.mxu2 %vm328_vm9, %v4333_v63  ;;  %v3401_v63 = vld [vmem:[%s4645_s12] ss:$0 sm:$0xff]  ;;  %s3670_s12 = smov [#allocation16]  }
0x2381   :  { %2831 = vmatpush.bf16.msrb.mxu3 %v4432_v1  ;;  %v1608_v1 = vadd.f32 %v3401_v63, %v4456_v42  ;;  %s2861_s1 = sshll.u32 %s3670_s12, 4  ;;  %s2862_s1 = int_to_ptr.vmem [resolvable:$true] %s2861_s1 }
0x2382   :  { %2869 = dma.vmem_to_hbm [thread:$0]  %s2862_s1, 1024, %s2864_s26, [#allocation4], %s3662_s25, %s3662_s25, %s3663_s29  }
0x2385   :  { %2832 = vmatpush.bf16.msrb.mxu3 %v4438_v37 }
0x2390   :  { %3088 = vmatmul.msk.bf16.vlgmr.msra.gmra.mxu3 %vm328_vm9, %v2627_v23 }
0x23a0   :  { %3093 = vmatmul.msk.bf16.vlgmr.msrb.gmra.mxu3 %vm328_vm9, %v4327_v26 }
0x23e3   :  { %v2620_v28 = vpop.f32.mrf.mxu2 }
0x23e4   :  { %v2654_v9 = vadd.f32 %v4553_v43, %v2620_v28 }
0x23e6   :  { %v2847_v39 = vadd.f32 %v4502_v35, %v2654_v9 }
0x23e8   :  { %2855 = vst.msk [vmem:[#allocation17 + $0x30] sm:$0xff] %vm236_vm0, %v2847_v39 }
0x23eb   :  { %v2622_v8 = vpop.f32.mrf.mxu2 }
0x23f3   :  { %v2679_v37 = vpop.f32.mrf.mxu2 }
0x23f4   :  { %v2683_v44 = vadd.f32 %v2679_v37, %v1608_v1 }
0x23f6   :  { %3378 = vtanh.f32 %v2683_v44  ;;  %v3087_v58 = vmul.f32 -1.442695, %v2683_v44 }
0x23fb   :  { %v2681_v48 = vpop.f32.mrf.mxu2 }
0x23fc   :  { %v3379_v16 = vpop.eup %3378 }
0x23fd   :  { %2706 = vrot.lane.b32.xlu0 %v3379_v16, %s3657_s28 }
0x2403   :  { %v2640_v26 = vpop.f32.mrf.mxu3  ;;  %v4596_v43 = vpop.f32.mrf.mxu2 }
0x2404   :  { %v2667_v40 = vadd.f32 %v4560_v2, %v2640_v26 }
0x2406   :  { %v2842_v20 = vadd.f32 %v4502_v35, %v2667_v40 }
0x2408   :  { %2850 = vst.msk [vmem:[#allocation17 + $0x8] sm:$0xff] %vm236_vm0, %v2842_v20 }
0x240b   :  { %v2642_v60 = vpop.f32.mrf.mxu3  ;;  %v2823_v62 = vpop.f32.mrf.mxu2 }
0x2413   :  { %v2730_v15 = vpop.f32.mrf.mxu3 }
0x2414   :  { %v2734_v42 = vadd.f32 %v2730_v15, %v4285_v0 }
0x2416   :  { %3380 = vtanh.f32 %v2734_v42  ;;  %v3089_v41 = vmul.f32 -1.442695, %v2734_v42 }
0x2417   :  { %3382 = vpow2.f32 %v3087_v58 }
0x241b   :  { %v2732_v22 = vpop.f32.mrf.mxu3 }
0x241c   :  { %v3381_v33 = vpop.eup %3380 }
0x241d   :  { %2757 = vrot.lane.b32.xlu1 %v3381_v33, %s3657_s28  ;;  %v3383_v2 = vpop.eup %3382 }
0x241e   :  { %v2687_v53 = vadd.f32 1.0, %v3383_v2 }
0x2420   :  { %3384 = vrcp.f32 %v2687_v53  ;;  %v2699_v12 = vand.u32 2147483648, %v2687_v53  ;;  %vm2693_vm11 = vweird.f32 %v2687_v53  ;;  %v2697_v32 = vand.u32 2147483647, %v2687_v53 }
0x2421   :  { %3386 = vpow2.f32 %v3089_v41 }
0x2422   :  { %v2700_v50 = vor.u32 1.1754944e-38, %v2699_v12  ;;  %vm2698_vm13 = vcmp.eq.f32.partialorder %v2697_v32, 8.507059e+37 }
0x2423   :  { %v4603_v14 = vpop.f32.mrf.mxu3 }
0x2426   :  { %v3385_v51 = vpop.eup %3384 }
0x2427   :  { %v2689_v59 = vmul.f32 %v3385_v51, %v2687_v53  ;;  %vm2694_vm10 = vweird.f32 %v3385_v51  ;;  %v3387_v13 = vpop.eup %3386 }
0x2428   :  { %vm2695_vm12 = vmor %vm2693_vm11, %vm2694_vm10  ;;  %v2738_v25 = vadd.f32 1.0, %v3387_v13 }
0x2429   :  { %v2690_v61 = vsub.f32 1.0, %v2689_v59 }
0x242a   :  { %3388 = vrcp.f32 %v2738_v25  ;;  %v2750_v56 = vand.u32 2147483648, %v2738_v25  ;;  %vm2744_vm15 = vweird.f32 %v2738_v25  ;;  %v2748_v19 = vand.u32 2147483647, %v2738_v25 }
0x242b   :  { %v2836_v29 = vpop.f32.mrf.mxu3  ;;  %v2691_v3 = vmul.f32 %v3385_v51, %v2690_v61 }
0x242c   :  { %v2751_v34 = vor.u32 1.1754944e-38, %v2750_v56  ;;  %vm2749_vm2 = vcmp.eq.f32.partialorder %v2748_v19, 8.507059e+37 }
0x242d   :  { %v2692_v0 = vadd.f32 %v3385_v51, %v2691_v3 }
0x242f   :  { %v2696_v7 = vsel %vm2695_vm12, %v3385_v51, %v2692_v0 }
0x2430   :  { %v2701_v46 = vsel %vm2698_vm13, %v2700_v50, %v2696_v7  ;;  %v3389_v55 = vpop.eup %3388 }
0x2431   :  { %v2740_v30 = vmul.f32 %v3389_v55, %v2738_v25  ;;  %vm2745_vm14 = vweird.f32 %v3389_v55  ;;  %v2704_v17 = vmul.f32 %v2701_v46, %v4565_v31 }
0x2432   :  { %vm2746_vm1 = vmor %vm2744_vm15, %vm2745_vm14 }
0x2433   :  { %v2741_v10 = vsub.f32 1.0, %v2740_v30 }
0x2435   :  { %v2742_v52 = vmul.f32 %v3389_v55, %v2741_v10 }
0x2437   :  { %v2743_v6 = vadd.f32 %v3389_v55, %v2742_v52 }
0x2439   :  { %v2747_v27 = vsel %vm2746_vm1, %v3389_v55, %v2743_v6 }
0x243a   :  { %v2752_v49 = vsel %vm2749_vm2, %v2751_v34, %v2747_v27 }
0x243b   :  { %v2755_v24 = vmul.f32 %v2752_v49, %v4570_v36 }
0x246f   :  { %v2707_v47 = vpop.permute.xlu0 %2706 }
0x2470   :  { %v2709_v21 = vmul.f32 %v2707_v47, %v2701_v46 }
0x2472   :  { %2711 = vrot.lane.b32.xlu2 %v2709_v21, %s3669_s13 }
0x248f   :  { %v2758_v5 = vpop.permute.xlu1 %2757 }
0x2490   :  { %v2760_v45 = vmul.f32 %v2758_v5, %v2752_v49 }
0x2492   :  { %2762 = vrot.lane.b32.xlu0 %v2760_v45, %s3669_s13 }
0x24cc   :  { %v2712_v4 = vpop.permute.xlu2 %2711 }
0x24cd   :  { %v2714_v38 = vadd.f32 %v2712_v4, %v2704_v17 }
0x24cf   :  { %3390 = vtanh.f32 %v2714_v38 }
0x24d5   :  { %v3391_v54 = vpop.eup %3390 }
0x24d6   :  { %2717 = vrot.lane.b32.xlu1 %v3391_v54, %s3657_s28 }
0x2504   :  { %v2763_v57 = vpop.permute.xlu0 %2762 }
0x2505   :  { %v2765_v18 = vadd.f32 %v2763_v57, %v2755_v24 }
0x2507   :  { %3392 = vtanh.f32 %v2765_v18 }
0x250d   :  { %v3393_v11 = vpop.eup %3392 }
0x250e   :  { %2768 = vrot.lane.b32.xlu2 %v3393_v11, %s3657_s28 }
0x2548   :  { %v2718_v23 = vpop.permute.xlu1 %2717 }
0x2549   :  { %v2720_v28 = vmul.f32 %v2718_v23, %v2701_v46 }
0x254b   :  { %v2772_v9 = vpack.c.bf16 %v2720_v28, %v2720_v28 }
0x254d   :  { %2774 = vrot.lane.b32.xlu0 %v2772_v9, %s3669_s13 }
0x2568   :  { %v2769_v31 = vpop.permute.xlu2 %2768 }
0x2569   :  { %v2771_v39 = vmul.f32 %v2769_v31, %v2752_v49 }
0x256b   :  { %v2792_v8 = vpack.c.bf16 %v2771_v39, %v2771_v39 }
0x256d   :  { %2794 = vrot.lane.b32.xlu1 %v2792_v8, %s3669_s13  ;;  %s3671_s13 = smov [#allocation17]  }
0x256e   :  { %s2874_s2 = sshll.u32 %s3671_s13, 4  ;;  %s2875_s2 = int_to_ptr.vmem [resolvable:$true] %s2874_s2 }
0x25bf   :  { %v2775_v63 = vpop.permute.xlu0 %2774 }
0x25c0   :  { %3090 = vmatmul.msk.bf16.vlgmr.msrb.gmra.mxu0 %vm328_vm9, %v2775_v63 }
0x25df   :  { %v2795_v36 = vpop.permute.xlu1 %2794 }
0x25e0   :  { %3091 = vmatmul.msk.bf16.vlgmr.msrb.gmra.mxu1 %vm328_vm9, %v2795_v36 }
0x263d   :  { %v2788_v1 = vpop.f32.mrf.mxu0 }
0x263e   :  { %v2822_v37 = vadd.f32 %v4596_v43, %v2788_v1 }
0x2640   :  { %v2848_v44 = vadd.f32 %v4502_v35, %v2822_v37 }
0x2642   :  { %2856 = vst.msk [vmem:[#allocation17 + $0x38] sm:$0xff] %vm236_vm0, %v2848_v44 }
0x2645   :  { %v2790_v48 = vpop.f32.mrf.mxu0 }
0x265d   :  { %v2808_v16 = vpop.f32.mrf.mxu1 }
0x265e   :  { %v2835_v26 = vadd.f32 %v4603_v14, %v2808_v16 }
0x2660   :  { %v2841_v40 = vadd.f32 %v4502_v35, %v2835_v26 }
0x2662   :  { %2849 = vst.msk [vmem:[#allocation17] sm:$0xff] %vm236_vm0, %v2841_v40 }
0x2663   :  { %2882 = dma.vmem_to_hbm [thread:$0]  %s2875_s2, 1024, %s2877_s19, [#allocation18], %s3662_s25, %s3662_s25, %s3663_s29  }
0x2665   :  { %v2810_v43 = vpop.f32.mrf.mxu1 }
0x2666   :  { %3652 = dma.done.wait [#allocation4], 1024  }
0x2667   :  { %3653 = vsyncadd [#allocation4], 4294966272 }
0x2668   :  { %3654 = dma.done.wait [#allocation18], 1024  }
0x2669   :  { %3655 = vsyncadd [#allocation18], 4294966272 }
0x266a   :  { %2891 = vsyncpa [#allocation3], 1 }
0x266b   :  { %2892 = vsyncpa [#allocation6], 1 }
0x266c   :  { %2893 = vsyncpa [#allocation9], 1 }
0x266d   :  { %2894 = vsyncpa [#allocation12], 1 }
0x266e   :  { %2895 = vsyncpa [#allocation15], 1 }
0x266f   :  { %2896 = vsyncpa [#allocation4], 1 }
0x2670   :  { %2897 = vsyncpa [#allocation18], 1 }

</bundles_post_ra>
